<compile_context>
chip_gen: v5e
topology: v5e:2x2
jax: 0.10.0
libtpu: 0.0.40
codegen_flags: <defaults>
</compile_context>

<pallas_src>
import functools
import math

import jax
import jax.numpy as jnp
from jax import lax
from jax.experimental import pallas as pl
from jax.experimental.pallas import tpu as pltpu


def _p6p7_kernel(xsd_ref, w6_ref, b6_ref, w7_ref, b7_ref,   # inputs
                 p6_ref, p7_ref,                            # outputs
                 a6_ref, sd_ref, a7_ref,                     # VMEM scratch
                 *, Ho, Wo, Cin, Cout):
    """Fused p6 = conv3x3s2(x), p7 = conv3x3s2(relu(p6)) for one image.

    xsd_ref: (1, Hs, Ws, 16*Cin)  padded input, space-to-depth by 4:
             xsd[R, C, (ry*4+rx)*Cin + ci] == x_padded[4R+ry, 4C+rx, ci]
    w6_ref:  (9*Cin,  Cout)  rows ordered (ky, kx, cin)
    w7_ref:  (9*Cout, Cout)
    b6_ref/b7_ref: (1, Cout)
    p6_ref:  (1, Ho*Wo,  Cout)  rows in (parity-class, i, j) order (wrapper undoes)
    p7_ref:  (1, Ho2*Wo2, Cout) rows in row-major (oh2, ow2) order
    """
    Hq, Wq = Ho // 2, Wo // 2          # conv1 per-parity-class output block
    Ho2, Wo2 = Ho // 2, Wo // 2        # conv2 (p7) output size (== Hq, Wq)
    M4 = Hq * Wq                       # im2col rows per parity class
    M1 = Ho * Wo                       # conv1 matmul M (all p6 pixels)

    # ------------------- conv1 (p6): im2col -> ONE matmul -------------------
    # Output pixels are grouped by (row parity po, col parity pw) so the ReLU'd
    # result can later be scattered into a stride-2 space-to-depth scratch with
    # contiguous stores only.  Every tap read below is a contiguous slab and is
    # written straight into the 2-D matmul LHS (one pass, no re-flatten).
    # TODO(synk): when Wq % 8 == 0 the per-row copies below could be merged
    # into one (Hq, Wq, Cin) -> (Hq*Wq, Cin) layout-preserving reshape per tap.
    for po in range(2):
        for pw in range(2):
            cls = 2 * po + pw
            base = cls * M4
            for ky in range(3):
                for kx in range(3):
                    t = ky * 3 + kx
                    ay, ax = 2 * po + ky, 2 * pw + kx
                    ch = ((ay % 4) * 4 + (ax % 4)) * Cin
                    src_r, src_c = ay // 4, ax // 4
                    for i in range(Hq):
                        a6_ref[base + i * Wq: base + (i + 1) * Wq,
                               t * Cin:(t + 1) * Cin] = xsd_ref[
                            0, src_r + i, src_c: src_c + Wq, ch: ch + Cin]

    out1 = jnp.dot(a6_ref[...], w6_ref[...],
                   preferred_element_type=jnp.float32,
                   precision=lax.Precision.HIGHEST) + b6_ref[...]
    p6_ref[0] = out1.astype(p6_ref.dtype)     # class-major rows; wrapper undoes

    # ------- relu(p6) -> zero-padded stride-2 space-to-depth scratch --------
    # sd[R, C, (dy*2+dx)*Cout + co] == relu(p6)_padded[2R+dy, 2C+dx, co]
    sd_ref[...] = jnp.zeros(sd_ref.shape, sd_ref.dtype)   # 1-px zero halo
    r1 = jnp.maximum(out1, 0.0)                # ReLU applied ONCE on whole block
    for po in range(2):
        for pw in range(2):
            cls = 2 * po + pw
            q = 2 * (1 - po) + (1 - pw)        # quadrant of padded coordinates
            for i in range(Hq):
                sd_ref[po + i, pw: pw + Wq, q * Cout:(q + 1) * Cout] = (
                    r1[cls * M4 + i * Wq: cls * M4 + (i + 1) * Wq, :])

    # ------------------- conv2 (p7): im2col -> ONE matmul -------------------
    for ky in range(3):
        for kx in range(3):
            t = ky * 3 + kx
            q = 2 * (ky % 2) + (kx % 2)
            for i in range(Ho2):
                a7_ref[i * Wo2:(i + 1) * Wo2, t * Cout:(t + 1) * Cout] = sd_ref[
                    ky // 2 + i, kx // 2: kx // 2 + Wo2, q * Cout:(q + 1) * Cout]

    out2 = jnp.dot(a7_ref[...], w7_ref[...],
                   preferred_element_type=jnp.float32,
                   precision=lax.Precision.HIGHEST) + b7_ref[...]
    p7_ref[0] = out2.astype(p7_ref.dtype)


def last_level_p6p7(c5, p5, w6, b6, w7, b7, *, in_channels, out_channels):
    """Pallas equivalent of LastLevelP6P7.forward.  c5/p5 are NCHW."""
    use_p5 = in_channels == out_channels
    x = p5 if use_p5 else c5
    x = jnp.transpose(x, (0, 2, 3, 1))                  # NCHW -> NHWC
    N, H, W, Cin = x.shape
    Cout = w6.shape[-1]
    # TODO(synk): support general H/W; the fused kernel assumes H % 4 == 0 and
    # W % 4 == 0 so both stride-2 convs tile evenly into parity classes.
    assert H % 4 == 0 and W % 4 == 0, "fused P6/P7 kernel needs H, W % 4 == 0"
    Ho, Wo = H // 2, W // 2
    Ho2, Wo2 = Ho // 2, Wo // 2
    Hq, Wq = Ho // 2, Wo // 2
    M1, M2 = Ho * Wo, Ho2 * Wo2

    # Pad once (1-px conv halo + extra zeros so H+2/W+2 round up to a multiple
    # of 4), then space-to-depth by 4 so every in-kernel tap read is contiguous.
    xp = jnp.pad(x, ((0, 0), (1, 3), (1, 3), (0, 0)))
    Hs, Ws = (H + 4) // 4, (W + 4) // 4
    xsd = xp.reshape(N, Hs, 4, Ws, 4, Cin).transpose(0, 1, 3, 2, 4, 5)
    xsd = xsd.reshape(N, Hs, Ws, 16 * Cin)

    w6_2d = w6.reshape(9 * Cin, Cout)        # row order = (ky, kx, cin)
    w7_2d = w7.reshape(9 * Cout, Cout)
    b6_2d = b6.reshape(1, Cout)
    b7_2d = b7.reshape(1, Cout)

    # TODO(synk): for very large Cin (C5 path with 2048 ch) add a K-tiled grid
    # axis / bf16 weights to stay inside v7x's 64 MiB VMEM.
    fp = 4
    vmem_need = fp * (
        2 * (Hs * Ws * 16 * Cin + 9 * Cin * Cout + 2 * Cout
             + 9 * Cout * Cout + M1 * Cout + M2 * Cout)     # pipelined in/out
        + M1 * 9 * Cin                                       # conv1 im2col LHS
        + (Hq + 1) * (Wq + 1) * 4 * Cout                     # padded sd relu(p6)
        + M2 * 9 * Cout)                                     # conv2 im2col LHS
    vmem_limit = int(min(max(int(vmem_need * 1.25), 32 * 2 ** 20), 100 * 2 ** 20))

    kernel = functools.partial(_p6p7_kernel, Ho=Ho, Wo=Wo, Cin=Cin, Cout=Cout)
    p6_flat, p7_flat = pl.pallas_call(
        kernel,
        out_shape=(jax.ShapeDtypeStruct((N, M1, Cout), x.dtype),
                   jax.ShapeDtypeStruct((N, M2, Cout), x.dtype)),
        grid=(N,),
        in_specs=[
            pl.BlockSpec((1, Hs, Ws, 16 * Cin), lambda n: (n, 0, 0, 0)),
            pl.BlockSpec((9 * Cin, Cout), lambda n: (0, 0)),
            pl.BlockSpec((1, Cout), lambda n: (0, 0)),
            pl.BlockSpec((9 * Cout, Cout), lambda n: (0, 0)),
            pl.BlockSpec((1, Cout), lambda n: (0, 0)),
        ],
        out_specs=(pl.BlockSpec((1, M1, Cout), lambda n: (n, 0, 0)),
                   pl.BlockSpec((1, M2, Cout), lambda n: (n, 0, 0))),
        scratch_shapes=[
            pltpu.VMEM((M1, 9 * Cin), jnp.float32),               # conv1 im2col
            pltpu.VMEM((Hq + 1, Wq + 1, 4 * Cout), jnp.float32),  # padded sd relu(p6)
            pltpu.VMEM((M2, 9 * Cout), jnp.float32),              # conv2 im2col
        ],
        compiler_params=pltpu.CompilerParams(
            dimension_semantics=("parallel",),   # batch axis -> both v7x TCs
            vmem_limit_bytes=vmem_limit),
    )(xsd, w6_2d, b6_2d, w7_2d, b7_2d)

    # Undo the kernel's output layouts (XLA-side, cheap).
    p6 = p6_flat.reshape(N, 2, 2, Hq, Wq, Cout).transpose(0, 3, 1, 4, 2, 5)
    p6 = p6.reshape(N, Ho, Wo, Cout)
    p7 = p7_flat.reshape(N, Ho2, Wo2, Cout)
    return [jnp.transpose(p6, (0, 3, 1, 2)),     # back to NCHW
            jnp.transpose(p7, (0, 3, 1, 2))]


def _ref_conv3x3_s2(x_nhwc, w_hwio, b):
    y = lax.conv_general_dilated(
        x_nhwc, w_hwio, window_strides=(2, 2), padding=((1, 1), (1, 1)),
        dimension_numbers=("NHWC", "HWIO", "NHWC"),
        precision=lax.Precision.HIGHEST)
    return y + b[None, None, None, :]


if __name__ == "__main__":
    key = jax.random.PRNGKey(0)
    in_channels, out_channels = 4, 8          # use_P5 = (4 == 8) = False -> x = c5
    N, H, W = 2, 16, 16
    k1, k2, k3, k4 = jax.random.split(key, 4)

    c5 = jax.random.normal(k1, (N, in_channels, H, W), jnp.float32)
    p5 = jax.random.normal(k2, (N, out_channels, H, W), jnp.float32)

    # kaiming_uniform_(a=1): bound = sqrt(6 / ((1 + a^2) * fan_in)) = sqrt(3 / fan_in)
    fan6 = in_channels * 9
    w6 = jax.random.uniform(k3, (3, 3, in_channels, out_channels), jnp.float32,
                            -math.sqrt(3.0 / fan6), math.sqrt(3.0 / fan6))
    b6 = jnp.zeros((out_channels,), jnp.float32)
    fan7 = out_channels * 9
    w7 = jax.random.uniform(k4, (3, 3, out_channels, out_channels), jnp.float32,
                            -math.sqrt(3.0 / fan7), math.sqrt(3.0 / fan7))
    b7 = jnp.zeros((out_channels,), jnp.float32)

    p6, p7 = last_level_p6p7(c5, p5, w6, b6, w7, b7,
                             in_channels=in_channels, out_channels=out_channels)
    jax.block_until_ready((p6, p7))

    # Cross-check against XLA's conv (same NCHW convention as the torch module).
    x_nhwc = jnp.transpose(c5, (0, 2, 3, 1))
    p6_ref_nhwc = _ref_conv3x3_s2(x_nhwc, w6, b6)
    p7_ref_nhwc = _ref_conv3x3_s2(jax.nn.relu(p6_ref_nhwc), w7, b7)
    p6_ref = jnp.transpose(p6_ref_nhwc, (0, 3, 1, 2))
    p7_ref = jnp.transpose(p7_ref_nhwc, (0, 3, 1, 2))

    assert p6.shape == (N, out_channels, H // 2, W // 2)
    assert p7.shape == (N, out_channels, H // 4, W // 4)
    assert bool(jnp.allclose(p6, p6_ref, atol=1e-3, rtol=1e-3))
    assert bool(jnp.allclose(p7, p7_ref, atol=1e-3, rtol=1e-3))
    print("KERNEL_OK")
</pallas_src>

<mosaic_0001>
module attributes {stable_mosaic.version = 11 : i64} {
  func.func @_p6p7_kernel(%arg0: i32, %arg1: memref<1x5x5x64xf32, #tpu.memory_space<vmem>>, %arg2: memref<36x8xf32, #tpu.memory_space<vmem>>, %arg3: memref<1x8xf32, #tpu.memory_space<vmem>>, %arg4: memref<72x8xf32, #tpu.memory_space<vmem>>, %arg5: memref<1x8xf32, #tpu.memory_space<vmem>>, %arg6: memref<1x64x8xf32, #tpu.memory_space<vmem>>, %arg7: memref<1x16x8xf32, #tpu.memory_space<vmem>>, %arg8: memref<64x36xf32, #tpu.memory_space<vmem>>, %arg9: memref<5x5x32xf32, #tpu.memory_space<vmem>>, %arg10: memref<16x72xf32, #tpu.memory_space<vmem>>) attributes {dimension_semantics = [#tpu.dimension_semantics<parallel>], iteration_bounds = array<i64: 2>, scalar_prefetch = 0 : i64, scratch_operands = 3 : i64, tpu.core_type = #tpu.core_type<tc>, window_params = [{transform_indices = @transform_0, window_bounds = array<i64: 1, 5, 5, 64>}, {pipeline_mode = #tpu.pipeline_mode<synchronous>, transform_indices = @transform_1, window_bounds = array<i64: 36, 8>}, {pipeline_mode = #tpu.pipeline_mode<synchronous>, transform_indices = @transform_2, window_bounds = array<i64: 1, 8>}, {pipeline_mode = #tpu.pipeline_mode<synchronous>, transform_indices = @transform_3, window_bounds = array<i64: 72, 8>}, {pipeline_mode = #tpu.pipeline_mode<synchronous>, transform_indices = @transform_4, window_bounds = array<i64: 1, 8>}, {transform_indices = @transform_5, window_bounds = array<i64: 1, 64, 8>}, {transform_indices = @transform_6, window_bounds = array<i64: 1, 16, 8>}]} {
    %c0 = arith.constant 0 : index
    %c0_0 = arith.constant 0 : index
    %c0_1 = arith.constant 0 : index
    %c0_2 = arith.constant 0 : index
    %0 = vector.load %arg1[%c0, %c0_0, %c0_1, %c0_2] : memref<1x5x5x64xf32, #tpu.memory_space<vmem>>, vector<1x1x4x4xf32>
    %1 = vector.shape_cast %0 : vector<1x1x4x4xf32> to vector<4x4xf32>
    %c0_3 = arith.constant 0 : index
    %c0_4 = arith.constant 0 : index
    %2 = vector.load %arg8[%c0_3, %c0_4] : memref<64x36xf32, #tpu.memory_space<vmem>>, vector<4x4xf32>
    tpu.vector_store %arg8[%c0_3, %c0_4], %1 {strides = array<i32>} : memref<64x36xf32, #tpu.memory_space<vmem>>, vector<4x4xf32>,
    %c0_5 = arith.constant 0 : index
    %c1 = arith.constant 1 : index
    %c0_6 = arith.constant 0 : index
    %c0_7 = arith.constant 0 : index
    %3 = vector.load %arg1[%c0_5, %c1, %c0_6, %c0_7] : memref<1x5x5x64xf32, #tpu.memory_space<vmem>>, vector<1x1x4x4xf32>
    %4 = vector.shape_cast %3 : vector<1x1x4x4xf32> to vector<4x4xf32>
    %c4 = arith.constant 4 : index
    %c0_8 = arith.constant 0 : index
    %5 = vector.load %arg8[%c4, %c0_8] : memref<64x36xf32, #tpu.memory_space<vmem>>, vector<4x4xf32>
    tpu.vector_store %arg8[%c4, %c0_8], %4 {strides = array<i32>} : memref<64x36xf32, #tpu.memory_space<vmem>>, vector<4x4xf32>,
    %c0_9 = arith.constant 0 : index
    %c2 = arith.constant 2 : index
    %c0_10 = arith.constant 0 : index
    %c0_11 = arith.constant 0 : index
    %6 = vector.load %arg1[%c0_9, %c2, %c0_10, %c0_11] : memref<1x5x5x64xf32, #tpu.memory_space<vmem>>, vector<1x1x4x4xf32>
    %7 = vector.shape_cast %6 : vector<1x1x4x4xf32> to vector<4x4xf32>
    %c8 = arith.constant 8 : index
    %c0_12 = arith.constant 0 : index
    %8 = vector.load %arg8[%c8, %c0_12] : memref<64x36xf32, #tpu.memory_space<vmem>>, vector<4x4xf32>
    tpu.vector_store %arg8[%c8, %c0_12], %7 {strides = array<i32>} : memref<64x36xf32, #tpu.memory_space<vmem>>, vector<4x4xf32>,
    %c0_13 = arith.constant 0 : index
    %c3 = arith.constant 3 : index
    %c0_14 = arith.constant 0 : index
    %c0_15 = arith.constant 0 : index
    %9 = vector.load %arg1[%c0_13, %c3, %c0_14, %c0_15] : memref<1x5x5x64xf32, #tpu.memory_space<vmem>>, vector<1x1x4x4xf32>
    %10 = vector.shape_cast %9 : vector<1x1x4x4xf32> to vector<4x4xf32>
    %c12 = arith.constant 12 : index
    %c0_16 = arith.constant 0 : index
    %11 = vector.load %arg8[%c12, %c0_16] : memref<64x36xf32, #tpu.memory_space<vmem>>, vector<4x4xf32>
    tpu.vector_store %arg8[%c12, %c0_16], %10 {strides = array<i32>} : memref<64x36xf32, #tpu.memory_space<vmem>>, vector<4x4xf32>,
    %c0_17 = arith.constant 0 : index
    %c0_18 = arith.constant 0 : index
    %c0_19 = arith.constant 0 : index
    %c4_20 = arith.constant 4 : index
    %12 = vector.load %arg1[%c0_17, %c0_18, %c0_19, %c4_20] : memref<1x5x5x64xf32, #tpu.memory_space<vmem>>, vector<1x1x4x4xf32>
    %13 = vector.shape_cast %12 : vector<1x1x4x4xf32> to vector<4x4xf32>
    %c0_21 = arith.constant 0 : index
    %c4_22 = arith.constant 4 : index
    %14 = vector.load %arg8[%c0_21, %c4_22] : memref<64x36xf32, #tpu.memory_space<vmem>>, vector<4x4xf32>
    tpu.vector_store %arg8[%c0_21, %c4_22], %13 {strides = array<i32>} : memref<64x36xf32, #tpu.memory_space<vmem>>, vector<4x4xf32>,
    %c0_23 = arith.constant 0 : index
    %c1_24 = arith.constant 1 : index
    %c0_25 = arith.constant 0 : index
    %c4_26 = arith.constant 4 : index
    %15 = vector.load %arg1[%c0_23, %c1_24, %c0_25, %c4_26] : memref<1x5x5x64xf32, #tpu.memory_space<vmem>>, vector<1x1x4x4xf32>
    %16 = vector.shape_cast %15 : vector<1x1x4x4xf32> to vector<4x4xf32>
    %c4_27 = arith.constant 4 : index
    %c4_28 = arith.constant 4 : index
    %17 = vector.load %arg8[%c4_27, %c4_28] : memref<64x36xf32, #tpu.memory_space<vmem>>, vector<4x4xf32>
    tpu.vector_store %arg8[%c4_27, %c4_28], %16 {strides = array<i32>} : memref<64x36xf32, #tpu.memory_space<vmem>>, vector<4x4xf32>,
    %c0_29 = arith.constant 0 : index
    %c2_30 = arith.constant 2 : index
    %c0_31 = arith.constant 0 : index
    %c4_32 = arith.constant 4 : index
    %18 = vector.load %arg1[%c0_29, %c2_30, %c0_31, %c4_32] : memref<1x5x5x64xf32, #tpu.memory_space<vmem>>, vector<1x1x4x4xf32>
    %19 = vector.shape_cast %18 : vector<1x1x4x4xf32> to vector<4x4xf32>
    %c8_33 = arith.constant 8 : index
    %c4_34 = arith.constant 4 : index
    %20 = vector.load %arg8[%c8_33, %c4_34] : memref<64x36xf32, #tpu.memory_space<vmem>>, vector<4x4xf32>
    tpu.vector_store %arg8[%c8_33, %c4_34], %19 {strides = array<i32>} : memref<64x36xf32, #tpu.memory_space<vmem>>, vector<4x4xf32>,
    %c0_35 = arith.constant 0 : index
    %c3_36 = arith.constant 3 : index
    %c0_37 = arith.constant 0 : index
    %c4_38 = arith.constant 4 : index
    %21 = vector.load %arg1[%c0_35, %c3_36, %c0_37, %c4_38] : memref<1x5x5x64xf32, #tpu.memory_space<vmem>>, vector<1x1x4x4xf32>
    %22 = vector.shape_cast %21 : vector<1x1x4x4xf32> to vector<4x4xf32>
    %c12_39 = arith.constant 12 : index
    %c4_40 = arith.constant 4 : index
    %23 = vector.load %arg8[%c12_39, %c4_40] : memref<64x36xf32, #tpu.memory_space<vmem>>, vector<4x4xf32>
    tpu.vector_store %arg8[%c12_39, %c4_40], %22 {strides = array<i32>} : memref<64x36xf32, #tpu.memory_space<vmem>>, vector<4x4xf32>,
    %c0_41 = arith.constant 0 : index
    %c0_42 = arith.constant 0 : index
    %c0_43 = arith.constant 0 : index
    %c8_44 = arith.constant 8 : index
    %24 = vector.load %arg1[%c0_41, %c0_42, %c0_43, %c8_44] : memref<1x5x5x64xf32, #tpu.memory_space<vmem>>, vector<1x1x4x4xf32>
    %25 = vector.shape_cast %24 : vector<1x1x4x4xf32> to vector<4x4xf32>
    %c0_45 = arith.constant 0 : index
    %c8_46 = arith.constant 8 : index
    %26 = vector.load %arg8[%c0_45, %c8_46] : memref<64x36xf32, #tpu.memory_space<vmem>>, vector<4x4xf32>
    tpu.vector_store %arg8[%c0_45, %c8_46], %25 {strides = array<i32>} : memref<64x36xf32, #tpu.memory_space<vmem>>, vector<4x4xf32>,
    %c0_47 = arith.constant 0 : index
    %c1_48 = arith.constant 1 : index
    %c0_49 = arith.constant 0 : index
    %c8_50 = arith.constant 8 : index
    %27 = vector.load %arg1[%c0_47, %c1_48, %c0_49, %c8_50] : memref<1x5x5x64xf32, #tpu.memory_space<vmem>>, vector<1x1x4x4xf32>
    %28 = vector.shape_cast %27 : vector<1x1x4x4xf32> to vector<4x4xf32>
    %c4_51 = arith.constant 4 : index
    %c8_52 = arith.constant 8 : index
    %29 = vector.load %arg8[%c4_51, %c8_52] : memref<64x36xf32, #tpu.memory_space<vmem>>, vector<4x4xf32>
    tpu.vector_store %arg8[%c4_51, %c8_52], %28 {strides = array<i32>} : memref<64x36xf32, #tpu.memory_space<vmem>>, vector<4x4xf32>,
    %c0_53 = arith.constant 0 : index
    %c2_54 = arith.constant 2 : index
    %c0_55 = arith.constant 0 : index
    %c8_56 = arith.constant 8 : index
    %30 = vector.load %arg1[%c0_53, %c2_54, %c0_55, %c8_56] : memref<1x5x5x64xf32, #tpu.memory_space<vmem>>, vector<1x1x4x4xf32>
    %31 = vector.shape_cast %30 : vector<1x1x4x4xf32> to vector<4x4xf32>
    %c8_57 = arith.constant 8 : index
    %c8_58 = arith.constant 8 : index
    %32 = vector.load %arg8[%c8_57, %c8_58] : memref<64x36xf32, #tpu.memory_space<vmem>>, vector<4x4xf32>
    tpu.vector_store %arg8[%c8_57, %c8_58], %31 {strides = array<i32>} : memref<64x36xf32, #tpu.memory_space<vmem>>, vector<4x4xf32>,
    %c0_59 = arith.constant 0 : index
    %c3_60 = arith.constant 3 : index
    %c0_61 = arith.constant 0 : index
    %c8_62 = arith.constant 8 : index
    %33 = vector.load %arg1[%c0_59, %c3_60, %c0_61, %c8_62] : memref<1x5x5x64xf32, #tpu.memory_space<vmem>>, vector<1x1x4x4xf32>
    %34 = vector.shape_cast %33 : vector<1x1x4x4xf32> to vector<4x4xf32>
    %c12_63 = arith.constant 12 : index
    %c8_64 = arith.constant 8 : index
    %35 = vector.load %arg8[%c12_63, %c8_64] : memref<64x36xf32, #tpu.memory_space<vmem>>, vector<4x4xf32>
    tpu.vector_store %arg8[%c12_63, %c8_64], %34 {strides = array<i32>} : memref<64x36xf32, #tpu.memory_space<vmem>>, vector<4x4xf32>,
    %c0_65 = arith.constant 0 : index
    %c0_66 = arith.constant 0 : index
    %c0_67 = arith.constant 0 : index
    %c16 = arith.constant 16 : index
    %36 = vector.load %arg1[%c0_65, %c0_66, %c0_67, %c16] : memref<1x5x5x64xf32, #tpu.memory_space<vmem>>, vector<1x1x4x4xf32>
    %37 = vector.shape_cast %36 : vector<1x1x4x4xf32> to vector<4x4xf32>
    %c0_68 = arith.constant 0 : index
    %c12_69 = arith.constant 12 : index
    %38 = vector.load %arg8[%c0_68, %c12_69] : memref<64x36xf32, #tpu.memory_space<vmem>>, vector<4x4xf32>
    tpu.vector_store %arg8[%c0_68, %c12_69], %37 {strides = array<i32>} : memref<64x36xf32, #tpu.memory_space<vmem>>, vector<4x4xf32>,
    %c0_70 = arith.constant 0 : index
    %c1_71 = arith.constant 1 : index
    %c0_72 = arith.constant 0 : index
    %c16_73 = arith.constant 16 : index
    %39 = vector.load %arg1[%c0_70, %c1_71, %c0_72, %c16_73] : memref<1x5x5x64xf32, #tpu.memory_space<vmem>>, vector<1x1x4x4xf32>
    %40 = vector.shape_cast %39 : vector<1x1x4x4xf32> to vector<4x4xf32>
    %c4_74 = arith.constant 4 : index
    %c12_75 = arith.constant 12 : index
    %41 = vector.load %arg8[%c4_74, %c12_75] : memref<64x36xf32, #tpu.memory_space<vmem>>, vector<4x4xf32>
    tpu.vector_store %arg8[%c4_74, %c12_75], %40 {strides = array<i32>} : memref<64x36xf32, #tpu.memory_space<vmem>>, vector<4x4xf32>,
    %c0_76 = arith.constant 0 : index
    %c2_77 = arith.constant 2 : index
    %c0_78 = arith.constant 0 : index
    %c16_79 = arith.constant 16 : index
    %42 = vector.load %arg1[%c0_76, %c2_77, %c0_78, %c16_79] : memref<1x5x5x64xf32, #tpu.memory_space<vmem>>, vector<1x1x4x4xf32>
    %43 = vector.shape_cast %42 : vector<1x1x4x4xf32> to vector<4x4xf32>
    %c8_80 = arith.constant 8 : index
    %c12_81 = arith.constant 12 : index
    %44 = vector.load %arg8[%c8_80, %c12_81] : memref<64x36xf32, #tpu.memory_space<vmem>>, vector<4x4xf32>
    tpu.vector_store %arg8[%c8_80, %c12_81], %43 {strides = array<i32>} : memref<64x36xf32, #tpu.memory_space<vmem>>, vector<4x4xf32>,
    %c0_82 = arith.constant 0 : index
    %c3_83 = arith.constant 3 : index
    %c0_84 = arith.constant 0 : index
    %c16_85 = arith.constant 16 : index
    %45 = vector.load %arg1[%c0_82, %c3_83, %c0_84, %c16_85] : memref<1x5x5x64xf32, #tpu.memory_space<vmem>>, vector<1x1x4x4xf32>
    %46 = vector.shape_cast %45 : vector<1x1x4x4xf32> to vector<4x4xf32>
    %c12_86 = arith.constant 12 : index
    %c12_87 = arith.constant 12 : index
    %47 = vector.load %arg8[%c12_86, %c12_87] : memref<64x36xf32, #tpu.memory_space<vmem>>, vector<4x4xf32>
    tpu.vector_store %arg8[%c12_86, %c12_87], %46 {strides = array<i32>} : memref<64x36xf32, #tpu.memory_space<vmem>>, vector<4x4xf32>,
    %c0_88 = arith.constant 0 : index
    %c0_89 = arith.constant 0 : index
    %c0_90 = arith.constant 0 : index
    %c20 = arith.constant 20 : index
    %48 = vector.load %arg1[%c0_88, %c0_89, %c0_90, %c20] : memref<1x5x5x64xf32, #tpu.memory_space<vmem>>, vector<1x1x4x4xf32>
    %49 = vector.shape_cast %48 : vector<1x1x4x4xf32> to vector<4x4xf32>
    %c0_91 = arith.constant 0 : index
    %c16_92 = arith.constant 16 : index
    %50 = vector.load %arg8[%c0_91, %c16_92] : memref<64x36xf32, #tpu.memory_space<vmem>>, vector<4x4xf32>
    tpu.vector_store %arg8[%c0_91, %c16_92], %49 {strides = array<i32>} : memref<64x36xf32, #tpu.memory_space<vmem>>, vector<4x4xf32>,
    %c0_93 = arith.constant 0 : index
    %c1_94 = arith.constant 1 : index
    %c0_95 = arith.constant 0 : index
    %c20_96 = arith.constant 20 : index
    %51 = vector.load %arg1[%c0_93, %c1_94, %c0_95, %c20_96] : memref<1x5x5x64xf32, #tpu.memory_space<vmem>>, vector<1x1x4x4xf32>
    %52 = vector.shape_cast %51 : vector<1x1x4x4xf32> to vector<4x4xf32>
    %c4_97 = arith.constant 4 : index
    %c16_98 = arith.constant 16 : index
    %53 = vector.load %arg8[%c4_97, %c16_98] : memref<64x36xf32, #tpu.memory_space<vmem>>, vector<4x4xf32>
    tpu.vector_store %arg8[%c4_97, %c16_98], %52 {strides = array<i32>} : memref<64x36xf32, #tpu.memory_space<vmem>>, vector<4x4xf32>,
    %c0_99 = arith.constant 0 : index
    %c2_100 = arith.constant 2 : index
    %c0_101 = arith.constant 0 : index
    %c20_102 = arith.constant 20 : index
    %54 = vector.load %arg1[%c0_99, %c2_100, %c0_101, %c20_102] : memref<1x5x5x64xf32, #tpu.memory_space<vmem>>, vector<1x1x4x4xf32>
    %55 = vector.shape_cast %54 : vector<1x1x4x4xf32> to vector<4x4xf32>
    %c8_103 = arith.constant 8 : index
    %c16_104 = arith.constant 16 : index
    %56 = vector.load %arg8[%c8_103, %c16_104] : memref<64x36xf32, #tpu.memory_space<vmem>>, vector<4x4xf32>
    tpu.vector_store %arg8[%c8_103, %c16_104], %55 {strides = array<i32>} : memref<64x36xf32, #tpu.memory_space<vmem>>, vector<4x4xf32>,
    %c0_105 = arith.constant 0 : index
    %c3_106 = arith.constant 3 : index
    %c0_107 = arith.constant 0 : index
    %c20_108 = arith.constant 20 : index
    %57 = vector.load %arg1[%c0_105, %c3_106, %c0_107, %c20_108] : memref<1x5x5x64xf32, #tpu.memory_space<vmem>>, vector<1x1x4x4xf32>
    %58 = vector.shape_cast %57 : vector<1x1x4x4xf32> to vector<4x4xf32>
    %c12_109 = arith.constant 12 : index
    %c16_110 = arith.constant 16 : index
    %59 = vector.load %arg8[%c12_109, %c16_110] : memref<64x36xf32, #tpu.memory_space<vmem>>, vector<4x4xf32>
    tpu.vector_store %arg8[%c12_109, %c16_110], %58 {strides = array<i32>} : memref<64x36xf32, #tpu.memory_space<vmem>>, vector<4x4xf32>,
    %c0_111 = arith.constant 0 : index
    %c0_112 = arith.constant 0 : index
    %c0_113 = arith.constant 0 : index
    %c24 = arith.constant 24 : index
    %60 = vector.load %arg1[%c0_111, %c0_112, %c0_113, %c24] : memref<1x5x5x64xf32, #tpu.memory_space<vmem>>, vector<1x1x4x4xf32>
    %61 = vector.shape_cast %60 : vector<1x1x4x4xf32> to vector<4x4xf32>
    %c0_114 = arith.constant 0 : index
    %c20_115 = arith.constant 20 : index
    %62 = vector.load %arg8[%c0_114, %c20_115] : memref<64x36xf32, #tpu.memory_space<vmem>>, vector<4x4xf32>
    tpu.vector_store %arg8[%c0_114, %c20_115], %61 {strides = array<i32>} : memref<64x36xf32, #tpu.memory_space<vmem>>, vector<4x4xf32>,
    %c0_116 = arith.constant 0 : index
    %c1_117 = arith.constant 1 : index
    %c0_118 = arith.constant 0 : index
    %c24_119 = arith.constant 24 : index
    %63 = vector.load %arg1[%c0_116, %c1_117, %c0_118, %c24_119] : memref<1x5x5x64xf32, #tpu.memory_space<vmem>>, vector<1x1x4x4xf32>
    %64 = vector.shape_cast %63 : vector<1x1x4x4xf32> to vector<4x4xf32>
    %c4_120 = arith.constant 4 : index
    %c20_121 = arith.constant 20 : index
    %65 = vector.load %arg8[%c4_120, %c20_121] : memref<64x36xf32, #tpu.memory_space<vmem>>, vector<4x4xf32>
    tpu.vector_store %arg8[%c4_120, %c20_121], %64 {strides = array<i32>} : memref<64x36xf32, #tpu.memory_space<vmem>>, vector<4x4xf32>,
    %c0_122 = arith.constant 0 : index
    %c2_123 = arith.constant 2 : index
    %c0_124 = arith.constant 0 : index
    %c24_125 = arith.constant 24 : index
    %66 = vector.load %arg1[%c0_122, %c2_123, %c0_124, %c24_125] : memref<1x5x5x64xf32, #tpu.memory_space<vmem>>, vector<1x1x4x4xf32>
    %67 = vector.shape_cast %66 : vector<1x1x4x4xf32> to vector<4x4xf32>
    %c8_126 = arith.constant 8 : index
    %c20_127 = arith.constant 20 : index
    %68 = vector.load %arg8[%c8_126, %c20_127] : memref<64x36xf32, #tpu.memory_space<vmem>>, vector<4x4xf32>
    tpu.vector_store %arg8[%c8_126, %c20_127], %67 {strides = array<i32>} : memref<64x36xf32, #tpu.memory_space<vmem>>, vector<4x4xf32>,
    %c0_128 = arith.constant 0 : index
    %c3_129 = arith.constant 3 : index
    %c0_130 = arith.constant 0 : index
    %c24_131 = arith.constant 24 : index
    %69 = vector.load %arg1[%c0_128, %c3_129, %c0_130, %c24_131] : memref<1x5x5x64xf32, #tpu.memory_space<vmem>>, vector<1x1x4x4xf32>
    %70 = vector.shape_cast %69 : vector<1x1x4x4xf32> to vector<4x4xf32>
    %c12_132 = arith.constant 12 : index
    %c20_133 = arith.constant 20 : index
    %71 = vector.load %arg8[%c12_132, %c20_133] : memref<64x36xf32, #tpu.memory_space<vmem>>, vector<4x4xf32>
    tpu.vector_store %arg8[%c12_132, %c20_133], %70 {strides = array<i32>} : memref<64x36xf32, #tpu.memory_space<vmem>>, vector<4x4xf32>,
    %c0_134 = arith.constant 0 : index
    %c0_135 = arith.constant 0 : index
    %c0_136 = arith.constant 0 : index
    %c32 = arith.constant 32 : index
    %72 = vector.load %arg1[%c0_134, %c0_135, %c0_136, %c32] : memref<1x5x5x64xf32, #tpu.memory_space<vmem>>, vector<1x1x4x4xf32>
    %73 = vector.shape_cast %72 : vector<1x1x4x4xf32> to vector<4x4xf32>
    %c0_137 = arith.constant 0 : index
    %c24_138 = arith.constant 24 : index
    %74 = vector.load %arg8[%c0_137, %c24_138] : memref<64x36xf32, #tpu.memory_space<vmem>>, vector<4x4xf32>
    tpu.vector_store %arg8[%c0_137, %c24_138], %73 {strides = array<i32>} : memref<64x36xf32, #tpu.memory_space<vmem>>, vector<4x4xf32>,
    %c0_139 = arith.constant 0 : index
    %c1_140 = arith.constant 1 : index
    %c0_141 = arith.constant 0 : index
    %c32_142 = arith.constant 32 : index
    %75 = vector.load %arg1[%c0_139, %c1_140, %c0_141, %c32_142] : memref<1x5x5x64xf32, #tpu.memory_space<vmem>>, vector<1x1x4x4xf32>
    %76 = vector.shape_cast %75 : vector<1x1x4x4xf32> to vector<4x4xf32>
    %c4_143 = arith.constant 4 : index
    %c24_144 = arith.constant 24 : index
    %77 = vector.load %arg8[%c4_143, %c24_144] : memref<64x36xf32, #tpu.memory_space<vmem>>, vector<4x4xf32>
    tpu.vector_store %arg8[%c4_143, %c24_144], %76 {strides = array<i32>} : memref<64x36xf32, #tpu.memory_space<vmem>>, vector<4x4xf32>,
    %c0_145 = arith.constant 0 : index
    %c2_146 = arith.constant 2 : index
    %c0_147 = arith.constant 0 : index
    %c32_148 = arith.constant 32 : index
    %78 = vector.load %arg1[%c0_145, %c2_146, %c0_147, %c32_148] : memref<1x5x5x64xf32, #tpu.memory_space<vmem>>, vector<1x1x4x4xf32>
    %79 = vector.shape_cast %78 : vector<1x1x4x4xf32> to vector<4x4xf32>
    %c8_149 = arith.constant 8 : index
    %c24_150 = arith.constant 24 : index
    %80 = vector.load %arg8[%c8_149, %c24_150] : memref<64x36xf32, #tpu.memory_space<vmem>>, vector<4x4xf32>
    tpu.vector_store %arg8[%c8_149, %c24_150], %79 {strides = array<i32>} : memref<64x36xf32, #tpu.memory_space<vmem>>, vector<4x4xf32>,
    %c0_151 = arith.constant 0 : index
    %c3_152 = arith.constant 3 : index
    %c0_153 = arith.constant 0 : index
    %c32_154 = arith.constant 32 : index
    %81 = vector.load %arg1[%c0_151, %c3_152, %c0_153, %c32_154] : memref<1x5x5x64xf32, #tpu.memory_space<vmem>>, vector<1x1x4x4xf32>
    %82 = vector.shape_cast %81 : vector<1x1x4x4xf32> to vector<4x4xf32>
    %c12_155 = arith.constant 12 : index
    %c24_156 = arith.constant 24 : index
    %83 = vector.load %arg8[%c12_155, %c24_156] : memref<64x36xf32, #tpu.memory_space<vmem>>, vector<4x4xf32>
    tpu.vector_store %arg8[%c12_155, %c24_156], %82 {strides = array<i32>} : memref<64x36xf32, #tpu.memory_space<vmem>>, vector<4x4xf32>,
    %c0_157 = arith.constant 0 : index
    %c0_158 = arith.constant 0 : index
    %c0_159 = arith.constant 0 : index
    %c36 = arith.constant 36 : index
    %84 = vector.load %arg1[%c0_157, %c0_158, %c0_159, %c36] : memref<1x5x5x64xf32, #tpu.memory_space<vmem>>, vector<1x1x4x4xf32>
    %85 = vector.shape_cast %84 : vector<1x1x4x4xf32> to vector<4x4xf32>
    %c0_160 = arith.constant 0 : index
    %c28 = arith.constant 28 : index
    %86 = vector.load %arg8[%c0_160, %c28] : memref<64x36xf32, #tpu.memory_space<vmem>>, vector<4x4xf32>
    tpu.vector_store %arg8[%c0_160, %c28], %85 {strides = array<i32>} : memref<64x36xf32, #tpu.memory_space<vmem>>, vector<4x4xf32>,
    %c0_161 = arith.constant 0 : index
    %c1_162 = arith.constant 1 : index
    %c0_163 = arith.constant 0 : index
    %c36_164 = arith.constant 36 : index
    %87 = vector.load %arg1[%c0_161, %c1_162, %c0_163, %c36_164] : memref<1x5x5x64xf32, #tpu.memory_space<vmem>>, vector<1x1x4x4xf32>
    %88 = vector.shape_cast %87 : vector<1x1x4x4xf32> to vector<4x4xf32>
    %c4_165 = arith.constant 4 : index
    %c28_166 = arith.constant 28 : index
    %89 = vector.load %arg8[%c4_165, %c28_166] : memref<64x36xf32, #tpu.memory_space<vmem>>, vector<4x4xf32>
    tpu.vector_store %arg8[%c4_165, %c28_166], %88 {strides = array<i32>} : memref<64x36xf32, #tpu.memory_space<vmem>>, vector<4x4xf32>,
    %c0_167 = arith.constant 0 : index
    %c2_168 = arith.constant 2 : index
    %c0_169 = arith.constant 0 : index
    %c36_170 = arith.constant 36 : index
    %90 = vector.load %arg1[%c0_167, %c2_168, %c0_169, %c36_170] : memref<1x5x5x64xf32, #tpu.memory_space<vmem>>, vector<1x1x4x4xf32>
    %91 = vector.shape_cast %90 : vector<1x1x4x4xf32> to vector<4x4xf32>
    %c8_171 = arith.constant 8 : index
    %c28_172 = arith.constant 28 : index
    %92 = vector.load %arg8[%c8_171, %c28_172] : memref<64x36xf32, #tpu.memory_space<vmem>>, vector<4x4xf32>
    tpu.vector_store %arg8[%c8_171, %c28_172], %91 {strides = array<i32>} : memref<64x36xf32, #tpu.memory_space<vmem>>, vector<4x4xf32>,
    %c0_173 = arith.constant 0 : index
    %c3_174 = arith.constant 3 : index
    %c0_175 = arith.constant 0 : index
    %c36_176 = arith.constant 36 : index
    %93 = vector.load %arg1[%c0_173, %c3_174, %c0_175, %c36_176] : memref<1x5x5x64xf32, #tpu.memory_space<vmem>>, vector<1x1x4x4xf32>
    %94 = vector.shape_cast %93 : vector<1x1x4x4xf32> to vector<4x4xf32>
    %c12_177 = arith.constant 12 : index
    %c28_178 = arith.constant 28 : index
    %95 = vector.load %arg8[%c12_177, %c28_178] : memref<64x36xf32, #tpu.memory_space<vmem>>, vector<4x4xf32>
    tpu.vector_store %arg8[%c12_177, %c28_178], %94 {strides = array<i32>} : memref<64x36xf32, #tpu.memory_space<vmem>>, vector<4x4xf32>,
    %c0_179 = arith.constant 0 : index
    %c0_180 = arith.constant 0 : index
    %c0_181 = arith.constant 0 : index
    %c40 = arith.constant 40 : index
    %96 = vector.load %arg1[%c0_179, %c0_180, %c0_181, %c40] : memref<1x5x5x64xf32, #tpu.memory_space<vmem>>, vector<1x1x4x4xf32>
    %97 = vector.shape_cast %96 : vector<1x1x4x4xf32> to vector<4x4xf32>
    %c0_182 = arith.constant 0 : index
    %c32_183 = arith.constant 32 : index
    %98 = vector.load %arg8[%c0_182, %c32_183] : memref<64x36xf32, #tpu.memory_space<vmem>>, vector<4x4xf32>
    tpu.vector_store %arg8[%c0_182, %c32_183], %97 {strides = array<i32>} : memref<64x36xf32, #tpu.memory_space<vmem>>, vector<4x4xf32>,
    %c0_184 = arith.constant 0 : index
    %c1_185 = arith.constant 1 : index
    %c0_186 = arith.constant 0 : index
    %c40_187 = arith.constant 40 : index
    %99 = vector.load %arg1[%c0_184, %c1_185, %c0_186, %c40_187] : memref<1x5x5x64xf32, #tpu.memory_space<vmem>>, vector<1x1x4x4xf32>
    %100 = vector.shape_cast %99 : vector<1x1x4x4xf32> to vector<4x4xf32>
    %c4_188 = arith.constant 4 : index
    %c32_189 = arith.constant 32 : index
    %101 = vector.load %arg8[%c4_188, %c32_189] : memref<64x36xf32, #tpu.memory_space<vmem>>, vector<4x4xf32>
    tpu.vector_store %arg8[%c4_188, %c32_189], %100 {strides = array<i32>} : memref<64x36xf32, #tpu.memory_space<vmem>>, vector<4x4xf32>,
    %c0_190 = arith.constant 0 : index
    %c2_191 = arith.constant 2 : index
    %c0_192 = arith.constant 0 : index
    %c40_193 = arith.constant 40 : index
    %102 = vector.load %arg1[%c0_190, %c2_191, %c0_192, %c40_193] : memref<1x5x5x64xf32, #tpu.memory_space<vmem>>, vector<1x1x4x4xf32>
    %103 = vector.shape_cast %102 : vector<1x1x4x4xf32> to vector<4x4xf32>
    %c8_194 = arith.constant 8 : index
    %c32_195 = arith.constant 32 : index
    %104 = vector.load %arg8[%c8_194, %c32_195] : memref<64x36xf32, #tpu.memory_space<vmem>>, vector<4x4xf32>
    tpu.vector_store %arg8[%c8_194, %c32_195], %103 {strides = array<i32>} : memref<64x36xf32, #tpu.memory_space<vmem>>, vector<4x4xf32>,
    %c0_196 = arith.constant 0 : index
    %c3_197 = arith.constant 3 : index
    %c0_198 = arith.constant 0 : index
    %c40_199 = arith.constant 40 : index
    %105 = vector.load %arg1[%c0_196, %c3_197, %c0_198, %c40_199] : memref<1x5x5x64xf32, #tpu.memory_space<vmem>>, vector<1x1x4x4xf32>
    %106 = vector.shape_cast %105 : vector<1x1x4x4xf32> to vector<4x4xf32>
    %c12_200 = arith.constant 12 : index
    %c32_201 = arith.constant 32 : index
    %107 = vector.load %arg8[%c12_200, %c32_201] : memref<64x36xf32, #tpu.memory_space<vmem>>, vector<4x4xf32>
    tpu.vector_store %arg8[%c12_200, %c32_201], %106 {strides = array<i32>} : memref<64x36xf32, #tpu.memory_space<vmem>>, vector<4x4xf32>,
    %c0_202 = arith.constant 0 : index
    %c0_203 = arith.constant 0 : index
    %c0_204 = arith.constant 0 : index
    %c8_205 = arith.constant 8 : index
    %108 = vector.load %arg1[%c0_202, %c0_203, %c0_204, %c8_205] : memref<1x5x5x64xf32, #tpu.memory_space<vmem>>, vector<1x1x4x4xf32>
    %109 = vector.shape_cast %108 : vector<1x1x4x4xf32> to vector<4x4xf32>
    %c16_206 = arith.constant 16 : index
    %c0_207 = arith.constant 0 : index
    %110 = vector.load %arg8[%c16_206, %c0_207] : memref<64x36xf32, #tpu.memory_space<vmem>>, vector<4x4xf32>
    tpu.vector_store %arg8[%c16_206, %c0_207], %109 {strides = array<i32>} : memref<64x36xf32, #tpu.memory_space<vmem>>, vector<4x4xf32>,
    %c0_208 = arith.constant 0 : index
    %c1_209 = arith.constant 1 : index
    %c0_210 = arith.constant 0 : index
    %c8_211 = arith.constant 8 : index
    %111 = vector.load %arg1[%c0_208, %c1_209, %c0_210, %c8_211] : memref<1x5x5x64xf32, #tpu.memory_space<vmem>>, vector<1x1x4x4xf32>
    %112 = vector.shape_cast %111 : vector<1x1x4x4xf32> to vector<4x4xf32>
    %c20_212 = arith.constant 20 : index
    %c0_213 = arith.constant 0 : index
    %113 = vector.load %arg8[%c20_212, %c0_213] : memref<64x36xf32, #tpu.memory_space<vmem>>, vector<4x4xf32>
    tpu.vector_store %arg8[%c20_212, %c0_213], %112 {strides = array<i32>} : memref<64x36xf32, #tpu.memory_space<vmem>>, vector<4x4xf32>,
    %c0_214 = arith.constant 0 : index
    %c2_215 = arith.constant 2 : index
    %c0_216 = arith.constant 0 : index
    %c8_217 = arith.constant 8 : index
    %114 = vector.load %arg1[%c0_214, %c2_215, %c0_216, %c8_217] : memref<1x5x5x64xf32, #tpu.memory_space<vmem>>, vector<1x1x4x4xf32>
    %115 = vector.shape_cast %114 : vector<1x1x4x4xf32> to vector<4x4xf32>
    %c24_218 = arith.constant 24 : index
    %c0_219 = arith.constant 0 : index
    %116 = vector.load %arg8[%c24_218, %c0_219] : memref<64x36xf32, #tpu.memory_space<vmem>>, vector<4x4xf32>
    tpu.vector_store %arg8[%c24_218, %c0_219], %115 {strides = array<i32>} : memref<64x36xf32, #tpu.memory_space<vmem>>, vector<4x4xf32>,
    %c0_220 = arith.constant 0 : index
    %c3_221 = arith.constant 3 : index
    %c0_222 = arith.constant 0 : index
    %c8_223 = arith.constant 8 : index
    %117 = vector.load %arg1[%c0_220, %c3_221, %c0_222, %c8_223] : memref<1x5x5x64xf32, #tpu.memory_space<vmem>>, vector<1x1x4x4xf32>
    %118 = vector.shape_cast %117 : vector<1x1x4x4xf32> to vector<4x4xf32>
    %c28_224 = arith.constant 28 : index
    %c0_225 = arith.constant 0 : index
    %119 = vector.load %arg8[%c28_224, %c0_225] : memref<64x36xf32, #tpu.memory_space<vmem>>, vector<4x4xf32>
    tpu.vector_store %arg8[%c28_224, %c0_225], %118 {strides = array<i32>} : memref<64x36xf32, #tpu.memory_space<vmem>>, vector<4x4xf32>,
    %c0_226 = arith.constant 0 : index
    %c0_227 = arith.constant 0 : index
    %c0_228 = arith.constant 0 : index
    %c12_229 = arith.constant 12 : index
    %120 = vector.load %arg1[%c0_226, %c0_227, %c0_228, %c12_229] : memref<1x5x5x64xf32, #tpu.memory_space<vmem>>, vector<1x1x4x4xf32>
    %121 = vector.shape_cast %120 : vector<1x1x4x4xf32> to vector<4x4xf32>
    %c16_230 = arith.constant 16 : index
    %c4_231 = arith.constant 4 : index
    %122 = vector.load %arg8[%c16_230, %c4_231] : memref<64x36xf32, #tpu.memory_space<vmem>>, vector<4x4xf32>
    tpu.vector_store %arg8[%c16_230, %c4_231], %121 {strides = array<i32>} : memref<64x36xf32, #tpu.memory_space<vmem>>, vector<4x4xf32>,
    %c0_232 = arith.constant 0 : index
    %c1_233 = arith.constant 1 : index
    %c0_234 = arith.constant 0 : index
    %c12_235 = arith.constant 12 : index
    %123 = vector.load %arg1[%c0_232, %c1_233, %c0_234, %c12_235] : memref<1x5x5x64xf32, #tpu.memory_space<vmem>>, vector<1x1x4x4xf32>
    %124 = vector.shape_cast %123 : vector<1x1x4x4xf32> to vector<4x4xf32>
    %c20_236 = arith.constant 20 : index
    %c4_237 = arith.constant 4 : index
    %125 = vector.load %arg8[%c20_236, %c4_237] : memref<64x36xf32, #tpu.memory_space<vmem>>, vector<4x4xf32>
    tpu.vector_store %arg8[%c20_236, %c4_237], %124 {strides = array<i32>} : memref<64x36xf32, #tpu.memory_space<vmem>>, vector<4x4xf32>,
    %c0_238 = arith.constant 0 : index
    %c2_239 = arith.constant 2 : index
    %c0_240 = arith.constant 0 : index
    %c12_241 = arith.constant 12 : index
    %126 = vector.load %arg1[%c0_238, %c2_239, %c0_240, %c12_241] : memref<1x5x5x64xf32, #tpu.memory_space<vmem>>, vector<1x1x4x4xf32>
    %127 = vector.shape_cast %126 : vector<1x1x4x4xf32> to vector<4x4xf32>
    %c24_242 = arith.constant 24 : index
    %c4_243 = arith.constant 4 : index
    %128 = vector.load %arg8[%c24_242, %c4_243] : memref<64x36xf32, #tpu.memory_space<vmem>>, vector<4x4xf32>
    tpu.vector_store %arg8[%c24_242, %c4_243], %127 {strides = array<i32>} : memref<64x36xf32, #tpu.memory_space<vmem>>, vector<4x4xf32>,
    %c0_244 = arith.constant 0 : index
    %c3_245 = arith.constant 3 : index
    %c0_246 = arith.constant 0 : index
    %c12_247 = arith.constant 12 : index
    %129 = vector.load %arg1[%c0_244, %c3_245, %c0_246, %c12_247] : memref<1x5x5x64xf32, #tpu.memory_space<vmem>>, vector<1x1x4x4xf32>
    %130 = vector.shape_cast %129 : vector<1x1x4x4xf32> to vector<4x4xf32>
    %c28_248 = arith.constant 28 : index
    %c4_249 = arith.constant 4 : index
    %131 = vector.load %arg8[%c28_248, %c4_249] : memref<64x36xf32, #tpu.memory_space<vmem>>, vector<4x4xf32>
    tpu.vector_store %arg8[%c28_248, %c4_249], %130 {strides = array<i32>} : memref<64x36xf32, #tpu.memory_space<vmem>>, vector<4x4xf32>,
    %c0_250 = arith.constant 0 : index
    %c0_251 = arith.constant 0 : index
    %c1_252 = arith.constant 1 : index
    %c0_253 = arith.constant 0 : index
    %132 = vector.load %arg1[%c0_250, %c0_251, %c1_252, %c0_253] : memref<1x5x5x64xf32, #tpu.memory_space<vmem>>, vector<1x1x4x4xf32>
    %133 = vector.shape_cast %132 : vector<1x1x4x4xf32> to vector<4x4xf32>
    %c16_254 = arith.constant 16 : index
    %c8_255 = arith.constant 8 : index
    %134 = vector.load %arg8[%c16_254, %c8_255] : memref<64x36xf32, #tpu.memory_space<vmem>>, vector<4x4xf32>
    tpu.vector_store %arg8[%c16_254, %c8_255], %133 {strides = array<i32>} : memref<64x36xf32, #tpu.memory_space<vmem>>, vector<4x4xf32>,
    %c0_256 = arith.constant 0 : index
    %c1_257 = arith.constant 1 : index
    %c1_258 = arith.constant 1 : index
    %c0_259 = arith.constant 0 : index
    %135 = vector.load %arg1[%c0_256, %c1_257, %c1_258, %c0_259] : memref<1x5x5x64xf32, #tpu.memory_space<vmem>>, vector<1x1x4x4xf32>
    %136 = vector.shape_cast %135 : vector<1x1x4x4xf32> to vector<4x4xf32>
    %c20_260 = arith.constant 20 : index
    %c8_261 = arith.constant 8 : index
    %137 = vector.load %arg8[%c20_260, %c8_261] : memref<64x36xf32, #tpu.memory_space<vmem>>, vector<4x4xf32>
    tpu.vector_store %arg8[%c20_260, %c8_261], %136 {strides = array<i32>} : memref<64x36xf32, #tpu.memory_space<vmem>>, vector<4x4xf32>,
    %c0_262 = arith.constant 0 : index
    %c2_263 = arith.constant 2 : index
    %c1_264 = arith.constant 1 : index
    %c0_265 = arith.constant 0 : index
    %138 = vector.load %arg1[%c0_262, %c2_263, %c1_264, %c0_265] : memref<1x5x5x64xf32, #tpu.memory_space<vmem>>, vector<1x1x4x4xf32>
    %139 = vector.shape_cast %138 : vector<1x1x4x4xf32> to vector<4x4xf32>
    %c24_266 = arith.constant 24 : index
    %c8_267 = arith.constant 8 : index
    %140 = vector.load %arg8[%c24_266, %c8_267] : memref<64x36xf32, #tpu.memory_space<vmem>>, vector<4x4xf32>
    tpu.vector_store %arg8[%c24_266, %c8_267], %139 {strides = array<i32>} : memref<64x36xf32, #tpu.memory_space<vmem>>, vector<4x4xf32>,
    %c0_268 = arith.constant 0 : index
    %c3_269 = arith.constant 3 : index
    %c1_270 = arith.constant 1 : index
    %c0_271 = arith.constant 0 : index
    %141 = vector.load %arg1[%c0_268, %c3_269, %c1_270, %c0_271] : memref<1x5x5x64xf32, #tpu.memory_space<vmem>>, vector<1x1x4x4xf32>
    %142 = vector.shape_cast %141 : vector<1x1x4x4xf32> to vector<4x4xf32>
    %c28_272 = arith.constant 28 : index
    %c8_273 = arith.constant 8 : index
    %143 = vector.load %arg8[%c28_272, %c8_273] : memref<64x36xf32, #tpu.memory_space<vmem>>, vector<4x4xf32>
    tpu.vector_store %arg8[%c28_272, %c8_273], %142 {strides = array<i32>} : memref<64x36xf32, #tpu.memory_space<vmem>>, vector<4x4xf32>,
    %c0_274 = arith.constant 0 : index
    %c0_275 = arith.constant 0 : index
    %c0_276 = arith.constant 0 : index
    %c24_277 = arith.constant 24 : index
    %144 = vector.load %arg1[%c0_274, %c0_275, %c0_276, %c24_277] : memref<1x5x5x64xf32, #tpu.memory_space<vmem>>, vector<1x1x4x4xf32>
    %145 = vector.shape_cast %144 : vector<1x1x4x4xf32> to vector<4x4xf32>
    %c16_278 = arith.constant 16 : index
    %c12_279 = arith.constant 12 : index
    %146 = vector.load %arg8[%c16_278, %c12_279] : memref<64x36xf32, #tpu.memory_space<vmem>>, vector<4x4xf32>
    tpu.vector_store %arg8[%c16_278, %c12_279], %145 {strides = array<i32>} : memref<64x36xf32, #tpu.memory_space<vmem>>, vector<4x4xf32>,
    %c0_280 = arith.constant 0 : index
    %c1_281 = arith.constant 1 : index
    %c0_282 = arith.constant 0 : index
    %c24_283 = arith.constant 24 : index
    %147 = vector.load %arg1[%c0_280, %c1_281, %c0_282, %c24_283] : memref<1x5x5x64xf32, #tpu.memory_space<vmem>>, vector<1x1x4x4xf32>
    %148 = vector.shape_cast %147 : vector<1x1x4x4xf32> to vector<4x4xf32>
    %c20_284 = arith.constant 20 : index
    %c12_285 = arith.constant 12 : index
    %149 = vector.load %arg8[%c20_284, %c12_285] : memref<64x36xf32, #tpu.memory_space<vmem>>, vector<4x4xf32>
    tpu.vector_store %arg8[%c20_284, %c12_285], %148 {strides = array<i32>} : memref<64x36xf32, #tpu.memory_space<vmem>>, vector<4x4xf32>,
    %c0_286 = arith.constant 0 : index
    %c2_287 = arith.constant 2 : index
    %c0_288 = arith.constant 0 : index
    %c24_289 = arith.constant 24 : index
    %150 = vector.load %arg1[%c0_286, %c2_287, %c0_288, %c24_289] : memref<1x5x5x64xf32, #tpu.memory_space<vmem>>, vector<1x1x4x4xf32>
    %151 = vector.shape_cast %150 : vector<1x1x4x4xf32> to vector<4x4xf32>
    %c24_290 = arith.constant 24 : index
    %c12_291 = arith.constant 12 : index
    %152 = vector.load %arg8[%c24_290, %c12_291] : memref<64x36xf32, #tpu.memory_space<vmem>>, vector<4x4xf32>
    tpu.vector_store %arg8[%c24_290, %c12_291], %151 {strides = array<i32>} : memref<64x36xf32, #tpu.memory_space<vmem>>, vector<4x4xf32>,
    %c0_292 = arith.constant 0 : index
    %c3_293 = arith.constant 3 : index
    %c0_294 = arith.constant 0 : index
    %c24_295 = arith.constant 24 : index
    %153 = vector.load %arg1[%c0_292, %c3_293, %c0_294, %c24_295] : memref<1x5x5x64xf32, #tpu.memory_space<vmem>>, vector<1x1x4x4xf32>
    %154 = vector.shape_cast %153 : vector<1x1x4x4xf32> to vector<4x4xf32>
    %c28_296 = arith.constant 28 : index
    %c12_297 = arith.constant 12 : index
    %155 = vector.load %arg8[%c28_296, %c12_297] : memref<64x36xf32, #tpu.memory_space<vmem>>, vector<4x4xf32>
    tpu.vector_store %arg8[%c28_296, %c12_297], %154 {strides = array<i32>} : memref<64x36xf32, #tpu.memory_space<vmem>>, vector<4x4xf32>,
    %c0_298 = arith.constant 0 : index
    %c0_299 = arith.constant 0 : index
    %c0_300 = arith.constant 0 : index
    %c28_301 = arith.constant 28 : index
    %156 = vector.load %arg1[%c0_298, %c0_299, %c0_300, %c28_301] : memref<1x5x5x64xf32, #tpu.memory_space<vmem>>, vector<1x1x4x4xf32>
    %157 = vector.shape_cast %156 : vector<1x1x4x4xf32> to vector<4x4xf32>
    %c16_302 = arith.constant 16 : index
    %c16_303 = arith.constant 16 : index
    %158 = vector.load %arg8[%c16_302, %c16_303] : memref<64x36xf32, #tpu.memory_space<vmem>>, vector<4x4xf32>
    tpu.vector_store %arg8[%c16_302, %c16_303], %157 {strides = array<i32>} : memref<64x36xf32, #tpu.memory_space<vmem>>, vector<4x4xf32>,
    %c0_304 = arith.constant 0 : index
    %c1_305 = arith.constant 1 : index
    %c0_306 = arith.constant 0 : index
    %c28_307 = arith.constant 28 : index
    %159 = vector.load %arg1[%c0_304, %c1_305, %c0_306, %c28_307] : memref<1x5x5x64xf32, #tpu.memory_space<vmem>>, vector<1x1x4x4xf32>
    %160 = vector.shape_cast %159 : vector<1x1x4x4xf32> to vector<4x4xf32>
    %c20_308 = arith.constant 20 : index
    %c16_309 = arith.constant 16 : index
    %161 = vector.load %arg8[%c20_308, %c16_309] : memref<64x36xf32, #tpu.memory_space<vmem>>, vector<4x4xf32>
    tpu.vector_store %arg8[%c20_308, %c16_309], %160 {strides = array<i32>} : memref<64x36xf32, #tpu.memory_space<vmem>>, vector<4x4xf32>,
    %c0_310 = arith.constant 0 : index
    %c2_311 = arith.constant 2 : index
    %c0_312 = arith.constant 0 : index
    %c28_313 = arith.constant 28 : index
    %162 = vector.load %arg1[%c0_310, %c2_311, %c0_312, %c28_313] : memref<1x5x5x64xf32, #tpu.memory_space<vmem>>, vector<1x1x4x4xf32>
    %163 = vector.shape_cast %162 : vector<1x1x4x4xf32> to vector<4x4xf32>
    %c24_314 = arith.constant 24 : index
    %c16_315 = arith.constant 16 : index
    %164 = vector.load %arg8[%c24_314, %c16_315] : memref<64x36xf32, #tpu.memory_space<vmem>>, vector<4x4xf32>
    tpu.vector_store %arg8[%c24_314, %c16_315], %163 {strides = array<i32>} : memref<64x36xf32, #tpu.memory_space<vmem>>, vector<4x4xf32>,
    %c0_316 = arith.constant 0 : index
    %c3_317 = arith.constant 3 : index
    %c0_318 = arith.constant 0 : index
    %c28_319 = arith.constant 28 : index
    %165 = vector.load %arg1[%c0_316, %c3_317, %c0_318, %c28_319] : memref<1x5x5x64xf32, #tpu.memory_space<vmem>>, vector<1x1x4x4xf32>
    %166 = vector.shape_cast %165 : vector<1x1x4x4xf32> to vector<4x4xf32>
    %c28_320 = arith.constant 28 : index
    %c16_321 = arith.constant 16 : index
    %167 = vector.load %arg8[%c28_320, %c16_321] : memref<64x36xf32, #tpu.memory_space<vmem>>, vector<4x4xf32>
    tpu.vector_store %arg8[%c28_320, %c16_321], %166 {strides = array<i32>} : memref<64x36xf32, #tpu.memory_space<vmem>>, vector<4x4xf32>,
    %c0_322 = arith.constant 0 : index
    %c0_323 = arith.constant 0 : index
    %c1_324 = arith.constant 1 : index
    %c16_325 = arith.constant 16 : index
    %168 = vector.load %arg1[%c0_322, %c0_323, %c1_324, %c16_325] : memref<1x5x5x64xf32, #tpu.memory_space<vmem>>, vector<1x1x4x4xf32>
    %169 = vector.shape_cast %168 : vector<1x1x4x4xf32> to vector<4x4xf32>
    %c16_326 = arith.constant 16 : index
    %c20_327 = arith.constant 20 : index
    %170 = vector.load %arg8[%c16_326, %c20_327] : memref<64x36xf32, #tpu.memory_space<vmem>>, vector<4x4xf32>
    tpu.vector_store %arg8[%c16_326, %c20_327], %169 {strides = array<i32>} : memref<64x36xf32, #tpu.memory_space<vmem>>, vector<4x4xf32>,
    %c0_328 = arith.constant 0 : index
    %c1_329 = arith.constant 1 : index
    %c1_330 = arith.constant 1 : index
    %c16_331 = arith.constant 16 : index
    %171 = vector.load %arg1[%c0_328, %c1_329, %c1_330, %c16_331] : memref<1x5x5x64xf32, #tpu.memory_space<vmem>>, vector<1x1x4x4xf32>
    %172 = vector.shape_cast %171 : vector<1x1x4x4xf32> to vector<4x4xf32>
    %c20_332 = arith.constant 20 : index
    %c20_333 = arith.constant 20 : index
    %173 = vector.load %arg8[%c20_332, %c20_333] : memref<64x36xf32, #tpu.memory_space<vmem>>, vector<4x4xf32>
    tpu.vector_store %arg8[%c20_332, %c20_333], %172 {strides = array<i32>} : memref<64x36xf32, #tpu.memory_space<vmem>>, vector<4x4xf32>,
    %c0_334 = arith.constant 0 : index
    %c2_335 = arith.constant 2 : index
    %c1_336 = arith.constant 1 : index
    %c16_337 = arith.constant 16 : index
    %174 = vector.load %arg1[%c0_334, %c2_335, %c1_336, %c16_337] : memref<1x5x5x64xf32, #tpu.memory_space<vmem>>, vector<1x1x4x4xf32>
    %175 = vector.shape_cast %174 : vector<1x1x4x4xf32> to vector<4x4xf32>
    %c24_338 = arith.constant 24 : index
    %c20_339 = arith.constant 20 : index
    %176 = vector.load %arg8[%c24_338, %c20_339] : memref<64x36xf32, #tpu.memory_space<vmem>>, vector<4x4xf32>
    tpu.vector_store %arg8[%c24_338, %c20_339], %175 {strides = array<i32>} : memref<64x36xf32, #tpu.memory_space<vmem>>, vector<4x4xf32>,
    %c0_340 = arith.constant 0 : index
    %c3_341 = arith.constant 3 : index
    %c1_342 = arith.constant 1 : index
    %c16_343 = arith.constant 16 : index
    %177 = vector.load %arg1[%c0_340, %c3_341, %c1_342, %c16_343] : memref<1x5x5x64xf32, #tpu.memory_space<vmem>>, vector<1x1x4x4xf32>
    %178 = vector.shape_cast %177 : vector<1x1x4x4xf32> to vector<4x4xf32>
    %c28_344 = arith.constant 28 : index
    %c20_345 = arith.constant 20 : index
    %179 = vector.load %arg8[%c28_344, %c20_345] : memref<64x36xf32, #tpu.memory_space<vmem>>, vector<4x4xf32>
    tpu.vector_store %arg8[%c28_344, %c20_345], %178 {strides = array<i32>} : memref<64x36xf32, #tpu.memory_space<vmem>>, vector<4x4xf32>,
    %c0_346 = arith.constant 0 : index
    %c0_347 = arith.constant 0 : index
    %c0_348 = arith.constant 0 : index
    %c40_349 = arith.constant 40 : index
    %180 = vector.load %arg1[%c0_346, %c0_347, %c0_348, %c40_349] : memref<1x5x5x64xf32, #tpu.memory_space<vmem>>, vector<1x1x4x4xf32>
    %181 = vector.shape_cast %180 : vector<1x1x4x4xf32> to vector<4x4xf32>
    %c16_350 = arith.constant 16 : index
    %c24_351 = arith.constant 24 : index
    %182 = vector.load %arg8[%c16_350, %c24_351] : memref<64x36xf32, #tpu.memory_space<vmem>>, vector<4x4xf32>
    tpu.vector_store %arg8[%c16_350, %c24_351], %181 {strides = array<i32>} : memref<64x36xf32, #tpu.memory_space<vmem>>, vector<4x4xf32>,
    %c0_352 = arith.constant 0 : index
    %c1_353 = arith.constant 1 : index
    %c0_354 = arith.constant 0 : index
    %c40_355 = arith.constant 40 : index
    %183 = vector.load %arg1[%c0_352, %c1_353, %c0_354, %c40_355] : memref<1x5x5x64xf32, #tpu.memory_space<vmem>>, vector<1x1x4x4xf32>
    %184 = vector.shape_cast %183 : vector<1x1x4x4xf32> to vector<4x4xf32>
    %c20_356 = arith.constant 20 : index
    %c24_357 = arith.constant 24 : index
    %185 = vector.load %arg8[%c20_356, %c24_357] : memref<64x36xf32, #tpu.memory_space<vmem>>, vector<4x4xf32>
    tpu.vector_store %arg8[%c20_356, %c24_357], %184 {strides = array<i32>} : memref<64x36xf32, #tpu.memory_space<vmem>>, vector<4x4xf32>,
    %c0_358 = arith.constant 0 : index
    %c2_359 = arith.constant 2 : index
    %c0_360 = arith.constant 0 : index
    %c40_361 = arith.constant 40 : index
    %186 = vector.load %arg1[%c0_358, %c2_359, %c0_360, %c40_361] : memref<1x5x5x64xf32, #tpu.memory_space<vmem>>, vector<1x1x4x4xf32>
    %187 = vector.shape_cast %186 : vector<1x1x4x4xf32> to vector<4x4xf32>
    %c24_362 = arith.constant 24 : index
    %c24_363 = arith.constant 24 : index
    %188 = vector.load %arg8[%c24_362, %c24_363] : memref<64x36xf32, #tpu.memory_space<vmem>>, vector<4x4xf32>
    tpu.vector_store %arg8[%c24_362, %c24_363], %187 {strides = array<i32>} : memref<64x36xf32, #tpu.memory_space<vmem>>, vector<4x4xf32>,
    %c0_364 = arith.constant 0 : index
    %c3_365 = arith.constant 3 : index
    %c0_366 = arith.constant 0 : index
    %c40_367 = arith.constant 40 : index
    %189 = vector.load %arg1[%c0_364, %c3_365, %c0_366, %c40_367] : memref<1x5x5x64xf32, #tpu.memory_space<vmem>>, vector<1x1x4x4xf32>
    %190 = vector.shape_cast %189 : vector<1x1x4x4xf32> to vector<4x4xf32>
    %c28_368 = arith.constant 28 : index
    %c24_369 = arith.constant 24 : index
    %191 = vector.load %arg8[%c28_368, %c24_369] : memref<64x36xf32, #tpu.memory_space<vmem>>, vector<4x4xf32>
    tpu.vector_store %arg8[%c28_368, %c24_369], %190 {strides = array<i32>} : memref<64x36xf32, #tpu.memory_space<vmem>>, vector<4x4xf32>,
    %c0_370 = arith.constant 0 : index
    %c0_371 = arith.constant 0 : index
    %c0_372 = arith.constant 0 : index
    %c44 = arith.constant 44 : index
    %192 = vector.load %arg1[%c0_370, %c0_371, %c0_372, %c44] : memref<1x5x5x64xf32, #tpu.memory_space<vmem>>, vector<1x1x4x4xf32>
    %193 = vector.shape_cast %192 : vector<1x1x4x4xf32> to vector<4x4xf32>
    %c16_373 = arith.constant 16 : index
    %c28_374 = arith.constant 28 : index
    %194 = vector.load %arg8[%c16_373, %c28_374] : memref<64x36xf32, #tpu.memory_space<vmem>>, vector<4x4xf32>
    tpu.vector_store %arg8[%c16_373, %c28_374], %193 {strides = array<i32>} : memref<64x36xf32, #tpu.memory_space<vmem>>, vector<4x4xf32>,
    %c0_375 = arith.constant 0 : index
    %c1_376 = arith.constant 1 : index
    %c0_377 = arith.constant 0 : index
    %c44_378 = arith.constant 44 : index
    %195 = vector.load %arg1[%c0_375, %c1_376, %c0_377, %c44_378] : memref<1x5x5x64xf32, #tpu.memory_space<vmem>>, vector<1x1x4x4xf32>
    %196 = vector.shape_cast %195 : vector<1x1x4x4xf32> to vector<4x4xf32>
    %c20_379 = arith.constant 20 : index
    %c28_380 = arith.constant 28 : index
    %197 = vector.load %arg8[%c20_379, %c28_380] : memref<64x36xf32, #tpu.memory_space<vmem>>, vector<4x4xf32>
    tpu.vector_store %arg8[%c20_379, %c28_380], %196 {strides = array<i32>} : memref<64x36xf32, #tpu.memory_space<vmem>>, vector<4x4xf32>,
    %c0_381 = arith.constant 0 : index
    %c2_382 = arith.constant 2 : index
    %c0_383 = arith.constant 0 : index
    %c44_384 = arith.constant 44 : index
    %198 = vector.load %arg1[%c0_381, %c2_382, %c0_383, %c44_384] : memref<1x5x5x64xf32, #tpu.memory_space<vmem>>, vector<1x1x4x4xf32>
    %199 = vector.shape_cast %198 : vector<1x1x4x4xf32> to vector<4x4xf32>
    %c24_385 = arith.constant 24 : index
    %c28_386 = arith.constant 28 : index
    %200 = vector.load %arg8[%c24_385, %c28_386] : memref<64x36xf32, #tpu.memory_space<vmem>>, vector<4x4xf32>
    tpu.vector_store %arg8[%c24_385, %c28_386], %199 {strides = array<i32>} : memref<64x36xf32, #tpu.memory_space<vmem>>, vector<4x4xf32>,
    %c0_387 = arith.constant 0 : index
    %c3_388 = arith.constant 3 : index
    %c0_389 = arith.constant 0 : index
    %c44_390 = arith.constant 44 : index
    %201 = vector.load %arg1[%c0_387, %c3_388, %c0_389, %c44_390] : memref<1x5x5x64xf32, #tpu.memory_space<vmem>>, vector<1x1x4x4xf32>
    %202 = vector.shape_cast %201 : vector<1x1x4x4xf32> to vector<4x4xf32>
    %c28_391 = arith.constant 28 : index
    %c28_392 = arith.constant 28 : index
    %203 = vector.load %arg8[%c28_391, %c28_392] : memref<64x36xf32, #tpu.memory_space<vmem>>, vector<4x4xf32>
    tpu.vector_store %arg8[%c28_391, %c28_392], %202 {strides = array<i32>} : memref<64x36xf32, #tpu.memory_space<vmem>>, vector<4x4xf32>,
    %c0_393 = arith.constant 0 : index
    %c0_394 = arith.constant 0 : index
    %c1_395 = arith.constant 1 : index
    %c32_396 = arith.constant 32 : index
    %204 = vector.load %arg1[%c0_393, %c0_394, %c1_395, %c32_396] : memref<1x5x5x64xf32, #tpu.memory_space<vmem>>, vector<1x1x4x4xf32>
    %205 = vector.shape_cast %204 : vector<1x1x4x4xf32> to vector<4x4xf32>
    %c16_397 = arith.constant 16 : index
    %c32_398 = arith.constant 32 : index
    %206 = vector.load %arg8[%c16_397, %c32_398] : memref<64x36xf32, #tpu.memory_space<vmem>>, vector<4x4xf32>
    tpu.vector_store %arg8[%c16_397, %c32_398], %205 {strides = array<i32>} : memref<64x36xf32, #tpu.memory_space<vmem>>, vector<4x4xf32>,
    %c0_399 = arith.constant 0 : index
    %c1_400 = arith.constant 1 : index
    %c1_401 = arith.constant 1 : index
    %c32_402 = arith.constant 32 : index
    %207 = vector.load %arg1[%c0_399, %c1_400, %c1_401, %c32_402] : memref<1x5x5x64xf32, #tpu.memory_space<vmem>>, vector<1x1x4x4xf32>
    %208 = vector.shape_cast %207 : vector<1x1x4x4xf32> to vector<4x4xf32>
    %c20_403 = arith.constant 20 : index
    %c32_404 = arith.constant 32 : index
    %209 = vector.load %arg8[%c20_403, %c32_404] : memref<64x36xf32, #tpu.memory_space<vmem>>, vector<4x4xf32>
    tpu.vector_store %arg8[%c20_403, %c32_404], %208 {strides = array<i32>} : memref<64x36xf32, #tpu.memory_space<vmem>>, vector<4x4xf32>,
    %c0_405 = arith.constant 0 : index
    %c2_406 = arith.constant 2 : index
    %c1_407 = arith.constant 1 : index
    %c32_408 = arith.constant 32 : index
    %210 = vector.load %arg1[%c0_405, %c2_406, %c1_407, %c32_408] : memref<1x5x5x64xf32, #tpu.memory_space<vmem>>, vector<1x1x4x4xf32>
    %211 = vector.shape_cast %210 : vector<1x1x4x4xf32> to vector<4x4xf32>
    %c24_409 = arith.constant 24 : index
    %c32_410 = arith.constant 32 : index
    %212 = vector.load %arg8[%c24_409, %c32_410] : memref<64x36xf32, #tpu.memory_space<vmem>>, vector<4x4xf32>
    tpu.vector_store %arg8[%c24_409, %c32_410], %211 {strides = array<i32>} : memref<64x36xf32, #tpu.memory_space<vmem>>, vector<4x4xf32>,
    %c0_411 = arith.constant 0 : index
    %c3_412 = arith.constant 3 : index
    %c1_413 = arith.constant 1 : index
    %c32_414 = arith.constant 32 : index
    %213 = vector.load %arg1[%c0_411, %c3_412, %c1_413, %c32_414] : memref<1x5x5x64xf32, #tpu.memory_space<vmem>>, vector<1x1x4x4xf32>
    %214 = vector.shape_cast %213 : vector<1x1x4x4xf32> to vector<4x4xf32>
    %c28_415 = arith.constant 28 : index
    %c32_416 = arith.constant 32 : index
    %215 = vector.load %arg8[%c28_415, %c32_416] : memref<64x36xf32, #tpu.memory_space<vmem>>, vector<4x4xf32>
    tpu.vector_store %arg8[%c28_415, %c32_416], %214 {strides = array<i32>} : memref<64x36xf32, #tpu.memory_space<vmem>>, vector<4x4xf32>,
    %c0_417 = arith.constant 0 : index
    %c0_418 = arith.constant 0 : index
    %c0_419 = arith.constant 0 : index
    %c32_420 = arith.constant 32 : index
    %216 = vector.load %arg1[%c0_417, %c0_418, %c0_419, %c32_420] : memref<1x5x5x64xf32, #tpu.memory_space<vmem>>, vector<1x1x4x4xf32>
    %217 = vector.shape_cast %216 : vector<1x1x4x4xf32> to vector<4x4xf32>
    %c32_421 = arith.constant 32 : index
    %c0_422 = arith.constant 0 : index
    %218 = vector.load %arg8[%c32_421, %c0_422] : memref<64x36xf32, #tpu.memory_space<vmem>>, vector<4x4xf32>
    tpu.vector_store %arg8[%c32_421, %c0_422], %217 {strides = array<i32>} : memref<64x36xf32, #tpu.memory_space<vmem>>, vector<4x4xf32>,
    %c0_423 = arith.constant 0 : index
    %c1_424 = arith.constant 1 : index
    %c0_425 = arith.constant 0 : index
    %c32_426 = arith.constant 32 : index
    %219 = vector.load %arg1[%c0_423, %c1_424, %c0_425, %c32_426] : memref<1x5x5x64xf32, #tpu.memory_space<vmem>>, vector<1x1x4x4xf32>
    %220 = vector.shape_cast %219 : vector<1x1x4x4xf32> to vector<4x4xf32>
    %c36_427 = arith.constant 36 : index
    %c0_428 = arith.constant 0 : index
    %221 = vector.load %arg8[%c36_427, %c0_428] : memref<64x36xf32, #tpu.memory_space<vmem>>, vector<4x4xf32>
    tpu.vector_store %arg8[%c36_427, %c0_428], %220 {strides = array<i32>} : memref<64x36xf32, #tpu.memory_space<vmem>>, vector<4x4xf32>,
    %c0_429 = arith.constant 0 : index
    %c2_430 = arith.constant 2 : index
    %c0_431 = arith.constant 0 : index
    %c32_432 = arith.constant 32 : index
    %222 = vector.load %arg1[%c0_429, %c2_430, %c0_431, %c32_432] : memref<1x5x5x64xf32, #tpu.memory_space<vmem>>, vector<1x1x4x4xf32>
    %223 = vector.shape_cast %222 : vector<1x1x4x4xf32> to vector<4x4xf32>
    %c40_433 = arith.constant 40 : index
    %c0_434 = arith.constant 0 : index
    %224 = vector.load %arg8[%c40_433, %c0_434] : memref<64x36xf32, #tpu.memory_space<vmem>>, vector<4x4xf32>
    tpu.vector_store %arg8[%c40_433, %c0_434], %223 {strides = array<i32>} : memref<64x36xf32, #tpu.memory_space<vmem>>, vector<4x4xf32>,
    %c0_435 = arith.constant 0 : index
    %c3_436 = arith.constant 3 : index
    %c0_437 = arith.constant 0 : index
    %c32_438 = arith.constant 32 : index
    %225 = vector.load %arg1[%c0_435, %c3_436, %c0_437, %c32_438] : memref<1x5x5x64xf32, #tpu.memory_space<vmem>>, vector<1x1x4x4xf32>
    %226 = vector.shape_cast %225 : vector<1x1x4x4xf32> to vector<4x4xf32>
    %c44_439 = arith.constant 44 : index
    %c0_440 = arith.constant 0 : index
    %227 = vector.load %arg8[%c44_439, %c0_440] : memref<64x36xf32, #tpu.memory_space<vmem>>, vector<4x4xf32>
    tpu.vector_store %arg8[%c44_439, %c0_440], %226 {strides = array<i32>} : memref<64x36xf32, #tpu.memory_space<vmem>>, vector<4x4xf32>,
    %c0_441 = arith.constant 0 : index
    %c0_442 = arith.constant 0 : index
    %c0_443 = arith.constant 0 : index
    %c36_444 = arith.constant 36 : index
    %228 = vector.load %arg1[%c0_441, %c0_442, %c0_443, %c36_444] : memref<1x5x5x64xf32, #tpu.memory_space<vmem>>, vector<1x1x4x4xf32>
    %229 = vector.shape_cast %228 : vector<1x1x4x4xf32> to vector<4x4xf32>
    %c32_445 = arith.constant 32 : index
    %c4_446 = arith.constant 4 : index
    %230 = vector.load %arg8[%c32_445, %c4_446] : memref<64x36xf32, #tpu.memory_space<vmem>>, vector<4x4xf32>
    tpu.vector_store %arg8[%c32_445, %c4_446], %229 {strides = array<i32>} : memref<64x36xf32, #tpu.memory_space<vmem>>, vector<4x4xf32>,
    %c0_447 = arith.constant 0 : index
    %c1_448 = arith.constant 1 : index
    %c0_449 = arith.constant 0 : index
    %c36_450 = arith.constant 36 : index
    %231 = vector.load %arg1[%c0_447, %c1_448, %c0_449, %c36_450] : memref<1x5x5x64xf32, #tpu.memory_space<vmem>>, vector<1x1x4x4xf32>
    %232 = vector.shape_cast %231 : vector<1x1x4x4xf32> to vector<4x4xf32>
    %c36_451 = arith.constant 36 : index
    %c4_452 = arith.constant 4 : index
    %233 = vector.load %arg8[%c36_451, %c4_452] : memref<64x36xf32, #tpu.memory_space<vmem>>, vector<4x4xf32>
    tpu.vector_store %arg8[%c36_451, %c4_452], %232 {strides = array<i32>} : memref<64x36xf32, #tpu.memory_space<vmem>>, vector<4x4xf32>,
    %c0_453 = arith.constant 0 : index
    %c2_454 = arith.constant 2 : index
    %c0_455 = arith.constant 0 : index
    %c36_456 = arith.constant 36 : index
    %234 = vector.load %arg1[%c0_453, %c2_454, %c0_455, %c36_456] : memref<1x5x5x64xf32, #tpu.memory_space<vmem>>, vector<1x1x4x4xf32>
    %235 = vector.shape_cast %234 : vector<1x1x4x4xf32> to vector<4x4xf32>
    %c40_457 = arith.constant 40 : index
    %c4_458 = arith.constant 4 : index
    %236 = vector.load %arg8[%c40_457, %c4_458] : memref<64x36xf32, #tpu.memory_space<vmem>>, vector<4x4xf32>
    tpu.vector_store %arg8[%c40_457, %c4_458], %235 {strides = array<i32>} : memref<64x36xf32, #tpu.memory_space<vmem>>, vector<4x4xf32>,
    %c0_459 = arith.constant 0 : index
    %c3_460 = arith.constant 3 : index
    %c0_461 = arith.constant 0 : index
    %c36_462 = arith.constant 36 : index
    %237 = vector.load %arg1[%c0_459, %c3_460, %c0_461, %c36_462] : memref<1x5x5x64xf32, #tpu.memory_space<vmem>>, vector<1x1x4x4xf32>
    %238 = vector.shape_cast %237 : vector<1x1x4x4xf32> to vector<4x4xf32>
    %c44_463 = arith.constant 44 : index
    %c4_464 = arith.constant 4 : index
    %239 = vector.load %arg8[%c44_463, %c4_464] : memref<64x36xf32, #tpu.memory_space<vmem>>, vector<4x4xf32>
    tpu.vector_store %arg8[%c44_463, %c4_464], %238 {strides = array<i32>} : memref<64x36xf32, #tpu.memory_space<vmem>>, vector<4x4xf32>,
    %c0_465 = arith.constant 0 : index
    %c0_466 = arith.constant 0 : index
    %c0_467 = arith.constant 0 : index
    %c40_468 = arith.constant 40 : index
    %240 = vector.load %arg1[%c0_465, %c0_466, %c0_467, %c40_468] : memref<1x5x5x64xf32, #tpu.memory_space<vmem>>, vector<1x1x4x4xf32>
    %241 = vector.shape_cast %240 : vector<1x1x4x4xf32> to vector<4x4xf32>
    %c32_469 = arith.constant 32 : index
    %c8_470 = arith.constant 8 : index
    %242 = vector.load %arg8[%c32_469, %c8_470] : memref<64x36xf32, #tpu.memory_space<vmem>>, vector<4x4xf32>
    tpu.vector_store %arg8[%c32_469, %c8_470], %241 {strides = array<i32>} : memref<64x36xf32, #tpu.memory_space<vmem>>, vector<4x4xf32>,
    %c0_471 = arith.constant 0 : index
    %c1_472 = arith.constant 1 : index
    %c0_473 = arith.constant 0 : index
    %c40_474 = arith.constant 40 : index
    %243 = vector.load %arg1[%c0_471, %c1_472, %c0_473, %c40_474] : memref<1x5x5x64xf32, #tpu.memory_space<vmem>>, vector<1x1x4x4xf32>
    %244 = vector.shape_cast %243 : vector<1x1x4x4xf32> to vector<4x4xf32>
    %c36_475 = arith.constant 36 : index
    %c8_476 = arith.constant 8 : index
    %245 = vector.load %arg8[%c36_475, %c8_476] : memref<64x36xf32, #tpu.memory_space<vmem>>, vector<4x4xf32>
    tpu.vector_store %arg8[%c36_475, %c8_476], %244 {strides = array<i32>} : memref<64x36xf32, #tpu.memory_space<vmem>>, vector<4x4xf32>,
    %c0_477 = arith.constant 0 : index
    %c2_478 = arith.constant 2 : index
    %c0_479 = arith.constant 0 : index
    %c40_480 = arith.constant 40 : index
    %246 = vector.load %arg1[%c0_477, %c2_478, %c0_479, %c40_480] : memref<1x5x5x64xf32, #tpu.memory_space<vmem>>, vector<1x1x4x4xf32>
    %247 = vector.shape_cast %246 : vector<1x1x4x4xf32> to vector<4x4xf32>
    %c40_481 = arith.constant 40 : index
    %c8_482 = arith.constant 8 : index
    %248 = vector.load %arg8[%c40_481, %c8_482] : memref<64x36xf32, #tpu.memory_space<vmem>>, vector<4x4xf32>
    tpu.vector_store %arg8[%c40_481, %c8_482], %247 {strides = array<i32>} : memref<64x36xf32, #tpu.memory_space<vmem>>, vector<4x4xf32>,
    %c0_483 = arith.constant 0 : index
    %c3_484 = arith.constant 3 : index
    %c0_485 = arith.constant 0 : index
    %c40_486 = arith.constant 40 : index
    %249 = vector.load %arg1[%c0_483, %c3_484, %c0_485, %c40_486] : memref<1x5x5x64xf32, #tpu.memory_space<vmem>>, vector<1x1x4x4xf32>
    %250 = vector.shape_cast %249 : vector<1x1x4x4xf32> to vector<4x4xf32>
    %c44_487 = arith.constant 44 : index
    %c8_488 = arith.constant 8 : index
    %251 = vector.load %arg8[%c44_487, %c8_488] : memref<64x36xf32, #tpu.memory_space<vmem>>, vector<4x4xf32>
    tpu.vector_store %arg8[%c44_487, %c8_488], %250 {strides = array<i32>} : memref<64x36xf32, #tpu.memory_space<vmem>>, vector<4x4xf32>,
    %c0_489 = arith.constant 0 : index
    %c0_490 = arith.constant 0 : index
    %c0_491 = arith.constant 0 : index
    %c48 = arith.constant 48 : index
    %252 = vector.load %arg1[%c0_489, %c0_490, %c0_491, %c48] : memref<1x5x5x64xf32, #tpu.memory_space<vmem>>, vector<1x1x4x4xf32>
    %253 = vector.shape_cast %252 : vector<1x1x4x4xf32> to vector<4x4xf32>
    %c32_492 = arith.constant 32 : index
    %c12_493 = arith.constant 12 : index
    %254 = vector.load %arg8[%c32_492, %c12_493] : memref<64x36xf32, #tpu.memory_space<vmem>>, vector<4x4xf32>
    tpu.vector_store %arg8[%c32_492, %c12_493], %253 {strides = array<i32>} : memref<64x36xf32, #tpu.memory_space<vmem>>, vector<4x4xf32>,
    %c0_494 = arith.constant 0 : index
    %c1_495 = arith.constant 1 : index
    %c0_496 = arith.constant 0 : index
    %c48_497 = arith.constant 48 : index
    %255 = vector.load %arg1[%c0_494, %c1_495, %c0_496, %c48_497] : memref<1x5x5x64xf32, #tpu.memory_space<vmem>>, vector<1x1x4x4xf32>
    %256 = vector.shape_cast %255 : vector<1x1x4x4xf32> to vector<4x4xf32>
    %c36_498 = arith.constant 36 : index
    %c12_499 = arith.constant 12 : index
    %257 = vector.load %arg8[%c36_498, %c12_499] : memref<64x36xf32, #tpu.memory_space<vmem>>, vector<4x4xf32>
    tpu.vector_store %arg8[%c36_498, %c12_499], %256 {strides = array<i32>} : memref<64x36xf32, #tpu.memory_space<vmem>>, vector<4x4xf32>,
    %c0_500 = arith.constant 0 : index
    %c2_501 = arith.constant 2 : index
    %c0_502 = arith.constant 0 : index
    %c48_503 = arith.constant 48 : index
    %258 = vector.load %arg1[%c0_500, %c2_501, %c0_502, %c48_503] : memref<1x5x5x64xf32, #tpu.memory_space<vmem>>, vector<1x1x4x4xf32>
    %259 = vector.shape_cast %258 : vector<1x1x4x4xf32> to vector<4x4xf32>
    %c40_504 = arith.constant 40 : index
    %c12_505 = arith.constant 12 : index
    %260 = vector.load %arg8[%c40_504, %c12_505] : memref<64x36xf32, #tpu.memory_space<vmem>>, vector<4x4xf32>
    tpu.vector_store %arg8[%c40_504, %c12_505], %259 {strides = array<i32>} : memref<64x36xf32, #tpu.memory_space<vmem>>, vector<4x4xf32>,
    %c0_506 = arith.constant 0 : index
    %c3_507 = arith.constant 3 : index
    %c0_508 = arith.constant 0 : index
    %c48_509 = arith.constant 48 : index
    %261 = vector.load %arg1[%c0_506, %c3_507, %c0_508, %c48_509] : memref<1x5x5x64xf32, #tpu.memory_space<vmem>>, vector<1x1x4x4xf32>
    %262 = vector.shape_cast %261 : vector<1x1x4x4xf32> to vector<4x4xf32>
    %c44_510 = arith.constant 44 : index
    %c12_511 = arith.constant 12 : index
    %263 = vector.load %arg8[%c44_510, %c12_511] : memref<64x36xf32, #tpu.memory_space<vmem>>, vector<4x4xf32>
    tpu.vector_store %arg8[%c44_510, %c12_511], %262 {strides = array<i32>} : memref<64x36xf32, #tpu.memory_space<vmem>>, vector<4x4xf32>,
    %c0_512 = arith.constant 0 : index
    %c0_513 = arith.constant 0 : index
    %c0_514 = arith.constant 0 : index
    %c52 = arith.constant 52 : index
    %264 = vector.load %arg1[%c0_512, %c0_513, %c0_514, %c52] : memref<1x5x5x64xf32, #tpu.memory_space<vmem>>, vector<1x1x4x4xf32>
    %265 = vector.shape_cast %264 : vector<1x1x4x4xf32> to vector<4x4xf32>
    %c32_515 = arith.constant 32 : index
    %c16_516 = arith.constant 16 : index
    %266 = vector.load %arg8[%c32_515, %c16_516] : memref<64x36xf32, #tpu.memory_space<vmem>>, vector<4x4xf32>
    tpu.vector_store %arg8[%c32_515, %c16_516], %265 {strides = array<i32>} : memref<64x36xf32, #tpu.memory_space<vmem>>, vector<4x4xf32>,
    %c0_517 = arith.constant 0 : index
    %c1_518 = arith.constant 1 : index
    %c0_519 = arith.constant 0 : index
    %c52_520 = arith.constant 52 : index
    %267 = vector.load %arg1[%c0_517, %c1_518, %c0_519, %c52_520] : memref<1x5x5x64xf32, #tpu.memory_space<vmem>>, vector<1x1x4x4xf32>
    %268 = vector.shape_cast %267 : vector<1x1x4x4xf32> to vector<4x4xf32>
    %c36_521 = arith.constant 36 : index
    %c16_522 = arith.constant 16 : index
    %269 = vector.load %arg8[%c36_521, %c16_522] : memref<64x36xf32, #tpu.memory_space<vmem>>, vector<4x4xf32>
    tpu.vector_store %arg8[%c36_521, %c16_522], %268 {strides = array<i32>} : memref<64x36xf32, #tpu.memory_space<vmem>>, vector<4x4xf32>,
    %c0_523 = arith.constant 0 : index
    %c2_524 = arith.constant 2 : index
    %c0_525 = arith.constant 0 : index
    %c52_526 = arith.constant 52 : index
    %270 = vector.load %arg1[%c0_523, %c2_524, %c0_525, %c52_526] : memref<1x5x5x64xf32, #tpu.memory_space<vmem>>, vector<1x1x4x4xf32>
    %271 = vector.shape_cast %270 : vector<1x1x4x4xf32> to vector<4x4xf32>
    %c40_527 = arith.constant 40 : index
    %c16_528 = arith.constant 16 : index
    %272 = vector.load %arg8[%c40_527, %c16_528] : memref<64x36xf32, #tpu.memory_space<vmem>>, vector<4x4xf32>
    tpu.vector_store %arg8[%c40_527, %c16_528], %271 {strides = array<i32>} : memref<64x36xf32, #tpu.memory_space<vmem>>, vector<4x4xf32>,
    %c0_529 = arith.constant 0 : index
    %c3_530 = arith.constant 3 : index
    %c0_531 = arith.constant 0 : index
    %c52_532 = arith.constant 52 : index
    %273 = vector.load %arg1[%c0_529, %c3_530, %c0_531, %c52_532] : memref<1x5x5x64xf32, #tpu.memory_space<vmem>>, vector<1x1x4x4xf32>
    %274 = vector.shape_cast %273 : vector<1x1x4x4xf32> to vector<4x4xf32>
    %c44_533 = arith.constant 44 : index
    %c16_534 = arith.constant 16 : index
    %275 = vector.load %arg8[%c44_533, %c16_534] : memref<64x36xf32, #tpu.memory_space<vmem>>, vector<4x4xf32>
    tpu.vector_store %arg8[%c44_533, %c16_534], %274 {strides = array<i32>} : memref<64x36xf32, #tpu.memory_space<vmem>>, vector<4x4xf32>,
    %c0_535 = arith.constant 0 : index
    %c0_536 = arith.constant 0 : index
    %c0_537 = arith.constant 0 : index
    %c56 = arith.constant 56 : index
    %276 = vector.load %arg1[%c0_535, %c0_536, %c0_537, %c56] : memref<1x5x5x64xf32, #tpu.memory_space<vmem>>, vector<1x1x4x4xf32>
    %277 = vector.shape_cast %276 : vector<1x1x4x4xf32> to vector<4x4xf32>
    %c32_538 = arith.constant 32 : index
    %c20_539 = arith.constant 20 : index
    %278 = vector.load %arg8[%c32_538, %c20_539] : memref<64x36xf32, #tpu.memory_space<vmem>>, vector<4x4xf32>
    tpu.vector_store %arg8[%c32_538, %c20_539], %277 {strides = array<i32>} : memref<64x36xf32, #tpu.memory_space<vmem>>, vector<4x4xf32>,
    %c0_540 = arith.constant 0 : index
    %c1_541 = arith.constant 1 : index
    %c0_542 = arith.constant 0 : index
    %c56_543 = arith.constant 56 : index
    %279 = vector.load %arg1[%c0_540, %c1_541, %c0_542, %c56_543] : memref<1x5x5x64xf32, #tpu.memory_space<vmem>>, vector<1x1x4x4xf32>
    %280 = vector.shape_cast %279 : vector<1x1x4x4xf32> to vector<4x4xf32>
    %c36_544 = arith.constant 36 : index
    %c20_545 = arith.constant 20 : index
    %281 = vector.load %arg8[%c36_544, %c20_545] : memref<64x36xf32, #tpu.memory_space<vmem>>, vector<4x4xf32>
    tpu.vector_store %arg8[%c36_544, %c20_545], %280 {strides = array<i32>} : memref<64x36xf32, #tpu.memory_space<vmem>>, vector<4x4xf32>,
    %c0_546 = arith.constant 0 : index
    %c2_547 = arith.constant 2 : index
    %c0_548 = arith.constant 0 : index
    %c56_549 = arith.constant 56 : index
    %282 = vector.load %arg1[%c0_546, %c2_547, %c0_548, %c56_549] : memref<1x5x5x64xf32, #tpu.memory_space<vmem>>, vector<1x1x4x4xf32>
    %283 = vector.shape_cast %282 : vector<1x1x4x4xf32> to vector<4x4xf32>
    %c40_550 = arith.constant 40 : index
    %c20_551 = arith.constant 20 : index
    %284 = vector.load %arg8[%c40_550, %c20_551] : memref<64x36xf32, #tpu.memory_space<vmem>>, vector<4x4xf32>
    tpu.vector_store %arg8[%c40_550, %c20_551], %283 {strides = array<i32>} : memref<64x36xf32, #tpu.memory_space<vmem>>, vector<4x4xf32>,
    %c0_552 = arith.constant 0 : index
    %c3_553 = arith.constant 3 : index
    %c0_554 = arith.constant 0 : index
    %c56_555 = arith.constant 56 : index
    %285 = vector.load %arg1[%c0_552, %c3_553, %c0_554, %c56_555] : memref<1x5x5x64xf32, #tpu.memory_space<vmem>>, vector<1x1x4x4xf32>
    %286 = vector.shape_cast %285 : vector<1x1x4x4xf32> to vector<4x4xf32>
    %c44_556 = arith.constant 44 : index
    %c20_557 = arith.constant 20 : index
    %287 = vector.load %arg8[%c44_556, %c20_557] : memref<64x36xf32, #tpu.memory_space<vmem>>, vector<4x4xf32>
    tpu.vector_store %arg8[%c44_556, %c20_557], %286 {strides = array<i32>} : memref<64x36xf32, #tpu.memory_space<vmem>>, vector<4x4xf32>,
    %c0_558 = arith.constant 0 : index
    %c1_559 = arith.constant 1 : index
    %c0_560 = arith.constant 0 : index
    %c0_561 = arith.constant 0 : index
    %288 = vector.load %arg1[%c0_558, %c1_559, %c0_560, %c0_561] : memref<1x5x5x64xf32, #tpu.memory_space<vmem>>, vector<1x1x4x4xf32>
    %289 = vector.shape_cast %288 : vector<1x1x4x4xf32> to vector<4x4xf32>
    %c32_562 = arith.constant 32 : index
    %c24_563 = arith.constant 24 : index
    %290 = vector.load %arg8[%c32_562, %c24_563] : memref<64x36xf32, #tpu.memory_space<vmem>>, vector<4x4xf32>
    tpu.vector_store %arg8[%c32_562, %c24_563], %289 {strides = array<i32>} : memref<64x36xf32, #tpu.memory_space<vmem>>, vector<4x4xf32>,
    %c0_564 = arith.constant 0 : index
    %c2_565 = arith.constant 2 : index
    %c0_566 = arith.constant 0 : index
    %c0_567 = arith.constant 0 : index
    %291 = vector.load %arg1[%c0_564, %c2_565, %c0_566, %c0_567] : memref<1x5x5x64xf32, #tpu.memory_space<vmem>>, vector<1x1x4x4xf32>
    %292 = vector.shape_cast %291 : vector<1x1x4x4xf32> to vector<4x4xf32>
    %c36_568 = arith.constant 36 : index
    %c24_569 = arith.constant 24 : index
    %293 = vector.load %arg8[%c36_568, %c24_569] : memref<64x36xf32, #tpu.memory_space<vmem>>, vector<4x4xf32>
    tpu.vector_store %arg8[%c36_568, %c24_569], %292 {strides = array<i32>} : memref<64x36xf32, #tpu.memory_space<vmem>>, vector<4x4xf32>,
    %c0_570 = arith.constant 0 : index
    %c3_571 = arith.constant 3 : index
    %c0_572 = arith.constant 0 : index
    %c0_573 = arith.constant 0 : index
    %294 = vector.load %arg1[%c0_570, %c3_571, %c0_572, %c0_573] : memref<1x5x5x64xf32, #tpu.memory_space<vmem>>, vector<1x1x4x4xf32>
    %295 = vector.shape_cast %294 : vector<1x1x4x4xf32> to vector<4x4xf32>
    %c40_574 = arith.constant 40 : index
    %c24_575 = arith.constant 24 : index
    %296 = vector.load %arg8[%c40_574, %c24_575] : memref<64x36xf32, #tpu.memory_space<vmem>>, vector<4x4xf32>
    tpu.vector_store %arg8[%c40_574, %c24_575], %295 {strides = array<i32>} : memref<64x36xf32, #tpu.memory_space<vmem>>, vector<4x4xf32>,
    %c0_576 = arith.constant 0 : index
    %c4_577 = arith.constant 4 : index
    %c0_578 = arith.constant 0 : index
    %c0_579 = arith.constant 0 : index
    %297 = vector.load %arg1[%c0_576, %c4_577, %c0_578, %c0_579] : memref<1x5x5x64xf32, #tpu.memory_space<vmem>>, vector<1x1x4x4xf32>
    %298 = vector.shape_cast %297 : vector<1x1x4x4xf32> to vector<4x4xf32>
    %c44_580 = arith.constant 44 : index
    %c24_581 = arith.constant 24 : index
    %299 = vector.load %arg8[%c44_580, %c24_581] : memref<64x36xf32, #tpu.memory_space<vmem>>, vector<4x4xf32>
    tpu.vector_store %arg8[%c44_580, %c24_581], %298 {strides = array<i32>} : memref<64x36xf32, #tpu.memory_space<vmem>>, vector<4x4xf32>,
    %c0_582 = arith.constant 0 : index
    %c1_583 = arith.constant 1 : index
    %c0_584 = arith.constant 0 : index
    %c4_585 = arith.constant 4 : index
    %300 = vector.load %arg1[%c0_582, %c1_583, %c0_584, %c4_585] : memref<1x5x5x64xf32, #tpu.memory_space<vmem>>, vector<1x1x4x4xf32>
    %301 = vector.shape_cast %300 : vector<1x1x4x4xf32> to vector<4x4xf32>
    %c32_586 = arith.constant 32 : index
    %c28_587 = arith.constant 28 : index
    %302 = vector.load %arg8[%c32_586, %c28_587] : memref<64x36xf32, #tpu.memory_space<vmem>>, vector<4x4xf32>
    tpu.vector_store %arg8[%c32_586, %c28_587], %301 {strides = array<i32>} : memref<64x36xf32, #tpu.memory_space<vmem>>, vector<4x4xf32>,
    %c0_588 = arith.constant 0 : index
    %c2_589 = arith.constant 2 : index
    %c0_590 = arith.constant 0 : index
    %c4_591 = arith.constant 4 : index
    %303 = vector.load %arg1[%c0_588, %c2_589, %c0_590, %c4_591] : memref<1x5x5x64xf32, #tpu.memory_space<vmem>>, vector<1x1x4x4xf32>
    %304 = vector.shape_cast %303 : vector<1x1x4x4xf32> to vector<4x4xf32>
    %c36_592 = arith.constant 36 : index
    %c28_593 = arith.constant 28 : index
    %305 = vector.load %arg8[%c36_592, %c28_593] : memref<64x36xf32, #tpu.memory_space<vmem>>, vector<4x4xf32>
    tpu.vector_store %arg8[%c36_592, %c28_593], %304 {strides = array<i32>} : memref<64x36xf32, #tpu.memory_space<vmem>>, vector<4x4xf32>,
    %c0_594 = arith.constant 0 : index
    %c3_595 = arith.constant 3 : index
    %c0_596 = arith.constant 0 : index
    %c4_597 = arith.constant 4 : index
    %306 = vector.load %arg1[%c0_594, %c3_595, %c0_596, %c4_597] : memref<1x5x5x64xf32, #tpu.memory_space<vmem>>, vector<1x1x4x4xf32>
    %307 = vector.shape_cast %306 : vector<1x1x4x4xf32> to vector<4x4xf32>
    %c40_598 = arith.constant 40 : index
    %c28_599 = arith.constant 28 : index
    %308 = vector.load %arg8[%c40_598, %c28_599] : memref<64x36xf32, #tpu.memory_space<vmem>>, vector<4x4xf32>
    tpu.vector_store %arg8[%c40_598, %c28_599], %307 {strides = array<i32>} : memref<64x36xf32, #tpu.memory_space<vmem>>, vector<4x4xf32>,
    %c0_600 = arith.constant 0 : index
    %c4_601 = arith.constant 4 : index
    %c0_602 = arith.constant 0 : index
    %c4_603 = arith.constant 4 : index
    %309 = vector.load %arg1[%c0_600, %c4_601, %c0_602, %c4_603] : memref<1x5x5x64xf32, #tpu.memory_space<vmem>>, vector<1x1x4x4xf32>
    %310 = vector.shape_cast %309 : vector<1x1x4x4xf32> to vector<4x4xf32>
    %c44_604 = arith.constant 44 : index
    %c28_605 = arith.constant 28 : index
    %311 = vector.load %arg8[%c44_604, %c28_605] : memref<64x36xf32, #tpu.memory_space<vmem>>, vector<4x4xf32>
    tpu.vector_store %arg8[%c44_604, %c28_605], %310 {strides = array<i32>} : memref<64x36xf32, #tpu.memory_space<vmem>>, vector<4x4xf32>,
    %c0_606 = arith.constant 0 : index
    %c1_607 = arith.constant 1 : index
    %c0_608 = arith.constant 0 : index
    %c8_609 = arith.constant 8 : index
    %312 = vector.load %arg1[%c0_606, %c1_607, %c0_608, %c8_609] : memref<1x5x5x64xf32, #tpu.memory_space<vmem>>, vector<1x1x4x4xf32>
    %313 = vector.shape_cast %312 : vector<1x1x4x4xf32> to vector<4x4xf32>
    %c32_610 = arith.constant 32 : index
    %c32_611 = arith.constant 32 : index
    %314 = vector.load %arg8[%c32_610, %c32_611] : memref<64x36xf32, #tpu.memory_space<vmem>>, vector<4x4xf32>
    tpu.vector_store %arg8[%c32_610, %c32_611], %313 {strides = array<i32>} : memref<64x36xf32, #tpu.memory_space<vmem>>, vector<4x4xf32>,
    %c0_612 = arith.constant 0 : index
    %c2_613 = arith.constant 2 : index
    %c0_614 = arith.constant 0 : index
    %c8_615 = arith.constant 8 : index
    %315 = vector.load %arg1[%c0_612, %c2_613, %c0_614, %c8_615] : memref<1x5x5x64xf32, #tpu.memory_space<vmem>>, vector<1x1x4x4xf32>
    %316 = vector.shape_cast %315 : vector<1x1x4x4xf32> to vector<4x4xf32>
    %c36_616 = arith.constant 36 : index
    %c32_617 = arith.constant 32 : index
    %317 = vector.load %arg8[%c36_616, %c32_617] : memref<64x36xf32, #tpu.memory_space<vmem>>, vector<4x4xf32>
    tpu.vector_store %arg8[%c36_616, %c32_617], %316 {strides = array<i32>} : memref<64x36xf32, #tpu.memory_space<vmem>>, vector<4x4xf32>,
    %c0_618 = arith.constant 0 : index
    %c3_619 = arith.constant 3 : index
    %c0_620 = arith.constant 0 : index
    %c8_621 = arith.constant 8 : index
    %318 = vector.load %arg1[%c0_618, %c3_619, %c0_620, %c8_621] : memref<1x5x5x64xf32, #tpu.memory_space<vmem>>, vector<1x1x4x4xf32>
    %319 = vector.shape_cast %318 : vector<1x1x4x4xf32> to vector<4x4xf32>
    %c40_622 = arith.constant 40 : index
    %c32_623 = arith.constant 32 : index
    %320 = vector.load %arg8[%c40_622, %c32_623] : memref<64x36xf32, #tpu.memory_space<vmem>>, vector<4x4xf32>
    tpu.vector_store %arg8[%c40_622, %c32_623], %319 {strides = array<i32>} : memref<64x36xf32, #tpu.memory_space<vmem>>, vector<4x4xf32>,
    %c0_624 = arith.constant 0 : index
    %c4_625 = arith.constant 4 : index
    %c0_626 = arith.constant 0 : index
    %c8_627 = arith.constant 8 : index
    %321 = vector.load %arg1[%c0_624, %c4_625, %c0_626, %c8_627] : memref<1x5x5x64xf32, #tpu.memory_space<vmem>>, vector<1x1x4x4xf32>
    %322 = vector.shape_cast %321 : vector<1x1x4x4xf32> to vector<4x4xf32>
    %c44_628 = arith.constant 44 : index
    %c32_629 = arith.constant 32 : index
    %323 = vector.load %arg8[%c44_628, %c32_629] : memref<64x36xf32, #tpu.memory_space<vmem>>, vector<4x4xf32>
    tpu.vector_store %arg8[%c44_628, %c32_629], %322 {strides = array<i32>} : memref<64x36xf32, #tpu.memory_space<vmem>>, vector<4x4xf32>,
    %c0_630 = arith.constant 0 : index
    %c0_631 = arith.constant 0 : index
    %c0_632 = arith.constant 0 : index
    %c40_633 = arith.constant 40 : index
    %324 = vector.load %arg1[%c0_630, %c0_631, %c0_632, %c40_633] : memref<1x5x5x64xf32, #tpu.memory_space<vmem>>, vector<1x1x4x4xf32>
    %325 = vector.shape_cast %324 : vector<1x1x4x4xf32> to vector<4x4xf32>
    %c48_634 = arith.constant 48 : index
    %c0_635 = arith.constant 0 : index
    %326 = vector.load %arg8[%c48_634, %c0_635] : memref<64x36xf32, #tpu.memory_space<vmem>>, vector<4x4xf32>
    tpu.vector_store %arg8[%c48_634, %c0_635], %325 {strides = array<i32>} : memref<64x36xf32, #tpu.memory_space<vmem>>, vector<4x4xf32>,
    %c0_636 = arith.constant 0 : index
    %c1_637 = arith.constant 1 : index
    %c0_638 = arith.constant 0 : index
    %c40_639 = arith.constant 40 : index
    %327 = vector.load %arg1[%c0_636, %c1_637, %c0_638, %c40_639] : memref<1x5x5x64xf32, #tpu.memory_space<vmem>>, vector<1x1x4x4xf32>
    %328 = vector.shape_cast %327 : vector<1x1x4x4xf32> to vector<4x4xf32>
    %c52_640 = arith.constant 52 : index
    %c0_641 = arith.constant 0 : index
    %329 = vector.load %arg8[%c52_640, %c0_641] : memref<64x36xf32, #tpu.memory_space<vmem>>, vector<4x4xf32>
    tpu.vector_store %arg8[%c52_640, %c0_641], %328 {strides = array<i32>} : memref<64x36xf32, #tpu.memory_space<vmem>>, vector<4x4xf32>,
    %c0_642 = arith.constant 0 : index
    %c2_643 = arith.constant 2 : index
    %c0_644 = arith.constant 0 : index
    %c40_645 = arith.constant 40 : index
    %330 = vector.load %arg1[%c0_642, %c2_643, %c0_644, %c40_645] : memref<1x5x5x64xf32, #tpu.memory_space<vmem>>, vector<1x1x4x4xf32>
    %331 = vector.shape_cast %330 : vector<1x1x4x4xf32> to vector<4x4xf32>
    %c56_646 = arith.constant 56 : index
    %c0_647 = arith.constant 0 : index
    %332 = vector.load %arg8[%c56_646, %c0_647] : memref<64x36xf32, #tpu.memory_space<vmem>>, vector<4x4xf32>
    tpu.vector_store %arg8[%c56_646, %c0_647], %331 {strides = array<i32>} : memref<64x36xf32, #tpu.memory_space<vmem>>, vector<4x4xf32>,
    %c0_648 = arith.constant 0 : index
    %c3_649 = arith.constant 3 : index
    %c0_650 = arith.constant 0 : index
    %c40_651 = arith.constant 40 : index
    %333 = vector.load %arg1[%c0_648, %c3_649, %c0_650, %c40_651] : memref<1x5x5x64xf32, #tpu.memory_space<vmem>>, vector<1x1x4x4xf32>
    %334 = vector.shape_cast %333 : vector<1x1x4x4xf32> to vector<4x4xf32>
    %c60 = arith.constant 60 : index
    %c0_652 = arith.constant 0 : index
    %335 = vector.load %arg8[%c60, %c0_652] : memref<64x36xf32, #tpu.memory_space<vmem>>, vector<4x4xf32>
    tpu.vector_store %arg8[%c60, %c0_652], %334 {strides = array<i32>} : memref<64x36xf32, #tpu.memory_space<vmem>>, vector<4x4xf32>,
    %c0_653 = arith.constant 0 : index
    %c0_654 = arith.constant 0 : index
    %c0_655 = arith.constant 0 : index
    %c44_656 = arith.constant 44 : index
    %336 = vector.load %arg1[%c0_653, %c0_654, %c0_655, %c44_656] : memref<1x5x5x64xf32, #tpu.memory_space<vmem>>, vector<1x1x4x4xf32>
    %337 = vector.shape_cast %336 : vector<1x1x4x4xf32> to vector<4x4xf32>
    %c48_657 = arith.constant 48 : index
    %c4_658 = arith.constant 4 : index
    %338 = vector.load %arg8[%c48_657, %c4_658] : memref<64x36xf32, #tpu.memory_space<vmem>>, vector<4x4xf32>
    tpu.vector_store %arg8[%c48_657, %c4_658], %337 {strides = array<i32>} : memref<64x36xf32, #tpu.memory_space<vmem>>, vector<4x4xf32>,
    %c0_659 = arith.constant 0 : index
    %c1_660 = arith.constant 1 : index
    %c0_661 = arith.constant 0 : index
    %c44_662 = arith.constant 44 : index
    %339 = vector.load %arg1[%c0_659, %c1_660, %c0_661, %c44_662] : memref<1x5x5x64xf32, #tpu.memory_space<vmem>>, vector<1x1x4x4xf32>
    %340 = vector.shape_cast %339 : vector<1x1x4x4xf32> to vector<4x4xf32>
    %c52_663 = arith.constant 52 : index
    %c4_664 = arith.constant 4 : index
    %341 = vector.load %arg8[%c52_663, %c4_664] : memref<64x36xf32, #tpu.memory_space<vmem>>, vector<4x4xf32>
    tpu.vector_store %arg8[%c52_663, %c4_664], %340 {strides = array<i32>} : memref<64x36xf32, #tpu.memory_space<vmem>>, vector<4x4xf32>,
    %c0_665 = arith.constant 0 : index
    %c2_666 = arith.constant 2 : index
    %c0_667 = arith.constant 0 : index
    %c44_668 = arith.constant 44 : index
    %342 = vector.load %arg1[%c0_665, %c2_666, %c0_667, %c44_668] : memref<1x5x5x64xf32, #tpu.memory_space<vmem>>, vector<1x1x4x4xf32>
    %343 = vector.shape_cast %342 : vector<1x1x4x4xf32> to vector<4x4xf32>
    %c56_669 = arith.constant 56 : index
    %c4_670 = arith.constant 4 : index
    %344 = vector.load %arg8[%c56_669, %c4_670] : memref<64x36xf32, #tpu.memory_space<vmem>>, vector<4x4xf32>
    tpu.vector_store %arg8[%c56_669, %c4_670], %343 {strides = array<i32>} : memref<64x36xf32, #tpu.memory_space<vmem>>, vector<4x4xf32>,
    %c0_671 = arith.constant 0 : index
    %c3_672 = arith.constant 3 : index
    %c0_673 = arith.constant 0 : index
    %c44_674 = arith.constant 44 : index
    %345 = vector.load %arg1[%c0_671, %c3_672, %c0_673, %c44_674] : memref<1x5x5x64xf32, #tpu.memory_space<vmem>>, vector<1x1x4x4xf32>
    %346 = vector.shape_cast %345 : vector<1x1x4x4xf32> to vector<4x4xf32>
    %c60_675 = arith.constant 60 : index
    %c4_676 = arith.constant 4 : index
    %347 = vector.load %arg8[%c60_675, %c4_676] : memref<64x36xf32, #tpu.memory_space<vmem>>, vector<4x4xf32>
    tpu.vector_store %arg8[%c60_675, %c4_676], %346 {strides = array<i32>} : memref<64x36xf32, #tpu.memory_space<vmem>>, vector<4x4xf32>,
    %c0_677 = arith.constant 0 : index
    %c0_678 = arith.constant 0 : index
    %c1_679 = arith.constant 1 : index
    %c32_680 = arith.constant 32 : index
    %348 = vector.load %arg1[%c0_677, %c0_678, %c1_679, %c32_680] : memref<1x5x5x64xf32, #tpu.memory_space<vmem>>, vector<1x1x4x4xf32>
    %349 = vector.shape_cast %348 : vector<1x1x4x4xf32> to vector<4x4xf32>
    %c48_681 = arith.constant 48 : index
    %c8_682 = arith.constant 8 : index
    %350 = vector.load %arg8[%c48_681, %c8_682] : memref<64x36xf32, #tpu.memory_space<vmem>>, vector<4x4xf32>
    tpu.vector_store %arg8[%c48_681, %c8_682], %349 {strides = array<i32>} : memref<64x36xf32, #tpu.memory_space<vmem>>, vector<4x4xf32>,
    %c0_683 = arith.constant 0 : index
    %c1_684 = arith.constant 1 : index
    %c1_685 = arith.constant 1 : index
    %c32_686 = arith.constant 32 : index
    %351 = vector.load %arg1[%c0_683, %c1_684, %c1_685, %c32_686] : memref<1x5x5x64xf32, #tpu.memory_space<vmem>>, vector<1x1x4x4xf32>
    %352 = vector.shape_cast %351 : vector<1x1x4x4xf32> to vector<4x4xf32>
    %c52_687 = arith.constant 52 : index
    %c8_688 = arith.constant 8 : index
    %353 = vector.load %arg8[%c52_687, %c8_688] : memref<64x36xf32, #tpu.memory_space<vmem>>, vector<4x4xf32>
    tpu.vector_store %arg8[%c52_687, %c8_688], %352 {strides = array<i32>} : memref<64x36xf32, #tpu.memory_space<vmem>>, vector<4x4xf32>,
    %c0_689 = arith.constant 0 : index
    %c2_690 = arith.constant 2 : index
    %c1_691 = arith.constant 1 : index
    %c32_692 = arith.constant 32 : index
    %354 = vector.load %arg1[%c0_689, %c2_690, %c1_691, %c32_692] : memref<1x5x5x64xf32, #tpu.memory_space<vmem>>, vector<1x1x4x4xf32>
    %355 = vector.shape_cast %354 : vector<1x1x4x4xf32> to vector<4x4xf32>
    %c56_693 = arith.constant 56 : index
    %c8_694 = arith.constant 8 : index
    %356 = vector.load %arg8[%c56_693, %c8_694] : memref<64x36xf32, #tpu.memory_space<vmem>>, vector<4x4xf32>
    tpu.vector_store %arg8[%c56_693, %c8_694], %355 {strides = array<i32>} : memref<64x36xf32, #tpu.memory_space<vmem>>, vector<4x4xf32>,
    %c0_695 = arith.constant 0 : index
    %c3_696 = arith.constant 3 : index
    %c1_697 = arith.constant 1 : index
    %c32_698 = arith.constant 32 : index
    %357 = vector.load %arg1[%c0_695, %c3_696, %c1_697, %c32_698] : memref<1x5x5x64xf32, #tpu.memory_space<vmem>>, vector<1x1x4x4xf32>
    %358 = vector.shape_cast %357 : vector<1x1x4x4xf32> to vector<4x4xf32>
    %c60_699 = arith.constant 60 : index
    %c8_700 = arith.constant 8 : index
    %359 = vector.load %arg8[%c60_699, %c8_700] : memref<64x36xf32, #tpu.memory_space<vmem>>, vector<4x4xf32>
    tpu.vector_store %arg8[%c60_699, %c8_700], %358 {strides = array<i32>} : memref<64x36xf32, #tpu.memory_space<vmem>>, vector<4x4xf32>,
    %c0_701 = arith.constant 0 : index
    %c0_702 = arith.constant 0 : index
    %c0_703 = arith.constant 0 : index
    %c56_704 = arith.constant 56 : index
    %360 = vector.load %arg1[%c0_701, %c0_702, %c0_703, %c56_704] : memref<1x5x5x64xf32, #tpu.memory_space<vmem>>, vector<1x1x4x4xf32>
    %361 = vector.shape_cast %360 : vector<1x1x4x4xf32> to vector<4x4xf32>
    %c48_705 = arith.constant 48 : index
    %c12_706 = arith.constant 12 : index
    %362 = vector.load %arg8[%c48_705, %c12_706] : memref<64x36xf32, #tpu.memory_space<vmem>>, vector<4x4xf32>
    tpu.vector_store %arg8[%c48_705, %c12_706], %361 {strides = array<i32>} : memref<64x36xf32, #tpu.memory_space<vmem>>, vector<4x4xf32>,
    %c0_707 = arith.constant 0 : index
    %c1_708 = arith.constant 1 : index
    %c0_709 = arith.constant 0 : index
    %c56_710 = arith.constant 56 : index
    %363 = vector.load %arg1[%c0_707, %c1_708, %c0_709, %c56_710] : memref<1x5x5x64xf32, #tpu.memory_space<vmem>>, vector<1x1x4x4xf32>
    %364 = vector.shape_cast %363 : vector<1x1x4x4xf32> to vector<4x4xf32>
    %c52_711 = arith.constant 52 : index
    %c12_712 = arith.constant 12 : index
    %365 = vector.load %arg8[%c52_711, %c12_712] : memref<64x36xf32, #tpu.memory_space<vmem>>, vector<4x4xf32>
    tpu.vector_store %arg8[%c52_711, %c12_712], %364 {strides = array<i32>} : memref<64x36xf32, #tpu.memory_space<vmem>>, vector<4x4xf32>,
    %c0_713 = arith.constant 0 : index
    %c2_714 = arith.constant 2 : index
    %c0_715 = arith.constant 0 : index
    %c56_716 = arith.constant 56 : index
    %366 = vector.load %arg1[%c0_713, %c2_714, %c0_715, %c56_716] : memref<1x5x5x64xf32, #tpu.memory_space<vmem>>, vector<1x1x4x4xf32>
    %367 = vector.shape_cast %366 : vector<1x1x4x4xf32> to vector<4x4xf32>
    %c56_717 = arith.constant 56 : index
    %c12_718 = arith.constant 12 : index
    %368 = vector.load %arg8[%c56_717, %c12_718] : memref<64x36xf32, #tpu.memory_space<vmem>>, vector<4x4xf32>
    tpu.vector_store %arg8[%c56_717, %c12_718], %367 {strides = array<i32>} : memref<64x36xf32, #tpu.memory_space<vmem>>, vector<4x4xf32>,
    %c0_719 = arith.constant 0 : index
    %c3_720 = arith.constant 3 : index
    %c0_721 = arith.constant 0 : index
    %c56_722 = arith.constant 56 : index
    %369 = vector.load %arg1[%c0_719, %c3_720, %c0_721, %c56_722] : memref<1x5x5x64xf32, #tpu.memory_space<vmem>>, vector<1x1x4x4xf32>
    %370 = vector.shape_cast %369 : vector<1x1x4x4xf32> to vector<4x4xf32>
    %c60_723 = arith.constant 60 : index
    %c12_724 = arith.constant 12 : index
    %371 = vector.load %arg8[%c60_723, %c12_724] : memref<64x36xf32, #tpu.memory_space<vmem>>, vector<4x4xf32>
    tpu.vector_store %arg8[%c60_723, %c12_724], %370 {strides = array<i32>} : memref<64x36xf32, #tpu.memory_space<vmem>>, vector<4x4xf32>,
    %c0_725 = arith.constant 0 : index
    %c0_726 = arith.constant 0 : index
    %c0_727 = arith.constant 0 : index
    %c60_728 = arith.constant 60 : index
    %372 = vector.load %arg1[%c0_725, %c0_726, %c0_727, %c60_728] : memref<1x5x5x64xf32, #tpu.memory_space<vmem>>, vector<1x1x4x4xf32>
    %373 = vector.shape_cast %372 : vector<1x1x4x4xf32> to vector<4x4xf32>
    %c48_729 = arith.constant 48 : index
    %c16_730 = arith.constant 16 : index
    %374 = vector.load %arg8[%c48_729, %c16_730] : memref<64x36xf32, #tpu.memory_space<vmem>>, vector<4x4xf32>
    tpu.vector_store %arg8[%c48_729, %c16_730], %373 {strides = array<i32>} : memref<64x36xf32, #tpu.memory_space<vmem>>, vector<4x4xf32>,
    %c0_731 = arith.constant 0 : index
    %c1_732 = arith.constant 1 : index
    %c0_733 = arith.constant 0 : index
    %c60_734 = arith.constant 60 : index
    %375 = vector.load %arg1[%c0_731, %c1_732, %c0_733, %c60_734] : memref<1x5x5x64xf32, #tpu.memory_space<vmem>>, vector<1x1x4x4xf32>
    %376 = vector.shape_cast %375 : vector<1x1x4x4xf32> to vector<4x4xf32>
    %c52_735 = arith.constant 52 : index
    %c16_736 = arith.constant 16 : index
    %377 = vector.load %arg8[%c52_735, %c16_736] : memref<64x36xf32, #tpu.memory_space<vmem>>, vector<4x4xf32>
    tpu.vector_store %arg8[%c52_735, %c16_736], %376 {strides = array<i32>} : memref<64x36xf32, #tpu.memory_space<vmem>>, vector<4x4xf32>,
    %c0_737 = arith.constant 0 : index
    %c2_738 = arith.constant 2 : index
    %c0_739 = arith.constant 0 : index
    %c60_740 = arith.constant 60 : index
    %378 = vector.load %arg1[%c0_737, %c2_738, %c0_739, %c60_740] : memref<1x5x5x64xf32, #tpu.memory_space<vmem>>, vector<1x1x4x4xf32>
    %379 = vector.shape_cast %378 : vector<1x1x4x4xf32> to vector<4x4xf32>
    %c56_741 = arith.constant 56 : index
    %c16_742 = arith.constant 16 : index
    %380 = vector.load %arg8[%c56_741, %c16_742] : memref<64x36xf32, #tpu.memory_space<vmem>>, vector<4x4xf32>
    tpu.vector_store %arg8[%c56_741, %c16_742], %379 {strides = array<i32>} : memref<64x36xf32, #tpu.memory_space<vmem>>, vector<4x4xf32>,
    %c0_743 = arith.constant 0 : index
    %c3_744 = arith.constant 3 : index
    %c0_745 = arith.constant 0 : index
    %c60_746 = arith.constant 60 : index
    %381 = vector.load %arg1[%c0_743, %c3_744, %c0_745, %c60_746] : memref<1x5x5x64xf32, #tpu.memory_space<vmem>>, vector<1x1x4x4xf32>
    %382 = vector.shape_cast %381 : vector<1x1x4x4xf32> to vector<4x4xf32>
    %c60_747 = arith.constant 60 : index
    %c16_748 = arith.constant 16 : index
    %383 = vector.load %arg8[%c60_747, %c16_748] : memref<64x36xf32, #tpu.memory_space<vmem>>, vector<4x4xf32>
    tpu.vector_store %arg8[%c60_747, %c16_748], %382 {strides = array<i32>} : memref<64x36xf32, #tpu.memory_space<vmem>>, vector<4x4xf32>,
    %c0_749 = arith.constant 0 : index
    %c0_750 = arith.constant 0 : index
    %c1_751 = arith.constant 1 : index
    %c48_752 = arith.constant 48 : index
    %384 = vector.load %arg1[%c0_749, %c0_750, %c1_751, %c48_752] : memref<1x5x5x64xf32, #tpu.memory_space<vmem>>, vector<1x1x4x4xf32>
    %385 = vector.shape_cast %384 : vector<1x1x4x4xf32> to vector<4x4xf32>
    %c48_753 = arith.constant 48 : index
    %c20_754 = arith.constant 20 : index
    %386 = vector.load %arg8[%c48_753, %c20_754] : memref<64x36xf32, #tpu.memory_space<vmem>>, vector<4x4xf32>
    tpu.vector_store %arg8[%c48_753, %c20_754], %385 {strides = array<i32>} : memref<64x36xf32, #tpu.memory_space<vmem>>, vector<4x4xf32>,
    %c0_755 = arith.constant 0 : index
    %c1_756 = arith.constant 1 : index
    %c1_757 = arith.constant 1 : index
    %c48_758 = arith.constant 48 : index
    %387 = vector.load %arg1[%c0_755, %c1_756, %c1_757, %c48_758] : memref<1x5x5x64xf32, #tpu.memory_space<vmem>>, vector<1x1x4x4xf32>
    %388 = vector.shape_cast %387 : vector<1x1x4x4xf32> to vector<4x4xf32>
    %c52_759 = arith.constant 52 : index
    %c20_760 = arith.constant 20 : index
    %389 = vector.load %arg8[%c52_759, %c20_760] : memref<64x36xf32, #tpu.memory_space<vmem>>, vector<4x4xf32>
    tpu.vector_store %arg8[%c52_759, %c20_760], %388 {strides = array<i32>} : memref<64x36xf32, #tpu.memory_space<vmem>>, vector<4x4xf32>,
    %c0_761 = arith.constant 0 : index
    %c2_762 = arith.constant 2 : index
    %c1_763 = arith.constant 1 : index
    %c48_764 = arith.constant 48 : index
    %390 = vector.load %arg1[%c0_761, %c2_762, %c1_763, %c48_764] : memref<1x5x5x64xf32, #tpu.memory_space<vmem>>, vector<1x1x4x4xf32>
    %391 = vector.shape_cast %390 : vector<1x1x4x4xf32> to vector<4x4xf32>
    %c56_765 = arith.constant 56 : index
    %c20_766 = arith.constant 20 : index
    %392 = vector.load %arg8[%c56_765, %c20_766] : memref<64x36xf32, #tpu.memory_space<vmem>>, vector<4x4xf32>
    tpu.vector_store %arg8[%c56_765, %c20_766], %391 {strides = array<i32>} : memref<64x36xf32, #tpu.memory_space<vmem>>, vector<4x4xf32>,
    %c0_767 = arith.constant 0 : index
    %c3_768 = arith.constant 3 : index
    %c1_769 = arith.constant 1 : index
    %c48_770 = arith.constant 48 : index
    %393 = vector.load %arg1[%c0_767, %c3_768, %c1_769, %c48_770] : memref<1x5x5x64xf32, #tpu.memory_space<vmem>>, vector<1x1x4x4xf32>
    %394 = vector.shape_cast %393 : vector<1x1x4x4xf32> to vector<4x4xf32>
    %c60_771 = arith.constant 60 : index
    %c20_772 = arith.constant 20 : index
    %395 = vector.load %arg8[%c60_771, %c20_772] : memref<64x36xf32, #tpu.memory_space<vmem>>, vector<4x4xf32>
    tpu.vector_store %arg8[%c60_771, %c20_772], %394 {strides = array<i32>} : memref<64x36xf32, #tpu.memory_space<vmem>>, vector<4x4xf32>,
    %c0_773 = arith.constant 0 : index
    %c1_774 = arith.constant 1 : index
    %c0_775 = arith.constant 0 : index
    %c8_776 = arith.constant 8 : index
    %396 = vector.load %arg1[%c0_773, %c1_774, %c0_775, %c8_776] : memref<1x5x5x64xf32, #tpu.memory_space<vmem>>, vector<1x1x4x4xf32>
    %397 = vector.shape_cast %396 : vector<1x1x4x4xf32> to vector<4x4xf32>
    %c48_777 = arith.constant 48 : index
    %c24_778 = arith.constant 24 : index
    %398 = vector.load %arg8[%c48_777, %c24_778] : memref<64x36xf32, #tpu.memory_space<vmem>>, vector<4x4xf32>
    tpu.vector_store %arg8[%c48_777, %c24_778], %397 {strides = array<i32>} : memref<64x36xf32, #tpu.memory_space<vmem>>, vector<4x4xf32>,
    %c0_779 = arith.constant 0 : index
    %c2_780 = arith.constant 2 : index
    %c0_781 = arith.constant 0 : index
    %c8_782 = arith.constant 8 : index
    %399 = vector.load %arg1[%c0_779, %c2_780, %c0_781, %c8_782] : memref<1x5x5x64xf32, #tpu.memory_space<vmem>>, vector<1x1x4x4xf32>
    %400 = vector.shape_cast %399 : vector<1x1x4x4xf32> to vector<4x4xf32>
    %c52_783 = arith.constant 52 : index
    %c24_784 = arith.constant 24 : index
    %401 = vector.load %arg8[%c52_783, %c24_784] : memref<64x36xf32, #tpu.memory_space<vmem>>, vector<4x4xf32>
    tpu.vector_store %arg8[%c52_783, %c24_784], %400 {strides = array<i32>} : memref<64x36xf32, #tpu.memory_space<vmem>>, vector<4x4xf32>,
    %c0_785 = arith.constant 0 : index
    %c3_786 = arith.constant 3 : index
    %c0_787 = arith.constant 0 : index
    %c8_788 = arith.constant 8 : index
    %402 = vector.load %arg1[%c0_785, %c3_786, %c0_787, %c8_788] : memref<1x5x5x64xf32, #tpu.memory_space<vmem>>, vector<1x1x4x4xf32>
    %403 = vector.shape_cast %402 : vector<1x1x4x4xf32> to vector<4x4xf32>
    %c56_789 = arith.constant 56 : index
    %c24_790 = arith.constant 24 : index
    %404 = vector.load %arg8[%c56_789, %c24_790] : memref<64x36xf32, #tpu.memory_space<vmem>>, vector<4x4xf32>
    tpu.vector_store %arg8[%c56_789, %c24_790], %403 {strides = array<i32>} : memref<64x36xf32, #tpu.memory_space<vmem>>, vector<4x4xf32>,
    %c0_791 = arith.constant 0 : index
    %c4_792 = arith.constant 4 : index
    %c0_793 = arith.constant 0 : index
    %c8_794 = arith.constant 8 : index
    %405 = vector.load %arg1[%c0_791, %c4_792, %c0_793, %c8_794] : memref<1x5x5x64xf32, #tpu.memory_space<vmem>>, vector<1x1x4x4xf32>
    %406 = vector.shape_cast %405 : vector<1x1x4x4xf32> to vector<4x4xf32>
    %c60_795 = arith.constant 60 : index
    %c24_796 = arith.constant 24 : index
    %407 = vector.load %arg8[%c60_795, %c24_796] : memref<64x36xf32, #tpu.memory_space<vmem>>, vector<4x4xf32>
    tpu.vector_store %arg8[%c60_795, %c24_796], %406 {strides = array<i32>} : memref<64x36xf32, #tpu.memory_space<vmem>>, vector<4x4xf32>,
    %c0_797 = arith.constant 0 : index
    %c1_798 = arith.constant 1 : index
    %c0_799 = arith.constant 0 : index
    %c12_800 = arith.constant 12 : index
    %408 = vector.load %arg1[%c0_797, %c1_798, %c0_799, %c12_800] : memref<1x5x5x64xf32, #tpu.memory_space<vmem>>, vector<1x1x4x4xf32>
    %409 = vector.shape_cast %408 : vector<1x1x4x4xf32> to vector<4x4xf32>
    %c48_801 = arith.constant 48 : index
    %c28_802 = arith.constant 28 : index
    %410 = vector.load %arg8[%c48_801, %c28_802] : memref<64x36xf32, #tpu.memory_space<vmem>>, vector<4x4xf32>
    tpu.vector_store %arg8[%c48_801, %c28_802], %409 {strides = array<i32>} : memref<64x36xf32, #tpu.memory_space<vmem>>, vector<4x4xf32>,
    %c0_803 = arith.constant 0 : index
    %c2_804 = arith.constant 2 : index
    %c0_805 = arith.constant 0 : index
    %c12_806 = arith.constant 12 : index
    %411 = vector.load %arg1[%c0_803, %c2_804, %c0_805, %c12_806] : memref<1x5x5x64xf32, #tpu.memory_space<vmem>>, vector<1x1x4x4xf32>
    %412 = vector.shape_cast %411 : vector<1x1x4x4xf32> to vector<4x4xf32>
    %c52_807 = arith.constant 52 : index
    %c28_808 = arith.constant 28 : index
    %413 = vector.load %arg8[%c52_807, %c28_808] : memref<64x36xf32, #tpu.memory_space<vmem>>, vector<4x4xf32>
    tpu.vector_store %arg8[%c52_807, %c28_808], %412 {strides = array<i32>} : memref<64x36xf32, #tpu.memory_space<vmem>>, vector<4x4xf32>,
    %c0_809 = arith.constant 0 : index
    %c3_810 = arith.constant 3 : index
    %c0_811 = arith.constant 0 : index
    %c12_812 = arith.constant 12 : index
    %414 = vector.load %arg1[%c0_809, %c3_810, %c0_811, %c12_812] : memref<1x5x5x64xf32, #tpu.memory_space<vmem>>, vector<1x1x4x4xf32>
    %415 = vector.shape_cast %414 : vector<1x1x4x4xf32> to vector<4x4xf32>
    %c56_813 = arith.constant 56 : index
    %c28_814 = arith.constant 28 : index
    %416 = vector.load %arg8[%c56_813, %c28_814] : memref<64x36xf32, #tpu.memory_space<vmem>>, vector<4x4xf32>
    tpu.vector_store %arg8[%c56_813, %c28_814], %415 {strides = array<i32>} : memref<64x36xf32, #tpu.memory_space<vmem>>, vector<4x4xf32>,
    %c0_815 = arith.constant 0 : index
    %c4_816 = arith.constant 4 : index
    %c0_817 = arith.constant 0 : index
    %c12_818 = arith.constant 12 : index
    %417 = vector.load %arg1[%c0_815, %c4_816, %c0_817, %c12_818] : memref<1x5x5x64xf32, #tpu.memory_space<vmem>>, vector<1x1x4x4xf32>
    %418 = vector.shape_cast %417 : vector<1x1x4x4xf32> to vector<4x4xf32>
    %c60_819 = arith.constant 60 : index
    %c28_820 = arith.constant 28 : index
    %419 = vector.load %arg8[%c60_819, %c28_820] : memref<64x36xf32, #tpu.memory_space<vmem>>, vector<4x4xf32>
    tpu.vector_store %arg8[%c60_819, %c28_820], %418 {strides = array<i32>} : memref<64x36xf32, #tpu.memory_space<vmem>>, vector<4x4xf32>,
    %c0_821 = arith.constant 0 : index
    %c1_822 = arith.constant 1 : index
    %c1_823 = arith.constant 1 : index
    %c0_824 = arith.constant 0 : index
    %420 = vector.load %arg1[%c0_821, %c1_822, %c1_823, %c0_824] : memref<1x5x5x64xf32, #tpu.memory_space<vmem>>, vector<1x1x4x4xf32>
    %421 = vector.shape_cast %420 : vector<1x1x4x4xf32> to vector<4x4xf32>
    %c48_825 = arith.constant 48 : index
    %c32_826 = arith.constant 32 : index
    %422 = vector.load %arg8[%c48_825, %c32_826] : memref<64x36xf32, #tpu.memory_space<vmem>>, vector<4x4xf32>
    tpu.vector_store %arg8[%c48_825, %c32_826], %421 {strides = array<i32>} : memref<64x36xf32, #tpu.memory_space<vmem>>, vector<4x4xf32>,
    %c0_827 = arith.constant 0 : index
    %c2_828 = arith.constant 2 : index
    %c1_829 = arith.constant 1 : index
    %c0_830 = arith.constant 0 : index
    %423 = vector.load %arg1[%c0_827, %c2_828, %c1_829, %c0_830] : memref<1x5x5x64xf32, #tpu.memory_space<vmem>>, vector<1x1x4x4xf32>
    %424 = vector.shape_cast %423 : vector<1x1x4x4xf32> to vector<4x4xf32>
    %c52_831 = arith.constant 52 : index
    %c32_832 = arith.constant 32 : index
    %425 = vector.load %arg8[%c52_831, %c32_832] : memref<64x36xf32, #tpu.memory_space<vmem>>, vector<4x4xf32>
    tpu.vector_store %arg8[%c52_831, %c32_832], %424 {strides = array<i32>} : memref<64x36xf32, #tpu.memory_space<vmem>>, vector<4x4xf32>,
    %c0_833 = arith.constant 0 : index
    %c3_834 = arith.constant 3 : index
    %c1_835 = arith.constant 1 : index
    %c0_836 = arith.constant 0 : index
    %426 = vector.load %arg1[%c0_833, %c3_834, %c1_835, %c0_836] : memref<1x5x5x64xf32, #tpu.memory_space<vmem>>, vector<1x1x4x4xf32>
    %427 = vector.shape_cast %426 : vector<1x1x4x4xf32> to vector<4x4xf32>
    %c56_837 = arith.constant 56 : index
    %c32_838 = arith.constant 32 : index
    %428 = vector.load %arg8[%c56_837, %c32_838] : memref<64x36xf32, #tpu.memory_space<vmem>>, vector<4x4xf32>
    tpu.vector_store %arg8[%c56_837, %c32_838], %427 {strides = array<i32>} : memref<64x36xf32, #tpu.memory_space<vmem>>, vector<4x4xf32>,
    %c0_839 = arith.constant 0 : index
    %c4_840 = arith.constant 4 : index
    %c1_841 = arith.constant 1 : index
    %c0_842 = arith.constant 0 : index
    %429 = vector.load %arg1[%c0_839, %c4_840, %c1_841, %c0_842] : memref<1x5x5x64xf32, #tpu.memory_space<vmem>>, vector<1x1x4x4xf32>
    %430 = vector.shape_cast %429 : vector<1x1x4x4xf32> to vector<4x4xf32>
    %c60_843 = arith.constant 60 : index
    %c32_844 = arith.constant 32 : index
    %431 = vector.load %arg8[%c60_843, %c32_844] : memref<64x36xf32, #tpu.memory_space<vmem>>, vector<4x4xf32>
    tpu.vector_store %arg8[%c60_843, %c32_844], %430 {strides = array<i32>} : memref<64x36xf32, #tpu.memory_space<vmem>>, vector<4x4xf32>,
    %c0_845 = arith.constant 0 : index
    %c0_846 = arith.constant 0 : index
    %432 = vector.load %arg8[%c0_845, %c0_846] : memref<64x36xf32, #tpu.memory_space<vmem>>, vector<64x36xf32>
    %c0_847 = arith.constant 0 : index
    %c0_848 = arith.constant 0 : index
    %433 = vector.load %arg2[%c0_847, %c0_848] : memref<36x8xf32, #tpu.memory_space<vmem>>, vector<36x8xf32>
    %cst = arith.constant dense<0.000000e+00> : vector<64x8xf32>
    %434 = tpu.matmul %432, %433, %cst {dimension_numbers = #tpu.dot_dimension_numbers<[1], [0], [0], [1], [0, 0, 1, 1], [], []>, precision = #tpu.contract_precision<fp32>} : vector<64x36xf32>, vector<36x8xf32>, vector<64x8xf32> -> vector<64x8xf32>
    %c0_849 = arith.constant 0 : index
    %c0_850 = arith.constant 0 : index
    %435 = vector.load %arg3[%c0_849, %c0_850] : memref<1x8xf32, #tpu.memory_space<vmem>>, vector<1x8xf32>
    %436 = vector.broadcast %435 : vector<1x8xf32> to vector<64x8xf32>
    %437 = arith.addf %434, %436 : vector<64x8xf32>
    %c0_851 = arith.constant 0 : index
    %c0_852 = arith.constant 0 : index
    %c0_853 = arith.constant 0 : index
    %438 = vector.load %arg6[%c0_851, %c0_852, %c0_853] : memref<1x64x8xf32, #tpu.memory_space<vmem>>, vector<1x64x8xf32>
    %439 = vector.shape_cast %438 : vector<1x64x8xf32> to vector<64x8xf32>
    %440 = vector.shape_cast %437 : vector<64x8xf32> to vector<1x64x8xf32>
    tpu.vector_store %arg6[%c0_851, %c0_852, %c0_853], %440 {strides = array<i32>} : memref<1x64x8xf32, #tpu.memory_space<vmem>>, vector<1x64x8xf32>,
    %cst_854 = arith.constant 0.000000e+00 : f32
    %441 = vector.broadcast %cst_854 : f32 to vector<5x5x32xf32>
    %c0_855 = arith.constant 0 : index
    %c0_856 = arith.constant 0 : index
    %c0_857 = arith.constant 0 : index
    %442 = vector.load %arg9[%c0_855, %c0_856, %c0_857] : memref<5x5x32xf32, #tpu.memory_space<vmem>>, vector<5x5x32xf32>
    tpu.vector_store %arg9[%c0_855, %c0_856, %c0_857], %441 {strides = array<i32>} : memref<5x5x32xf32, #tpu.memory_space<vmem>>, vector<5x5x32xf32>,
    %cst_858 = arith.constant 0.000000e+00 : f32
    %443 = vector.broadcast %cst_858 : f32 to vector<64x8xf32>
    %444 = arith.maximumf %437, %443 : vector<64x8xf32>
    %445 = vector.extract_strided_slice %444 {offsets = [0, 0], sizes = [4, 8], strides = [1, 1]} : vector<64x8xf32> to vector<4x8xf32>
    %c0_859 = arith.constant 0 : index
    %c0_860 = arith.constant 0 : index
    %c24_861 = arith.constant 24 : index
    %446 = vector.load %arg9[%c0_859, %c0_860, %c24_861] : memref<5x5x32xf32, #tpu.memory_space<vmem>>, vector<1x4x8xf32>
    %447 = vector.shape_cast %446 : vector<1x4x8xf32> to vector<4x8xf32>
    %448 = vector.shape_cast %445 : vector<4x8xf32> to vector<1x4x8xf32>
    tpu.vector_store %arg9[%c0_859, %c0_860, %c24_861], %448 {strides = array<i32>} : memref<5x5x32xf32, #tpu.memory_space<vmem>>, vector<1x4x8xf32>,
    %449 = vector.extract_strided_slice %444 {offsets = [4, 0], sizes = [4, 8], strides = [1, 1]} : vector<64x8xf32> to vector<4x8xf32>
    %c1_862 = arith.constant 1 : index
    %c0_863 = arith.constant 0 : index
    %c24_864 = arith.constant 24 : index
    %450 = vector.load %arg9[%c1_862, %c0_863, %c24_864] : memref<5x5x32xf32, #tpu.memory_space<vmem>>, vector<1x4x8xf32>
    %451 = vector.shape_cast %450 : vector<1x4x8xf32> to vector<4x8xf32>
    %452 = vector.shape_cast %449 : vector<4x8xf32> to vector<1x4x8xf32>
    tpu.vector_store %arg9[%c1_862, %c0_863, %c24_864], %452 {strides = array<i32>} : memref<5x5x32xf32, #tpu.memory_space<vmem>>, vector<1x4x8xf32>,
    %453 = vector.extract_strided_slice %444 {offsets = [8, 0], sizes = [4, 8], strides = [1, 1]} : vector<64x8xf32> to vector<4x8xf32>
    %c2_865 = arith.constant 2 : index
    %c0_866 = arith.constant 0 : index
    %c24_867 = arith.constant 24 : index
    %454 = vector.load %arg9[%c2_865, %c0_866, %c24_867] : memref<5x5x32xf32, #tpu.memory_space<vmem>>, vector<1x4x8xf32>
    %455 = vector.shape_cast %454 : vector<1x4x8xf32> to vector<4x8xf32>
    %456 = vector.shape_cast %453 : vector<4x8xf32> to vector<1x4x8xf32>
    tpu.vector_store %arg9[%c2_865, %c0_866, %c24_867], %456 {strides = array<i32>} : memref<5x5x32xf32, #tpu.memory_space<vmem>>, vector<1x4x8xf32>,
    %457 = vector.extract_strided_slice %444 {offsets = [12, 0], sizes = [4, 8], strides = [1, 1]} : vector<64x8xf32> to vector<4x8xf32>
    %c3_868 = arith.constant 3 : index
    %c0_869 = arith.constant 0 : index
    %c24_870 = arith.constant 24 : index
    %458 = vector.load %arg9[%c3_868, %c0_869, %c24_870] : memref<5x5x32xf32, #tpu.memory_space<vmem>>, vector<1x4x8xf32>
    %459 = vector.shape_cast %458 : vector<1x4x8xf32> to vector<4x8xf32>
    %460 = vector.shape_cast %457 : vector<4x8xf32> to vector<1x4x8xf32>
    tpu.vector_store %arg9[%c3_868, %c0_869, %c24_870], %460 {strides = array<i32>} : memref<5x5x32xf32, #tpu.memory_space<vmem>>, vector<1x4x8xf32>,
    %461 = vector.extract_strided_slice %444 {offsets = [16, 0], sizes = [4, 8], strides = [1, 1]} : vector<64x8xf32> to vector<4x8xf32>
    %c0_871 = arith.constant 0 : index
    %c1_872 = arith.constant 1 : index
    %c16_873 = arith.constant 16 : index
    %462 = vector.load %arg9[%c0_871, %c1_872, %c16_873] : memref<5x5x32xf32, #tpu.memory_space<vmem>>, vector<1x4x8xf32>
    %463 = vector.shape_cast %462 : vector<1x4x8xf32> to vector<4x8xf32>
    %464 = vector.shape_cast %461 : vector<4x8xf32> to vector<1x4x8xf32>
    tpu.vector_store %arg9[%c0_871, %c1_872, %c16_873], %464 {strides = array<i32>} : memref<5x5x32xf32, #tpu.memory_space<vmem>>, vector<1x4x8xf32>,
    %465 = vector.extract_strided_slice %444 {offsets = [20, 0], sizes = [4, 8], strides = [1, 1]} : vector<64x8xf32> to vector<4x8xf32>
    %c1_874 = arith.constant 1 : index
    %c1_875 = arith.constant 1 : index
    %c16_876 = arith.constant 16 : index
    %466 = vector.load %arg9[%c1_874, %c1_875, %c16_876] : memref<5x5x32xf32, #tpu.memory_space<vmem>>, vector<1x4x8xf32>
    %467 = vector.shape_cast %466 : vector<1x4x8xf32> to vector<4x8xf32>
    %468 = vector.shape_cast %465 : vector<4x8xf32> to vector<1x4x8xf32>
    tpu.vector_store %arg9[%c1_874, %c1_875, %c16_876], %468 {strides = array<i32>} : memref<5x5x32xf32, #tpu.memory_space<vmem>>, vector<1x4x8xf32>,
    %469 = vector.extract_strided_slice %444 {offsets = [24, 0], sizes = [4, 8], strides = [1, 1]} : vector<64x8xf32> to vector<4x8xf32>
    %c2_877 = arith.constant 2 : index
    %c1_878 = arith.constant 1 : index
    %c16_879 = arith.constant 16 : index
    %470 = vector.load %arg9[%c2_877, %c1_878, %c16_879] : memref<5x5x32xf32, #tpu.memory_space<vmem>>, vector<1x4x8xf32>
    %471 = vector.shape_cast %470 : vector<1x4x8xf32> to vector<4x8xf32>
    %472 = vector.shape_cast %469 : vector<4x8xf32> to vector<1x4x8xf32>
    tpu.vector_store %arg9[%c2_877, %c1_878, %c16_879], %472 {strides = array<i32>} : memref<5x5x32xf32, #tpu.memory_space<vmem>>, vector<1x4x8xf32>,
    %473 = vector.extract_strided_slice %444 {offsets = [28, 0], sizes = [4, 8], strides = [1, 1]} : vector<64x8xf32> to vector<4x8xf32>
    %c3_880 = arith.constant 3 : index
    %c1_881 = arith.constant 1 : index
    %c16_882 = arith.constant 16 : index
    %474 = vector.load %arg9[%c3_880, %c1_881, %c16_882] : memref<5x5x32xf32, #tpu.memory_space<vmem>>, vector<1x4x8xf32>
    %475 = vector.shape_cast %474 : vector<1x4x8xf32> to vector<4x8xf32>
    %476 = vector.shape_cast %473 : vector<4x8xf32> to vector<1x4x8xf32>
    tpu.vector_store %arg9[%c3_880, %c1_881, %c16_882], %476 {strides = array<i32>} : memref<5x5x32xf32, #tpu.memory_space<vmem>>, vector<1x4x8xf32>,
    %477 = vector.extract_strided_slice %444 {offsets = [32, 0], sizes = [4, 8], strides = [1, 1]} : vector<64x8xf32> to vector<4x8xf32>
    %c1_883 = arith.constant 1 : index
    %c0_884 = arith.constant 0 : index
    %c8_885 = arith.constant 8 : index
    %478 = vector.load %arg9[%c1_883, %c0_884, %c8_885] : memref<5x5x32xf32, #tpu.memory_space<vmem>>, vector<1x4x8xf32>
    %479 = vector.shape_cast %478 : vector<1x4x8xf32> to vector<4x8xf32>
    %480 = vector.shape_cast %477 : vector<4x8xf32> to vector<1x4x8xf32>
    tpu.vector_store %arg9[%c1_883, %c0_884, %c8_885], %480 {strides = array<i32>} : memref<5x5x32xf32, #tpu.memory_space<vmem>>, vector<1x4x8xf32>,
    %481 = vector.extract_strided_slice %444 {offsets = [36, 0], sizes = [4, 8], strides = [1, 1]} : vector<64x8xf32> to vector<4x8xf32>
    %c2_886 = arith.constant 2 : index
    %c0_887 = arith.constant 0 : index
    %c8_888 = arith.constant 8 : index
    %482 = vector.load %arg9[%c2_886, %c0_887, %c8_888] : memref<5x5x32xf32, #tpu.memory_space<vmem>>, vector<1x4x8xf32>
    %483 = vector.shape_cast %482 : vector<1x4x8xf32> to vector<4x8xf32>
    %484 = vector.shape_cast %481 : vector<4x8xf32> to vector<1x4x8xf32>
    tpu.vector_store %arg9[%c2_886, %c0_887, %c8_888], %484 {strides = array<i32>} : memref<5x5x32xf32, #tpu.memory_space<vmem>>, vector<1x4x8xf32>,
    %485 = vector.extract_strided_slice %444 {offsets = [40, 0], sizes = [4, 8], strides = [1, 1]} : vector<64x8xf32> to vector<4x8xf32>
    %c3_889 = arith.constant 3 : index
    %c0_890 = arith.constant 0 : index
    %c8_891 = arith.constant 8 : index
    %486 = vector.load %arg9[%c3_889, %c0_890, %c8_891] : memref<5x5x32xf32, #tpu.memory_space<vmem>>, vector<1x4x8xf32>
    %487 = vector.shape_cast %486 : vector<1x4x8xf32> to vector<4x8xf32>
    %488 = vector.shape_cast %485 : vector<4x8xf32> to vector<1x4x8xf32>
    tpu.vector_store %arg9[%c3_889, %c0_890, %c8_891], %488 {strides = array<i32>} : memref<5x5x32xf32, #tpu.memory_space<vmem>>, vector<1x4x8xf32>,
    %489 = vector.extract_strided_slice %444 {offsets = [44, 0], sizes = [4, 8], strides = [1, 1]} : vector<64x8xf32> to vector<4x8xf32>
    %c4_892 = arith.constant 4 : index
    %c0_893 = arith.constant 0 : index
    %c8_894 = arith.constant 8 : index
    %490 = vector.load %arg9[%c4_892, %c0_893, %c8_894] : memref<5x5x32xf32, #tpu.memory_space<vmem>>, vector<1x4x8xf32>
    %491 = vector.shape_cast %490 : vector<1x4x8xf32> to vector<4x8xf32>
    %492 = vector.shape_cast %489 : vector<4x8xf32> to vector<1x4x8xf32>
    tpu.vector_store %arg9[%c4_892, %c0_893, %c8_894], %492 {strides = array<i32>} : memref<5x5x32xf32, #tpu.memory_space<vmem>>, vector<1x4x8xf32>,
    %493 = vector.extract_strided_slice %444 {offsets = [48, 0], sizes = [4, 8], strides = [1, 1]} : vector<64x8xf32> to vector<4x8xf32>
    %c1_895 = arith.constant 1 : index
    %c1_896 = arith.constant 1 : index
    %c0_897 = arith.constant 0 : index
    %494 = vector.load %arg9[%c1_895, %c1_896, %c0_897] : memref<5x5x32xf32, #tpu.memory_space<vmem>>, vector<1x4x8xf32>
    %495 = vector.shape_cast %494 : vector<1x4x8xf32> to vector<4x8xf32>
    %496 = vector.shape_cast %493 : vector<4x8xf32> to vector<1x4x8xf32>
    tpu.vector_store %arg9[%c1_895, %c1_896, %c0_897], %496 {strides = array<i32>} : memref<5x5x32xf32, #tpu.memory_space<vmem>>, vector<1x4x8xf32>,
    %497 = vector.extract_strided_slice %444 {offsets = [52, 0], sizes = [4, 8], strides = [1, 1]} : vector<64x8xf32> to vector<4x8xf32>
    %c2_898 = arith.constant 2 : index
    %c1_899 = arith.constant 1 : index
    %c0_900 = arith.constant 0 : index
    %498 = vector.load %arg9[%c2_898, %c1_899, %c0_900] : memref<5x5x32xf32, #tpu.memory_space<vmem>>, vector<1x4x8xf32>
    %499 = vector.shape_cast %498 : vector<1x4x8xf32> to vector<4x8xf32>
    %500 = vector.shape_cast %497 : vector<4x8xf32> to vector<1x4x8xf32>
    tpu.vector_store %arg9[%c2_898, %c1_899, %c0_900], %500 {strides = array<i32>} : memref<5x5x32xf32, #tpu.memory_space<vmem>>, vector<1x4x8xf32>,
    %501 = vector.extract_strided_slice %444 {offsets = [56, 0], sizes = [4, 8], strides = [1, 1]} : vector<64x8xf32> to vector<4x8xf32>
    %c3_901 = arith.constant 3 : index
    %c1_902 = arith.constant 1 : index
    %c0_903 = arith.constant 0 : index
    %502 = vector.load %arg9[%c3_901, %c1_902, %c0_903] : memref<5x5x32xf32, #tpu.memory_space<vmem>>, vector<1x4x8xf32>
    %503 = vector.shape_cast %502 : vector<1x4x8xf32> to vector<4x8xf32>
    %504 = vector.shape_cast %501 : vector<4x8xf32> to vector<1x4x8xf32>
    tpu.vector_store %arg9[%c3_901, %c1_902, %c0_903], %504 {strides = array<i32>} : memref<5x5x32xf32, #tpu.memory_space<vmem>>, vector<1x4x8xf32>,
    %505 = vector.extract_strided_slice %444 {offsets = [60, 0], sizes = [4, 8], strides = [1, 1]} : vector<64x8xf32> to vector<4x8xf32>
    %c4_904 = arith.constant 4 : index
    %c1_905 = arith.constant 1 : index
    %c0_906 = arith.constant 0 : index
    %506 = vector.load %arg9[%c4_904, %c1_905, %c0_906] : memref<5x5x32xf32, #tpu.memory_space<vmem>>, vector<1x4x8xf32>
    %507 = vector.shape_cast %506 : vector<1x4x8xf32> to vector<4x8xf32>
    %508 = vector.shape_cast %505 : vector<4x8xf32> to vector<1x4x8xf32>
    tpu.vector_store %arg9[%c4_904, %c1_905, %c0_906], %508 {strides = array<i32>} : memref<5x5x32xf32, #tpu.memory_space<vmem>>, vector<1x4x8xf32>,
    %c0_907 = arith.constant 0 : index
    %c0_908 = arith.constant 0 : index
    %c0_909 = arith.constant 0 : index
    %509 = vector.load %arg9[%c0_907, %c0_908, %c0_909] : memref<5x5x32xf32, #tpu.memory_space<vmem>>, vector<1x4x8xf32>
    %510 = vector.shape_cast %509 : vector<1x4x8xf32> to vector<4x8xf32>
    %c0_910 = arith.constant 0 : index
    %c0_911 = arith.constant 0 : index
    %511 = vector.load %arg10[%c0_910, %c0_911] : memref<16x72xf32, #tpu.memory_space<vmem>>, vector<4x8xf32>
    tpu.vector_store %arg10[%c0_910, %c0_911], %510 {strides = array<i32>} : memref<16x72xf32, #tpu.memory_space<vmem>>, vector<4x8xf32>,
    %c1_912 = arith.constant 1 : index
    %c0_913 = arith.constant 0 : index
    %c0_914 = arith.constant 0 : index
    %512 = vector.load %arg9[%c1_912, %c0_913, %c0_914] : memref<5x5x32xf32, #tpu.memory_space<vmem>>, vector<1x4x8xf32>
    %513 = vector.shape_cast %512 : vector<1x4x8xf32> to vector<4x8xf32>
    %c4_915 = arith.constant 4 : index
    %c0_916 = arith.constant 0 : index
    %514 = vector.load %arg10[%c4_915, %c0_916] : memref<16x72xf32, #tpu.memory_space<vmem>>, vector<4x8xf32>
    tpu.vector_store %arg10[%c4_915, %c0_916], %513 {strides = array<i32>} : memref<16x72xf32, #tpu.memory_space<vmem>>, vector<4x8xf32>,
    %c2_917 = arith.constant 2 : index
    %c0_918 = arith.constant 0 : index
    %c0_919 = arith.constant 0 : index
    %515 = vector.load %arg9[%c2_917, %c0_918, %c0_919] : memref<5x5x32xf32, #tpu.memory_space<vmem>>, vector<1x4x8xf32>
    %516 = vector.shape_cast %515 : vector<1x4x8xf32> to vector<4x8xf32>
    %c8_920 = arith.constant 8 : index
    %c0_921 = arith.constant 0 : index
    %517 = vector.load %arg10[%c8_920, %c0_921] : memref<16x72xf32, #tpu.memory_space<vmem>>, vector<4x8xf32>
    tpu.vector_store %arg10[%c8_920, %c0_921], %516 {strides = array<i32>} : memref<16x72xf32, #tpu.memory_space<vmem>>, vector<4x8xf32>,
    %c3_922 = arith.constant 3 : index
    %c0_923 = arith.constant 0 : index
    %c0_924 = arith.constant 0 : index
    %518 = vector.load %arg9[%c3_922, %c0_923, %c0_924] : memref<5x5x32xf32, #tpu.memory_space<vmem>>, vector<1x4x8xf32>
    %519 = vector.shape_cast %518 : vector<1x4x8xf32> to vector<4x8xf32>
    %c12_925 = arith.constant 12 : index
    %c0_926 = arith.constant 0 : index
    %520 = vector.load %arg10[%c12_925, %c0_926] : memref<16x72xf32, #tpu.memory_space<vmem>>, vector<4x8xf32>
    tpu.vector_store %arg10[%c12_925, %c0_926], %519 {strides = array<i32>} : memref<16x72xf32, #tpu.memory_space<vmem>>, vector<4x8xf32>,
    %c0_927 = arith.constant 0 : index
    %c0_928 = arith.constant 0 : index
    %c8_929 = arith.constant 8 : index
    %521 = vector.load %arg9[%c0_927, %c0_928, %c8_929] : memref<5x5x32xf32, #tpu.memory_space<vmem>>, vector<1x4x8xf32>
    %522 = vector.shape_cast %521 : vector<1x4x8xf32> to vector<4x8xf32>
    %c0_930 = arith.constant 0 : index
    %c8_931 = arith.constant 8 : index
    %523 = vector.load %arg10[%c0_930, %c8_931] : memref<16x72xf32, #tpu.memory_space<vmem>>, vector<4x8xf32>
    tpu.vector_store %arg10[%c0_930, %c8_931], %522 {strides = array<i32>} : memref<16x72xf32, #tpu.memory_space<vmem>>, vector<4x8xf32>,
    %c1_932 = arith.constant 1 : index
    %c0_933 = arith.constant 0 : index
    %c8_934 = arith.constant 8 : index
    %524 = vector.load %arg9[%c1_932, %c0_933, %c8_934] : memref<5x5x32xf32, #tpu.memory_space<vmem>>, vector<1x4x8xf32>
    %525 = vector.shape_cast %524 : vector<1x4x8xf32> to vector<4x8xf32>
    %c4_935 = arith.constant 4 : index
    %c8_936 = arith.constant 8 : index
    %526 = vector.load %arg10[%c4_935, %c8_936] : memref<16x72xf32, #tpu.memory_space<vmem>>, vector<4x8xf32>
    tpu.vector_store %arg10[%c4_935, %c8_936], %525 {strides = array<i32>} : memref<16x72xf32, #tpu.memory_space<vmem>>, vector<4x8xf32>,
    %c2_937 = arith.constant 2 : index
    %c0_938 = arith.constant 0 : index
    %c8_939 = arith.constant 8 : index
    %527 = vector.load %arg9[%c2_937, %c0_938, %c8_939] : memref<5x5x32xf32, #tpu.memory_space<vmem>>, vector<1x4x8xf32>
    %528 = vector.shape_cast %527 : vector<1x4x8xf32> to vector<4x8xf32>
    %c8_940 = arith.constant 8 : index
    %c8_941 = arith.constant 8 : index
    %529 = vector.load %arg10[%c8_940, %c8_941] : memref<16x72xf32, #tpu.memory_space<vmem>>, vector<4x8xf32>
    tpu.vector_store %arg10[%c8_940, %c8_941], %528 {strides = array<i32>} : memref<16x72xf32, #tpu.memory_space<vmem>>, vector<4x8xf32>,
    %c3_942 = arith.constant 3 : index
    %c0_943 = arith.constant 0 : index
    %c8_944 = arith.constant 8 : index
    %530 = vector.load %arg9[%c3_942, %c0_943, %c8_944] : memref<5x5x32xf32, #tpu.memory_space<vmem>>, vector<1x4x8xf32>
    %531 = vector.shape_cast %530 : vector<1x4x8xf32> to vector<4x8xf32>
    %c12_945 = arith.constant 12 : index
    %c8_946 = arith.constant 8 : index
    %532 = vector.load %arg10[%c12_945, %c8_946] : memref<16x72xf32, #tpu.memory_space<vmem>>, vector<4x8xf32>
    tpu.vector_store %arg10[%c12_945, %c8_946], %531 {strides = array<i32>} : memref<16x72xf32, #tpu.memory_space<vmem>>, vector<4x8xf32>,
    %c0_947 = arith.constant 0 : index
    %c1_948 = arith.constant 1 : index
    %c0_949 = arith.constant 0 : index
    %533 = vector.load %arg9[%c0_947, %c1_948, %c0_949] : memref<5x5x32xf32, #tpu.memory_space<vmem>>, vector<1x4x8xf32>
    %534 = vector.shape_cast %533 : vector<1x4x8xf32> to vector<4x8xf32>
    %c0_950 = arith.constant 0 : index
    %c16_951 = arith.constant 16 : index
    %535 = vector.load %arg10[%c0_950, %c16_951] : memref<16x72xf32, #tpu.memory_space<vmem>>, vector<4x8xf32>
    tpu.vector_store %arg10[%c0_950, %c16_951], %534 {strides = array<i32>} : memref<16x72xf32, #tpu.memory_space<vmem>>, vector<4x8xf32>,
    %c1_952 = arith.constant 1 : index
    %c1_953 = arith.constant 1 : index
    %c0_954 = arith.constant 0 : index
    %536 = vector.load %arg9[%c1_952, %c1_953, %c0_954] : memref<5x5x32xf32, #tpu.memory_space<vmem>>, vector<1x4x8xf32>
    %537 = vector.shape_cast %536 : vector<1x4x8xf32> to vector<4x8xf32>
    %c4_955 = arith.constant 4 : index
    %c16_956 = arith.constant 16 : index
    %538 = vector.load %arg10[%c4_955, %c16_956] : memref<16x72xf32, #tpu.memory_space<vmem>>, vector<4x8xf32>
    tpu.vector_store %arg10[%c4_955, %c16_956], %537 {strides = array<i32>} : memref<16x72xf32, #tpu.memory_space<vmem>>, vector<4x8xf32>,
    %c2_957 = arith.constant 2 : index
    %c1_958 = arith.constant 1 : index
    %c0_959 = arith.constant 0 : index
    %539 = vector.load %arg9[%c2_957, %c1_958, %c0_959] : memref<5x5x32xf32, #tpu.memory_space<vmem>>, vector<1x4x8xf32>
    %540 = vector.shape_cast %539 : vector<1x4x8xf32> to vector<4x8xf32>
    %c8_960 = arith.constant 8 : index
    %c16_961 = arith.constant 16 : index
    %541 = vector.load %arg10[%c8_960, %c16_961] : memref<16x72xf32, #tpu.memory_space<vmem>>, vector<4x8xf32>
    tpu.vector_store %arg10[%c8_960, %c16_961], %540 {strides = array<i32>} : memref<16x72xf32, #tpu.memory_space<vmem>>, vector<4x8xf32>,
    %c3_962 = arith.constant 3 : index
    %c1_963 = arith.constant 1 : index
    %c0_964 = arith.constant 0 : index
    %542 = vector.load %arg9[%c3_962, %c1_963, %c0_964] : memref<5x5x32xf32, #tpu.memory_space<vmem>>, vector<1x4x8xf32>
    %543 = vector.shape_cast %542 : vector<1x4x8xf32> to vector<4x8xf32>
    %c12_965 = arith.constant 12 : index
    %c16_966 = arith.constant 16 : index
    %544 = vector.load %arg10[%c12_965, %c16_966] : memref<16x72xf32, #tpu.memory_space<vmem>>, vector<4x8xf32>
    tpu.vector_store %arg10[%c12_965, %c16_966], %543 {strides = array<i32>} : memref<16x72xf32, #tpu.memory_space<vmem>>, vector<4x8xf32>,
    %c0_967 = arith.constant 0 : index
    %c0_968 = arith.constant 0 : index
    %c16_969 = arith.constant 16 : index
    %545 = vector.load %arg9[%c0_967, %c0_968, %c16_969] : memref<5x5x32xf32, #tpu.memory_space<vmem>>, vector<1x4x8xf32>
    %546 = vector.shape_cast %545 : vector<1x4x8xf32> to vector<4x8xf32>
    %c0_970 = arith.constant 0 : index
    %c24_971 = arith.constant 24 : index
    %547 = vector.load %arg10[%c0_970, %c24_971] : memref<16x72xf32, #tpu.memory_space<vmem>>, vector<4x8xf32>
    tpu.vector_store %arg10[%c0_970, %c24_971], %546 {strides = array<i32>} : memref<16x72xf32, #tpu.memory_space<vmem>>, vector<4x8xf32>,
    %c1_972 = arith.constant 1 : index
    %c0_973 = arith.constant 0 : index
    %c16_974 = arith.constant 16 : index
    %548 = vector.load %arg9[%c1_972, %c0_973, %c16_974] : memref<5x5x32xf32, #tpu.memory_space<vmem>>, vector<1x4x8xf32>
    %549 = vector.shape_cast %548 : vector<1x4x8xf32> to vector<4x8xf32>
    %c4_975 = arith.constant 4 : index
    %c24_976 = arith.constant 24 : index
    %550 = vector.load %arg10[%c4_975, %c24_976] : memref<16x72xf32, #tpu.memory_space<vmem>>, vector<4x8xf32>
    tpu.vector_store %arg10[%c4_975, %c24_976], %549 {strides = array<i32>} : memref<16x72xf32, #tpu.memory_space<vmem>>, vector<4x8xf32>,
    %c2_977 = arith.constant 2 : index
    %c0_978 = arith.constant 0 : index
    %c16_979 = arith.constant 16 : index
    %551 = vector.load %arg9[%c2_977, %c0_978, %c16_979] : memref<5x5x32xf32, #tpu.memory_space<vmem>>, vector<1x4x8xf32>
    %552 = vector.shape_cast %551 : vector<1x4x8xf32> to vector<4x8xf32>
    %c8_980 = arith.constant 8 : index
    %c24_981 = arith.constant 24 : index
    %553 = vector.load %arg10[%c8_980, %c24_981] : memref<16x72xf32, #tpu.memory_space<vmem>>, vector<4x8xf32>
    tpu.vector_store %arg10[%c8_980, %c24_981], %552 {strides = array<i32>} : memref<16x72xf32, #tpu.memory_space<vmem>>, vector<4x8xf32>,
    %c3_982 = arith.constant 3 : index
    %c0_983 = arith.constant 0 : index
    %c16_984 = arith.constant 16 : index
    %554 = vector.load %arg9[%c3_982, %c0_983, %c16_984] : memref<5x5x32xf32, #tpu.memory_space<vmem>>, vector<1x4x8xf32>
    %555 = vector.shape_cast %554 : vector<1x4x8xf32> to vector<4x8xf32>
    %c12_985 = arith.constant 12 : index
    %c24_986 = arith.constant 24 : index
    %556 = vector.load %arg10[%c12_985, %c24_986] : memref<16x72xf32, #tpu.memory_space<vmem>>, vector<4x8xf32>
    tpu.vector_store %arg10[%c12_985, %c24_986], %555 {strides = array<i32>} : memref<16x72xf32, #tpu.memory_space<vmem>>, vector<4x8xf32>,
    %c0_987 = arith.constant 0 : index
    %c0_988 = arith.constant 0 : index
    %c24_989 = arith.constant 24 : index
    %557 = vector.load %arg9[%c0_987, %c0_988, %c24_989] : memref<5x5x32xf32, #tpu.memory_space<vmem>>, vector<1x4x8xf32>
    %558 = vector.shape_cast %557 : vector<1x4x8xf32> to vector<4x8xf32>
    %c0_990 = arith.constant 0 : index
    %c32_991 = arith.constant 32 : index
    %559 = vector.load %arg10[%c0_990, %c32_991] : memref<16x72xf32, #tpu.memory_space<vmem>>, vector<4x8xf32>
    tpu.vector_store %arg10[%c0_990, %c32_991], %558 {strides = array<i32>} : memref<16x72xf32, #tpu.memory_space<vmem>>, vector<4x8xf32>,
    %c1_992 = arith.constant 1 : index
    %c0_993 = arith.constant 0 : index
    %c24_994 = arith.constant 24 : index
    %560 = vector.load %arg9[%c1_992, %c0_993, %c24_994] : memref<5x5x32xf32, #tpu.memory_space<vmem>>, vector<1x4x8xf32>
    %561 = vector.shape_cast %560 : vector<1x4x8xf32> to vector<4x8xf32>
    %c4_995 = arith.constant 4 : index
    %c32_996 = arith.constant 32 : index
    %562 = vector.load %arg10[%c4_995, %c32_996] : memref<16x72xf32, #tpu.memory_space<vmem>>, vector<4x8xf32>
    tpu.vector_store %arg10[%c4_995, %c32_996], %561 {strides = array<i32>} : memref<16x72xf32, #tpu.memory_space<vmem>>, vector<4x8xf32>,
    %c2_997 = arith.constant 2 : index
    %c0_998 = arith.constant 0 : index
    %c24_999 = arith.constant 24 : index
    %563 = vector.load %arg9[%c2_997, %c0_998, %c24_999] : memref<5x5x32xf32, #tpu.memory_space<vmem>>, vector<1x4x8xf32>
    %564 = vector.shape_cast %563 : vector<1x4x8xf32> to vector<4x8xf32>
    %c8_1000 = arith.constant 8 : index
    %c32_1001 = arith.constant 32 : index
    %565 = vector.load %arg10[%c8_1000, %c32_1001] : memref<16x72xf32, #tpu.memory_space<vmem>>, vector<4x8xf32>
    tpu.vector_store %arg10[%c8_1000, %c32_1001], %564 {strides = array<i32>} : memref<16x72xf32, #tpu.memory_space<vmem>>, vector<4x8xf32>,
    %c3_1002 = arith.constant 3 : index
    %c0_1003 = arith.constant 0 : index
    %c24_1004 = arith.constant 24 : index
    %566 = vector.load %arg9[%c3_1002, %c0_1003, %c24_1004] : memref<5x5x32xf32, #tpu.memory_space<vmem>>, vector<1x4x8xf32>
    %567 = vector.shape_cast %566 : vector<1x4x8xf32> to vector<4x8xf32>
    %c12_1005 = arith.constant 12 : index
    %c32_1006 = arith.constant 32 : index
    %568 = vector.load %arg10[%c12_1005, %c32_1006] : memref<16x72xf32, #tpu.memory_space<vmem>>, vector<4x8xf32>
    tpu.vector_store %arg10[%c12_1005, %c32_1006], %567 {strides = array<i32>} : memref<16x72xf32, #tpu.memory_space<vmem>>, vector<4x8xf32>,
    %c0_1007 = arith.constant 0 : index
    %c1_1008 = arith.constant 1 : index
    %c16_1009 = arith.constant 16 : index
    %569 = vector.load %arg9[%c0_1007, %c1_1008, %c16_1009] : memref<5x5x32xf32, #tpu.memory_space<vmem>>, vector<1x4x8xf32>
    %570 = vector.shape_cast %569 : vector<1x4x8xf32> to vector<4x8xf32>
    %c0_1010 = arith.constant 0 : index
    %c40_1011 = arith.constant 40 : index
    %571 = vector.load %arg10[%c0_1010, %c40_1011] : memref<16x72xf32, #tpu.memory_space<vmem>>, vector<4x8xf32>
    tpu.vector_store %arg10[%c0_1010, %c40_1011], %570 {strides = array<i32>} : memref<16x72xf32, #tpu.memory_space<vmem>>, vector<4x8xf32>,
    %c1_1012 = arith.constant 1 : index
    %c1_1013 = arith.constant 1 : index
    %c16_1014 = arith.constant 16 : index
    %572 = vector.load %arg9[%c1_1012, %c1_1013, %c16_1014] : memref<5x5x32xf32, #tpu.memory_space<vmem>>, vector<1x4x8xf32>
    %573 = vector.shape_cast %572 : vector<1x4x8xf32> to vector<4x8xf32>
    %c4_1015 = arith.constant 4 : index
    %c40_1016 = arith.constant 40 : index
    %574 = vector.load %arg10[%c4_1015, %c40_1016] : memref<16x72xf32, #tpu.memory_space<vmem>>, vector<4x8xf32>
    tpu.vector_store %arg10[%c4_1015, %c40_1016], %573 {strides = array<i32>} : memref<16x72xf32, #tpu.memory_space<vmem>>, vector<4x8xf32>,
    %c2_1017 = arith.constant 2 : index
    %c1_1018 = arith.constant 1 : index
    %c16_1019 = arith.constant 16 : index
    %575 = vector.load %arg9[%c2_1017, %c1_1018, %c16_1019] : memref<5x5x32xf32, #tpu.memory_space<vmem>>, vector<1x4x8xf32>
    %576 = vector.shape_cast %575 : vector<1x4x8xf32> to vector<4x8xf32>
    %c8_1020 = arith.constant 8 : index
    %c40_1021 = arith.constant 40 : index
    %577 = vector.load %arg10[%c8_1020, %c40_1021] : memref<16x72xf32, #tpu.memory_space<vmem>>, vector<4x8xf32>
    tpu.vector_store %arg10[%c8_1020, %c40_1021], %576 {strides = array<i32>} : memref<16x72xf32, #tpu.memory_space<vmem>>, vector<4x8xf32>,
    %c3_1022 = arith.constant 3 : index
    %c1_1023 = arith.constant 1 : index
    %c16_1024 = arith.constant 16 : index
    %578 = vector.load %arg9[%c3_1022, %c1_1023, %c16_1024] : memref<5x5x32xf32, #tpu.memory_space<vmem>>, vector<1x4x8xf32>
    %579 = vector.shape_cast %578 : vector<1x4x8xf32> to vector<4x8xf32>
    %c12_1025 = arith.constant 12 : index
    %c40_1026 = arith.constant 40 : index
    %580 = vector.load %arg10[%c12_1025, %c40_1026] : memref<16x72xf32, #tpu.memory_space<vmem>>, vector<4x8xf32>
    tpu.vector_store %arg10[%c12_1025, %c40_1026], %579 {strides = array<i32>} : memref<16x72xf32, #tpu.memory_space<vmem>>, vector<4x8xf32>,
    %c1_1027 = arith.constant 1 : index
    %c0_1028 = arith.constant 0 : index
    %c0_1029 = arith.constant 0 : index
    %581 = vector.load %arg9[%c1_1027, %c0_1028, %c0_1029] : memref<5x5x32xf32, #tpu.memory_space<vmem>>, vector<1x4x8xf32>
    %582 = vector.shape_cast %581 : vector<1x4x8xf32> to vector<4x8xf32>
    %c0_1030 = arith.constant 0 : index
    %c48_1031 = arith.constant 48 : index
    %583 = vector.load %arg10[%c0_1030, %c48_1031] : memref<16x72xf32, #tpu.memory_space<vmem>>, vector<4x8xf32>
    tpu.vector_store %arg10[%c0_1030, %c48_1031], %582 {strides = array<i32>} : memref<16x72xf32, #tpu.memory_space<vmem>>, vector<4x8xf32>,
    %c2_1032 = arith.constant 2 : index
    %c0_1033 = arith.constant 0 : index
    %c0_1034 = arith.constant 0 : index
    %584 = vector.load %arg9[%c2_1032, %c0_1033, %c0_1034] : memref<5x5x32xf32, #tpu.memory_space<vmem>>, vector<1x4x8xf32>
    %585 = vector.shape_cast %584 : vector<1x4x8xf32> to vector<4x8xf32>
    %c4_1035 = arith.constant 4 : index
    %c48_1036 = arith.constant 48 : index
    %586 = vector.load %arg10[%c4_1035, %c48_1036] : memref<16x72xf32, #tpu.memory_space<vmem>>, vector<4x8xf32>
    tpu.vector_store %arg10[%c4_1035, %c48_1036], %585 {strides = array<i32>} : memref<16x72xf32, #tpu.memory_space<vmem>>, vector<4x8xf32>,
    %c3_1037 = arith.constant 3 : index
    %c0_1038 = arith.constant 0 : index
    %c0_1039 = arith.constant 0 : index
    %587 = vector.load %arg9[%c3_1037, %c0_1038, %c0_1039] : memref<5x5x32xf32, #tpu.memory_space<vmem>>, vector<1x4x8xf32>
    %588 = vector.shape_cast %587 : vector<1x4x8xf32> to vector<4x8xf32>
    %c8_1040 = arith.constant 8 : index
    %c48_1041 = arith.constant 48 : index
    %589 = vector.load %arg10[%c8_1040, %c48_1041] : memref<16x72xf32, #tpu.memory_space<vmem>>, vector<4x8xf32>
    tpu.vector_store %arg10[%c8_1040, %c48_1041], %588 {strides = array<i32>} : memref<16x72xf32, #tpu.memory_space<vmem>>, vector<4x8xf32>,
    %c4_1042 = arith.constant 4 : index
    %c0_1043 = arith.constant 0 : index
    %c0_1044 = arith.constant 0 : index
    %590 = vector.load %arg9[%c4_1042, %c0_1043, %c0_1044] : memref<5x5x32xf32, #tpu.memory_space<vmem>>, vector<1x4x8xf32>
    %591 = vector.shape_cast %590 : vector<1x4x8xf32> to vector<4x8xf32>
    %c12_1045 = arith.constant 12 : index
    %c48_1046 = arith.constant 48 : index
    %592 = vector.load %arg10[%c12_1045, %c48_1046] : memref<16x72xf32, #tpu.memory_space<vmem>>, vector<4x8xf32>
    tpu.vector_store %arg10[%c12_1045, %c48_1046], %591 {strides = array<i32>} : memref<16x72xf32, #tpu.memory_space<vmem>>, vector<4x8xf32>,
    %c1_1047 = arith.constant 1 : index
    %c0_1048 = arith.constant 0 : index
    %c8_1049 = arith.constant 8 : index
    %593 = vector.load %arg9[%c1_1047, %c0_1048, %c8_1049] : memref<5x5x32xf32, #tpu.memory_space<vmem>>, vector<1x4x8xf32>
    %594 = vector.shape_cast %593 : vector<1x4x8xf32> to vector<4x8xf32>
    %c0_1050 = arith.constant 0 : index
    %c56_1051 = arith.constant 56 : index
    %595 = vector.load %arg10[%c0_1050, %c56_1051] : memref<16x72xf32, #tpu.memory_space<vmem>>, vector<4x8xf32>
    tpu.vector_store %arg10[%c0_1050, %c56_1051], %594 {strides = array<i32>} : memref<16x72xf32, #tpu.memory_space<vmem>>, vector<4x8xf32>,
    %c2_1052 = arith.constant 2 : index
    %c0_1053 = arith.constant 0 : index
    %c8_1054 = arith.constant 8 : index
    %596 = vector.load %arg9[%c2_1052, %c0_1053, %c8_1054] : memref<5x5x32xf32, #tpu.memory_space<vmem>>, vector<1x4x8xf32>
    %597 = vector.shape_cast %596 : vector<1x4x8xf32> to vector<4x8xf32>
    %c4_1055 = arith.constant 4 : index
    %c56_1056 = arith.constant 56 : index
    %598 = vector.load %arg10[%c4_1055, %c56_1056] : memref<16x72xf32, #tpu.memory_space<vmem>>, vector<4x8xf32>
    tpu.vector_store %arg10[%c4_1055, %c56_1056], %597 {strides = array<i32>} : memref<16x72xf32, #tpu.memory_space<vmem>>, vector<4x8xf32>,
    %c3_1057 = arith.constant 3 : index
    %c0_1058 = arith.constant 0 : index
    %c8_1059 = arith.constant 8 : index
    %599 = vector.load %arg9[%c3_1057, %c0_1058, %c8_1059] : memref<5x5x32xf32, #tpu.memory_space<vmem>>, vector<1x4x8xf32>
    %600 = vector.shape_cast %599 : vector<1x4x8xf32> to vector<4x8xf32>
    %c8_1060 = arith.constant 8 : index
    %c56_1061 = arith.constant 56 : index
    %601 = vector.load %arg10[%c8_1060, %c56_1061] : memref<16x72xf32, #tpu.memory_space<vmem>>, vector<4x8xf32>
    tpu.vector_store %arg10[%c8_1060, %c56_1061], %600 {strides = array<i32>} : memref<16x72xf32, #tpu.memory_space<vmem>>, vector<4x8xf32>,
    %c4_1062 = arith.constant 4 : index
    %c0_1063 = arith.constant 0 : index
    %c8_1064 = arith.constant 8 : index
    %602 = vector.load %arg9[%c4_1062, %c0_1063, %c8_1064] : memref<5x5x32xf32, #tpu.memory_space<vmem>>, vector<1x4x8xf32>
    %603 = vector.shape_cast %602 : vector<1x4x8xf32> to vector<4x8xf32>
    %c12_1065 = arith.constant 12 : index
    %c56_1066 = arith.constant 56 : index
    %604 = vector.load %arg10[%c12_1065, %c56_1066] : memref<16x72xf32, #tpu.memory_space<vmem>>, vector<4x8xf32>
    tpu.vector_store %arg10[%c12_1065, %c56_1066], %603 {strides = array<i32>} : memref<16x72xf32, #tpu.memory_space<vmem>>, vector<4x8xf32>,
    %c1_1067 = arith.constant 1 : index
    %c1_1068 = arith.constant 1 : index
    %c0_1069 = arith.constant 0 : index
    %605 = vector.load %arg9[%c1_1067, %c1_1068, %c0_1069] : memref<5x5x32xf32, #tpu.memory_space<vmem>>, vector<1x4x8xf32>
    %606 = vector.shape_cast %605 : vector<1x4x8xf32> to vector<4x8xf32>
    %c0_1070 = arith.constant 0 : index
    %c64 = arith.constant 64 : index
    %607 = vector.load %arg10[%c0_1070, %c64] : memref<16x72xf32, #tpu.memory_space<vmem>>, vector<4x8xf32>
    tpu.vector_store %arg10[%c0_1070, %c64], %606 {strides = array<i32>} : memref<16x72xf32, #tpu.memory_space<vmem>>, vector<4x8xf32>,
    %c2_1071 = arith.constant 2 : index
    %c1_1072 = arith.constant 1 : index
    %c0_1073 = arith.constant 0 : index
    %608 = vector.load %arg9[%c2_1071, %c1_1072, %c0_1073] : memref<5x5x32xf32, #tpu.memory_space<vmem>>, vector<1x4x8xf32>
    %609 = vector.shape_cast %608 : vector<1x4x8xf32> to vector<4x8xf32>
    %c4_1074 = arith.constant 4 : index
    %c64_1075 = arith.constant 64 : index
    %610 = vector.load %arg10[%c4_1074, %c64_1075] : memref<16x72xf32, #tpu.memory_space<vmem>>, vector<4x8xf32>
    tpu.vector_store %arg10[%c4_1074, %c64_1075], %609 {strides = array<i32>} : memref<16x72xf32, #tpu.memory_space<vmem>>, vector<4x8xf32>,
    %c3_1076 = arith.constant 3 : index
    %c1_1077 = arith.constant 1 : index
    %c0_1078 = arith.constant 0 : index
    %611 = vector.load %arg9[%c3_1076, %c1_1077, %c0_1078] : memref<5x5x32xf32, #tpu.memory_space<vmem>>, vector<1x4x8xf32>
    %612 = vector.shape_cast %611 : vector<1x4x8xf32> to vector<4x8xf32>
    %c8_1079 = arith.constant 8 : index
    %c64_1080 = arith.constant 64 : index
    %613 = vector.load %arg10[%c8_1079, %c64_1080] : memref<16x72xf32, #tpu.memory_space<vmem>>, vector<4x8xf32>
    tpu.vector_store %arg10[%c8_1079, %c64_1080], %612 {strides = array<i32>} : memref<16x72xf32, #tpu.memory_space<vmem>>, vector<4x8xf32>,
    %c4_1081 = arith.constant 4 : index
    %c1_1082 = arith.constant 1 : index
    %c0_1083 = arith.constant 0 : index
    %614 = vector.load %arg9[%c4_1081, %c1_1082, %c0_1083] : memref<5x5x32xf32, #tpu.memory_space<vmem>>, vector<1x4x8xf32>
    %615 = vector.shape_cast %614 : vector<1x4x8xf32> to vector<4x8xf32>
    %c12_1084 = arith.constant 12 : index
    %c64_1085 = arith.constant 64 : index
    %616 = vector.load %arg10[%c12_1084, %c64_1085] : memref<16x72xf32, #tpu.memory_space<vmem>>, vector<4x8xf32>
    tpu.vector_store %arg10[%c12_1084, %c64_1085], %615 {strides = array<i32>} : memref<16x72xf32, #tpu.memory_space<vmem>>, vector<4x8xf32>,
    %c0_1086 = arith.constant 0 : index
    %c0_1087 = arith.constant 0 : index
    %617 = vector.load %arg10[%c0_1086, %c0_1087] : memref<16x72xf32, #tpu.memory_space<vmem>>, vector<16x72xf32>
    %c0_1088 = arith.constant 0 : index
    %c0_1089 = arith.constant 0 : index
    %618 = vector.load %arg4[%c0_1088, %c0_1089] : memref<72x8xf32, #tpu.memory_space<vmem>>, vector<72x8xf32>
    %cst_1090 = arith.constant dense<0.000000e+00> : vector<16x8xf32>
    %619 = tpu.matmul %617, %618, %cst_1090 {dimension_numbers = #tpu.dot_dimension_numbers<[1], [0], [0], [1], [0, 0, 1, 1], [], []>, precision = #tpu.contract_precision<fp32>} : vector<16x72xf32>, vector<72x8xf32>, vector<16x8xf32> -> vector<16x8xf32>
    %c0_1091 = arith.constant 0 : index
    %c0_1092 = arith.constant 0 : index
    %620 = vector.load %arg5[%c0_1091, %c0_1092] : memref<1x8xf32, #tpu.memory_space<vmem>>, vector<1x8xf32>
    %621 = vector.broadcast %620 : vector<1x8xf32> to vector<16x8xf32>
    %622 = arith.addf %619, %621 : vector<16x8xf32>
    %c0_1093 = arith.constant 0 : index
    %c0_1094 = arith.constant 0 : index
    %c0_1095 = arith.constant 0 : index
    %623 = vector.load %arg7[%c0_1093, %c0_1094, %c0_1095] : memref<1x16x8xf32, #tpu.memory_space<vmem>>, vector<1x16x8xf32>
    %624 = vector.shape_cast %623 : vector<1x16x8xf32> to vector<16x8xf32>
    %625 = vector.shape_cast %622 : vector<16x8xf32> to vector<1x16x8xf32>
    tpu.vector_store %arg7[%c0_1093, %c0_1094, %c0_1095], %625 {strides = array<i32>} : memref<1x16x8xf32, #tpu.memory_space<vmem>>, vector<1x16x8xf32>,
    return
  }
  func.func @transform_0(%arg0: i32) -> (i32, i32, i32, i32) {
    %c0_i32 = arith.constant 0 : i32
    %c0_i32_0 = arith.constant 0 : i32
    %c0_i32_1 = arith.constant 0 : i32
    %c0_i32_2 = arith.constant 0 : i32
    return %arg0, %c0_i32, %c0_i32_0, %c0_i32_1 : i32, i32, i32, i32
  }
  func.func @transform_1(%arg0: i32) -> (i32, i32) {
    %c0_i32 = arith.constant 0 : i32
    %c0_i32_0 = arith.constant 0 : i32
    %c0_i32_1 = arith.constant 0 : i32
    return %c0_i32, %c0_i32_0 : i32, i32
  }
  func.func @transform_2(%arg0: i32) -> (i32, i32) {
    %c0_i32 = arith.constant 0 : i32
    %c0_i32_0 = arith.constant 0 : i32
    %c0_i32_1 = arith.constant 0 : i32
    return %c0_i32, %c0_i32_0 : i32, i32
  }
  func.func @transform_3(%arg0: i32) -> (i32, i32) {
    %c0_i32 = arith.constant 0 : i32
    %c0_i32_0 = arith.constant 0 : i32
    %c0_i32_1 = arith.constant 0 : i32
    return %c0_i32, %c0_i32_0 : i32, i32
  }
  func.func @transform_4(%arg0: i32) -> (i32, i32) {
    %c0_i32 = arith.constant 0 : i32
    %c0_i32_0 = arith.constant 0 : i32
    %c0_i32_1 = arith.constant 0 : i32
    return %c0_i32, %c0_i32_0 : i32, i32
  }
  func.func @transform_5(%arg0: i32) -> (i32, i32, i32) {
    %c0_i32 = arith.constant 0 : i32
    %c0_i32_0 = arith.constant 0 : i32
    %c0_i32_1 = arith.constant 0 : i32
    return %arg0, %c0_i32, %c0_i32_0 : i32, i32, i32
  }
  func.func @transform_6(%arg0: i32) -> (i32, i32, i32) {
    %c0_i32 = arith.constant 0 : i32
    %c0_i32_0 = arith.constant 0 : i32
    %c0_i32_1 = arith.constant 0 : i32
    return %arg0, %c0_i32, %c0_i32_0 : i32, i32, i32
  }
}

</mosaic_0001>

<bundles_post_ra>
// kernel: tpu_custom_call.1
= control target key start
LH: loop header
LB: loop body
LE: loop exit
PB: predicated region body
PF: predicated region fallthrough
CT: control target
= control target key end

     0   :  { %s2414_s21 = smov 0   ;;  %s3277_s0 = inlined_call_operand.vmem [shape: f32[2,5,5,64], index: 0, kind: input, shape index: {}]   ;;  %s3278_s1 = inlined_call_operand.vmem [shape: f32[36,8], index: 1, kind: input, shape index: {}]   ;;  %s3279_s2 = inlined_call_operand.vmem [shape: f32[1,8], index: 2, kind: input, shape index: {}]   ;;  %s3280_s3 = inlined_call_operand.vmem [shape: f32[72,8], index: 3, kind: input, shape index: {}]   ;;  %s3281_s4 = inlined_call_operand.vmem [shape: f32[1,8], index: 4, kind: input, shape index: {}]   ;;  %s3282_s5 = inlined_call_operand.vmem [shape: f32[2,64,8], index: 5, kind: output, shape index: {0}]   ;;  %s3283_s6 = inlined_call_operand.vmem [shape: f32[2,16,8], index: 6, kind: output, shape index: {1}]  }
   0x1 LB: > { %s2196_s22 = sadd.s32 4294967295, %s2359_s21   ;;  %p2200_p0 = scmp.ge.s32.totalorder %s2359_s21, 1  ;;  %s2359_s21 = sphi %s2414_s21, %s17_s21  }
   0x2   : > { %p215_p1 = scmp.lt.s32.totalorder %s2359_s21, 3 }
   0x4   : > { %p216_p2 = pnand %p2200_p0, %p215_p1 }
   0x5   : > { %p250_p3 = scmp.lt.s32.totalorder (!%p216_p2), %s2196_s22, 1  ;;  %s2361_s27 = smov (!%p216_p2), 124  }
   0x6   : > { %219 = sbr.rel (%p216_p2) target bundleno = 1145 (0x479), region = 40  ;;  %s2362_s28 = smov (!%p216_p2), 120  }
   0x7   : > { %s2363_s29 = smov (!%p216_p2), 8   ;;  %s2364_s30 = smov (!%p216_p2), 116  }
   0x8   : > { %s2365_s7 = smov (!%p216_p2), 4   ;;  %s2366_s8 = smov (!%p216_p2), 112  }
   0x9   : > { %s2367_s19 = smov (!%p216_p2), 96   ;;  %s2368_s20 = smov (!%p216_p2), 92  }
   0xa   : > { %s2370_s24 = smov (!%p216_p2), 88   ;;  %s2371_s25 = smov (!%p216_p2), 104  }
   0xb   : > { %s3285_s22 = smov (!%p250_p3, %s2196_s22), 1  ;;  %vm266_vm0 = vcmask 27648   ;;  %vm278_vm1 = vcmask 60448   ;;  %vm287_vm2 = vcmask 93248   ;;  %v1090_v46 = vld [vmem:[%s3278_s1 + $0x20] sm:$0xf] }
   0xc   : > { %s2324_s23 = smul.u32 40, %s3285_s22  ;;  %vm1120_vm3 = vcmask 1043456   ;;  %v1089_v52 = vld [vmem:[%s3278_s1 + $0x18] sm:$0xff]  ;;  %v1088_v56 = vld [vmem:[%s3278_s1 + $0x10] sm:$0xff]  ;;  %v1087_v60 = vld [vmem:[%s3278_s1 + $0x8] sm:$0xff]  ;;  %vm300_vm4 = vcmask 126048  }
   0xd   : > { %v1122_v47 = vsel %vm1120_vm3, %v1090_v46, 0  ;;  %v2537_v54 = vand.u32 4294901760, %v1089_v52  ;;  %v2552_v59 = vand.u32 4294901760, %v1088_v56  ;;  %vm325_vm5 = vcmask 158848   ;;  %s2322_s9 = sshll.u32 %s3285_s22, 6  ;;  %s2377_s13 = smov 48  }
   0xe   : > { %s2428_s26 = scalar_lea.vmem %s3277_s0, %s2324_s23  ;;  %v2529_v51 = vand.u32 4294901760, %v1122_v47  ;;  %vm350_vm6 = vcmask 191648   ;;  %vm375_vm7 = vcmask 224448   ;;  %vm400_vm8 = vcmask 257248   ;;  %s2369_s23 = smov 24  }
   0xf   : > { %v320_v0 = vld [vmem:[%s2428_s26] sm:$0xf]  ;;  %v2218_v3 = vld [vmem:[%s2428_s26 + $0x8] sm:$0xf]  ;;  %v2217_v12 = vld [vmem:[%s2428_s26 + $0x18] sm:$0xf]  ;;  %v2549_v58 = vsub.f32 %v1089_v52, %v2537_v54  ;;  %v2563_v63 = vsub.f32 %v1088_v56, %v2552_v59  ;;  %s2985_s12 = scalar_lea.vmem %s3282_s5, %s2322_s9 }
  0x10   : > { %v295_v1 = vld [vmem:[%s2428_s26] sm:$0xf]  ;;  %322 = vrot.lane.b32.xlu1 %v320_v0, %s2361_s27  ;;  %v2215_v4 = vld [vmem:[%s2428_s26 + $0x8] sm:$0xf]  ;;  %v2216_v13 = vld [vmem:[%s2428_s26 + $0x10] sm:$0xf]  ;;  %v2535_v53 = vsub.f32 %v1122_v47, %v2529_v51  ;;  %1363 = vmatpush.msra.mxu3 %v2529_v51 }
  0x11   : > { %297 = vrot.lane.b32.xlu0 %v295_v1, %s2361_s27  ;;  %v345_v2 = vld [vmem:[%s2428_s26] sm:$0xf]  ;;  %v2221_v5 = vld [vmem:[%s2428_s26 + $0x8] sm:$0xf]  ;;  %v2219_v14 = vld [vmem:[%s2428_s26 + $0x10] sm:$0xf]  ;;  %1136 = vmatpush.msra.mxu0 %v2529_v51 }
  0x12   : > { %347 = vrot.lane.b32.xlu2 %v345_v2, %s2361_s27  ;;  %v2224_v6 = vld [vmem:[%s2428_s26 + $0x8] sm:$0xf]  ;;  %v370_v7 = vld [vmem:[%s2428_s26] sm:$0xf]  ;;  %v2222_v15 = vld [vmem:[%s2428_s26 + $0x10] sm:$0xf]  ;;  %1297 = vmatpush.msra.mxu2 %v2535_v53 }
  0x13   : > { %v395_v8 = vld [vmem:[%s2428_s26] sm:$0xf]  ;;  %v2227_v10 = vld [vmem:[%s2428_s26 + $0x8] sm:$0xf]  ;;  %v2220_v16 = vld [vmem:[%s2428_s26 + $0x18] sm:$0xf]  ;;  %1365 = vmatpush.msra.mxu3 %v2537_v54  ;;  %1138 = vmatpush.msra.mxu0 %v2537_v54 }
  0x14   : > { %v420_v9 = vld [vmem:[%s2428_s26] sm:$0xf]  ;;  %v2230_v11 = vld [vmem:[%s2428_s26 + $0x8] sm:$0xf]  ;;  %v2223_v17 = vld [vmem:[%s2428_s26 + $0x18] sm:$0xf]  ;;  %1300 = vmatpush.msra.mxu2 %v2549_v58 }
  0x15   : > { %v2226_v18 = vld [vmem:[%s2428_s26 + $0x18] sm:$0xf]  ;;  %v2225_v19 = vld [vmem:[%s2428_s26 + $0x10] sm:$0xf]  ;;  %v2233_v24 = vld [vmem:[%s2428_s26 + $0x8] sm:$0xf]  ;;  %1367 = vmatpush.msra.mxu3 %v2552_v59  ;;  %1140 = vmatpush.msra.mxu0 %v2552_v59 }
  0x16   : > { %v2228_v20 = vld [vmem:[%s2428_s26 + $0x10] sm:$0xf]  ;;  %v2229_v22 = vld [vmem:[%s2428_s26 + $0x18] sm:$0xf]  ;;  %v445_v25 = vld [vmem:[%s2428_s26] sm:$0xf]  ;;  %1303 = vmatpush.msra.mxu2 %v2563_v63 }
  0x17   : > { %v2231_v21 = vld [vmem:[%s2428_s26 + $0x10] sm:$0xf]  ;;  %v2232_v23 = vld [vmem:[%s2428_s26 + $0x18] sm:$0xf]  ;;  %v469_v26 = vld [vmem:[%s2428_s26] sm:$0xf] }
  0x18   : > { %329 = vrot.lane.b32.xlu1 %v2218_v3, %s2361_s27  ;;  %v493_v27 = vld [vmem:[%s2428_s26 + $0x1] sm:$0xf]  ;;  %v2236_v28 = vld [vmem:[%s2428_s26 + $0x8] sm:$0xf]  ;;  %v2234_v48 = vld [vmem:[%s2428_s26 + $0x10] sm:$0xf] }
  0x19   : > { %304 = vrot.lane.b32.xlu0 %v2215_v4, %s2361_s27  ;;  %v2239_v29 = vld [vmem:[%s2428_s26 + $0x9] sm:$0xf]  ;;  %v517_v31 = vld [vmem:[%s2428_s26] sm:$0xf]  ;;  %v2235_v55 = vld [vmem:[%s2428_s26 + $0x18] sm:$0xf] }
  0x1a   : > { %354 = vrot.lane.b32.xlu2 %v2221_v5, %s2361_s27  ;;  %v2242_v30 = vld [vmem:[%s2428_s26 + $0x8] sm:$0xf]  ;;  %v541_v32 = vld [vmem:[%s2428_s26] sm:$0xf]  ;;  %v1223_v57 = vand.u32 4294901760, %v2535_v53  ;;  %v1229_v62 = vand.u32 4294901760, %v2549_v58 }
  0x1b   : > { %v265_v33 = vld [vmem:[%s2428_s26] sm:$0xf]  ;;  %v2245_v37 = vld [vmem:[%s2428_s26 + $0x8] sm:$0xf]  ;;  %v2566_v0 = vand.u32 4294901760, %v1087_v60  ;;  %vm425_vm9 = vcmask 290048  }
  0x1c   : > { %267 = vst.msk [vmem:[#allocation2] sm:$0xf] %vm266_vm0, %v265_v33  ;;  %v277_v34 = vld [vmem:[%s2428_s26] sm:$0xf]  ;;  %v2206_v38 = vld [vmem:[%s2428_s26 + $0x8] sm:$0xf]  ;;  %v1224_v61 = vsub.f32 %v2535_v53, %v1223_v57 }
  0x1d   : > { %279 = vst.msk [vmem:[#allocation2] sm:$0xf] %vm278_vm1, %v277_v34  ;;  %v286_v35 = vld [vmem:[%s2428_s26] sm:$0xf]  ;;  %v2248_v39 = vld [vmem:[%s2428_s26 + $0x9] sm:$0xf]  ;;  %1369 = vmatpush.msra.mxu3 %v2566_v0  ;;  %1142 = vmatpush.msra.mxu0 %v2566_v0 }
  0x1e   : > { %288 = vst.msk [vmem:[#allocation2] sm:$0xf] %vm287_vm2, %v286_v35  ;;  %v565_v36 = vld [vmem:[%s2428_s26 + $0x1] sm:$0xf]  ;;  %v2209_v40 = vld [vmem:[%s2428_s26 + $0x8] sm:$0xf] }
  0x1f   : > { %270 = vst.msk [vmem:[#allocation2 + $0x4] sm:$0xf] %vm266_vm0, %v2206_v38  ;;  %v2212_v41 = vld [vmem:[%s2428_s26 + $0x8] sm:$0xf]  ;;  %v589_v43 = vld [vmem:[%s2428_s26] sm:$0xf] }
  0x20   : > { %379 = vrot.lane.b32.xlu1 %v2224_v6, %s2362_s28  ;;  %281 = vst.msk [vmem:[#allocation2 + $0x4] sm:$0xf] %vm278_vm1, %v2209_v40  ;;  %v2251_v42 = vld [vmem:[%s2428_s26 + $0x8] sm:$0xf]  ;;  %v613_v45 = vld [vmem:[%s2428_s26] sm:$0xf]  ;;  %v1230_v6 = vsub.f32 %v2549_v58, %v1229_v62 }
  0x21   : > { %372 = vrot.lane.b32.xlu0 %v370_v7, %s2362_s28  ;;  %290 = vst.msk [vmem:[#allocation2 + $0x4] sm:$0xf] %vm287_vm2, %v2212_v41  ;;  %v2254_v49 = vld [vmem:[%s2428_s26 + $0x8] sm:$0xf]  ;;  %v1086_v1 = vld [vmem:[%s3278_s1] sm:$0xff]  ;;  %v1225_v5 = vand.u32 4294901760, %v1224_v61 }
  0x22   : > { %397 = vrot.lane.b32.xlu2 %v395_v8, %s2362_s28  ;;  %v2238_v2 = vld [vmem:[%s2428_s26 + $0x18] sm:$0xf]  ;;  %v2237_v3 = vld [vmem:[%s2428_s26 + $0x10] sm:$0xf]  ;;  %v1235_v7 = vand.u32 4294901760, %v2563_v63  ;;  %v2580_v8 = vsub.f32 %v1087_v60, %v2566_v0  ;;  %vm1095_vm10 = vcmask 293888  }
  0x23   : > { %1226 = vmatpush.msra.mxu1 %v1225_v5  ;;  %v2247_v35 = vld [vmem:[%s2428_s26 + $0x18] sm:$0xf]  ;;  %v2249_v38 = vld [vmem:[%s2428_s26 + $0x11] sm:$0xf]  ;;  %v2260_v58 = vld [vmem:[%s2428_s26 + $0x8] sm:$0xf] }
  0x24   : > { %1306 = vmatpush.msra.mxu2 %v2580_v8  ;;  %v2252_v41 = vld [vmem:[%s2428_s26 + $0x10] sm:$0xf]  ;;  %v2256_v47 = vld [vmem:[%s2428_s26 + $0x18] sm:$0xf]  ;;  %v2263_v60 = vld [vmem:[%s2428_s26 + $0x8] sm:$0xf] }
  0x25   : > { %v717_v5 = vld [vmem:[%s2428_s26] sm:$0xf]  ;;  %vm1539_vm11 = vcmask 64512   ;;  %vm1548_vm12 = vcmask 258048   ;;  %vm1566_vm13 = vcmask 257216   ;;  %vm1569_vm14 = vcmask 261316  }
  0x26   : > { %vm1583_vm15 = vcmask 191616   ;;  %vm1599_vm3 = vcmask 130116   ;;  %s2378_s14 = smov 64  }
  0x28   : > { %422 = vrot.lane.b32.xlu1 %v420_v9, %s2362_s28  ;;  %v2583_v9 = vand.u32 4294901760, %v1086_v1 }
  0x29   : > { %404 = vrot.lane.b32.xlu0 %v2227_v10, %s2362_s28  ;;  %v1231_v10 = vand.u32 4294901760, %v1230_v6 }
  0x2a   : > { %429 = vrot.lane.b32.xlu2 %v2230_v11, %s2362_s28  ;;  %v1236_v11 = vsub.f32 %v2563_v63, %v1235_v7  ;;  %1371 = vmatpush.msra.mxu3 %v2583_v9 }
  0x2b   : > { %1232 = vmatpush.msra.mxu1 %v1231_v10  ;;  %1144 = vmatpush.msra.mxu0 %v2583_v9  ;;  %v2269_v10 = vld [vmem:[%s2428_s26 + $0x8] sm:$0xf] }
  0x2d   : > { %1435 = vmatpush.msrb.mxu0 %v1223_v57 }
  0x2f   : > { %1439 = vmatpush.msrb.mxu0 %v1229_v62 }
  0x30   : > { %316 = vrot.lane.b32.xlu1 %v2217_v12, %s2361_s27  ;;  %v1241_v12 = vand.u32 4294901760, %v2580_v8 }
  0x31   : > { %310 = vrot.lane.b32.xlu0 %v2216_v13, %s2361_s27  ;;  %v2240_v13 = vld [vmem:[%s2428_s26 + $0x11] sm:$0xf]  ;;  %1443 = vmatpush.msrb.mxu0 %v1235_v7 }
  0x32   : > { %335 = vrot.lane.b32.xlu2 %v2219_v14, %s2361_s27  ;;  %v2208_v14 = vld [vmem:[%s2428_s26 + $0x18] sm:$0xf] }
  0x33   : > { %276 = vst.msk [vmem:[#allocation2 + $0xc] sm:$0xf] %vm266_vm0, %v2208_v14  ;;  %1447 = vmatpush.msrb.mxu0 %v1241_v12  ;;  %v2275_v14 = vld [vmem:[%s2428_s26 + $0x8] sm:$0xf] }
  0x38   : > { %360 = vrot.lane.b32.xlu1 %v2222_v15, %s2361_s27  ;;  %v1246_v15 = vsub.f32 %v1086_v1, %v2583_v9  ;;  %v2266_v1 = vld [vmem:[%s2428_s26 + $0x8] sm:$0xf] }
  0x39   : > { %341 = vrot.lane.b32.xlu0 %v2220_v16, %s2361_s27  ;;  %v1237_v16 = vand.u32 4294901760, %v1236_v11  ;;  %v2272_v11 = vld [vmem:[%s2428_s26 + $0x8] sm:$0xf] }
  0x3a   : > { %366 = vrot.lane.b32.xlu2 %v2223_v17, %s2361_s27  ;;  %v2211_v17 = vld [vmem:[%s2428_s26 + $0x18] sm:$0xf]  ;;  %1309 = vmatpush.msra.mxu2 %v1246_v15  ;;  %s2372_s27 = smov 84  }
  0x3b   : > { %285 = vst.msk [vmem:[#allocation2 + $0xc] sm:$0xf] %vm278_vm1, %v2211_v17  ;;  %1238 = vmatpush.msra.mxu1 %v1237_v16  ;;  %v765_v16 = vld [vmem:[%s2428_s26] sm:$0xf]  ;;  %v2278_v17 = vld [vmem:[%s2428_s26 + $0x8] sm:$0xf] }
  0x40   : > { %391 = vrot.lane.b32.xlu1 %v2226_v18, %s2362_s28  ;;  %v1242_v18 = vsub.f32 %v2580_v8, %v1241_v12  ;;  %v741_v8 = vld [vmem:[%s2428_s26] sm:$0xf] }
  0x41   : > { %385 = vrot.lane.b32.xlu0 %v2225_v19, %s2362_s28 }
  0x42   : > { %410 = vrot.lane.b32.xlu2 %v2228_v20, %s2362_s28 }
  0x48   : > { %435 = vrot.lane.b32.xlu1 %v2231_v21, %s2362_s28  ;;  %v2243_v21 = vld [vmem:[%s2428_s26 + $0x10] sm:$0xf] }
  0x49   : > { %416 = vrot.lane.b32.xlu0 %v2229_v22, %s2362_s28  ;;  %v2214_v22 = vld [vmem:[%s2428_s26 + $0x18] sm:$0xf] }
  0x4a   : > { %441 = vrot.lane.b32.xlu2 %v2232_v23, %s2362_s28  ;;  %v2207_v23 = vld [vmem:[%s2428_s26 + $0x10] sm:$0xf]  ;;  %294 = vst.msk [vmem:[#allocation2 + $0xc] sm:$0xf] %vm287_vm2, %v2214_v22  ;;  %v2282_v22 = vld [vmem:[%s2428_s26 + $0x8] sm:$0xf] }
  0x4b   : > { %273 = vst.msk [vmem:[#allocation2 + $0x8] sm:$0xf] %vm266_vm0, %v2207_v23 }
  0x50   : > { %453 = vrot.lane.b32.xlu1 %v2233_v24, %s2362_s28  ;;  %v1243_v24 = vand.u32 4294901760, %v1242_v18 }
  0x51   : > { %447 = vrot.lane.b32.xlu0 %v445_v25, %s2362_s28  ;;  %v1247_v25 = vand.u32 4294901760, %v1246_v15 }
  0x52   : > { %471 = vrot.lane.b32.xlu2 %v469_v26, %s2362_s28  ;;  %v2241_v26 = vld [vmem:[%s2428_s26 + $0x19] sm:$0xf]  ;;  %1244 = vmatpush.msra.mxu1 %v1243_v24 }
  0x53   : > { %1451 = vmatpush.msrb.mxu0 %v1247_v25 }
  0x58   : > { %495 = vrot.lane.b32.xlu1 %v493_v27, %s2363_s29 }
  0x59   : > { %477 = vrot.lane.b32.xlu0 %v2236_v28, %s2362_s28  ;;  %v2210_v28 = vld [vmem:[%s2428_s26 + $0x10] sm:$0xf] }
  0x5a   : > { %501 = vrot.lane.b32.xlu2 %v2239_v29, %s2363_s29  ;;  %v2213_v29 = vld [vmem:[%s2428_s26 + $0x10] sm:$0xf]  ;;  %283 = vst.msk [vmem:[#allocation2 + $0x8] sm:$0xf] %vm278_vm1, %v2210_v28 }
  0x5b   : > { %292 = vst.msk [vmem:[#allocation2 + $0x8] sm:$0xf] %vm287_vm2, %v2213_v29 }
  0x60   : > { %525 = vrot.lane.b32.xlu1 %v2242_v30, %s2364_s30  ;;  %v1248_v30 = vsub.f32 %v1246_v15, %v1247_v25  ;;  %v2279_v25 = vld [vmem:[%s2428_s26 + $0x10] sm:$0xf] }
  0x61   : > { %519 = vrot.lane.b32.xlu0 %v517_v31, %s2364_s30 }
  0x62   : > { %543 = vrot.lane.b32.xlu2 %v541_v32, %s2364_s30  ;;  %v1249_v31 = vand.u32 4294901760, %v1248_v30  ;;  %v2244_v32 = vld [vmem:[%s2428_s26 + $0x18] sm:$0xf] }
  0x64   : > { %1250 = vmatpush.msra.mxu1 %v1249_v31 }
  0x66   : > { %1497 = vmatpush.msrb.mxu1 %v2529_v51 }
  0x68   : > { %567 = vrot.lane.b32.xlu1 %v565_v36, %s2365_s7  ;;  %v2246_v36 = vld [vmem:[%s2428_s26 + $0x10] sm:$0xf]  ;;  %1499 = vmatpush.msrb.mxu1 %v2537_v54 }
  0x69   : > { %549 = vrot.lane.b32.xlu0 %v2245_v37, %s2364_s30 }
  0x6a   : > { %573 = vrot.lane.b32.xlu2 %v2248_v39, %s2365_s7  ;;  %1501 = vmatpush.msrb.mxu1 %v2552_v59 }
  0x6c   : > { %v2516_v44 = vpop.permute.xlu2 %347  ;;  %1503 = vmatpush.msrb.mxu1 %v2566_v0 }
  0x6e   : > { %1505 = vmatpush.msrb.mxu1 %v2583_v9 }
  0x70   : > { %597 = vrot.lane.b32.xlu1 %v2251_v42, %s2366_s8  ;;  %v2250_v42 = vld [vmem:[%s2428_s26 + $0x19] sm:$0xf] }
  0x71   : > { %591 = vrot.lane.b32.xlu0 %v589_v43, %s2366_s8 }
  0x72   : > { %615 = vrot.lane.b32.xlu2 %v613_v45, %s2366_s8 }
  0x74   : > { %v2527_v50 = vpop.permute.xlu2 %354 }
  0x78   : > { %459 = vrot.lane.b32.xlu1 %v2234_v48, %s2362_s28  ;;  %v2255_v48 = vld [vmem:[%s2428_s26 + $0x10] sm:$0xf] }
  0x79   : > { %621 = vrot.lane.b32.xlu0 %v2254_v49, %s2366_s8 }
  0x7a   : > { %465 = vrot.lane.b32.xlu2 %v2235_v55, %s2362_s28  ;;  %v669_v55 = vld [vmem:[%s2428_s26] sm:$0xf] }
  0x7c   : > { %v2575_v4 = vpop.permute.xlu2 %397 }
  0x80   : > { %489 = vrot.lane.b32.xlu1 %v2238_v2, %s2362_s28 }
  0x81   : > { %483 = vrot.lane.b32.xlu0 %v2237_v3, %s2362_s28  ;;  %s2373_s28 = smov 100  }
  0x82   : > { %v323_v19 = vpop.permute.xlu1 %322  ;;  %507 = vrot.lane.b32.xlu2 %v2240_v13, %s2363_s29 }
  0x83   : > { %v298_v20 = vpop.permute.xlu0 %297 }
  0x84   : > { %301 = vst.msk [vmem:[#allocation2] sm:$0xf] %vm300_vm4, %v298_v20  ;;  %v430_v27 = vpop.permute.xlu2 %429 }
  0x85   : > { %326 = vst.msk [vmem:[#allocation2] sm:$0xf] %vm325_vm5, %v323_v19 }
  0x86   : > { %351 = vst.msk [vmem:[#allocation2] sm:$0xf] %vm350_vm6, %v2516_v44  ;;  %v2253_v44 = vld [vmem:[%s2428_s26 + $0x18] sm:$0xf] }
  0x88   : > { %531 = vrot.lane.b32.xlu1 %v2243_v21, %s2364_s30 }
  0x89   : > { %513 = vrot.lane.b32.xlu0 %v2241_v26, %s2363_s29 }
  0x8a   : > { %v330_v33 = vpop.permute.xlu1 %329  ;;  %537 = vrot.lane.b32.xlu2 %v2244_v32, %s2364_s30  ;;  %v2262_v32 = vld [vmem:[%s2428_s26 + $0x18] sm:$0xf] }
  0x8b   : > { %v305_v34 = vpop.permute.xlu0 %304 }
  0x8c   : > { %307 = vst.msk [vmem:[#allocation2 + $0x4] sm:$0xf] %vm300_vm4, %v305_v34  ;;  %v336_v37 = vpop.permute.xlu2 %335 }
  0x8d   : > { %332 = vst.msk [vmem:[#allocation2 + $0x4] sm:$0xf] %vm325_vm5, %v330_v33 }
  0x8e   : > { %357 = vst.msk [vmem:[#allocation2 + $0x4] sm:$0xf] %vm350_vm6, %v2527_v50  ;;  %v645_v50 = vld [vmem:[%s2428_s26] sm:$0xf] }
  0x90   : > { %561 = vrot.lane.b32.xlu1 %v2247_v35, %s2364_s30  ;;  %v2261_v35 = vld [vmem:[%s2428_s26 + $0x10] sm:$0xf] }
  0x91   : > { %555 = vrot.lane.b32.xlu0 %v2246_v36, %s2364_s30  ;;  %v2286_v36 = vld [vmem:[%s2428_s26 + $0x8] sm:$0xf]  ;;  %s2374_s30 = smov 16  }
  0x92   : > { %v380_v39 = vpop.permute.xlu1 %379  ;;  %579 = vrot.lane.b32.xlu2 %v2249_v38, %s2365_s7 }
  0x93   : > { %v373_v40 = vpop.permute.xlu0 %372  ;;  %382 = vst.msk [vmem:[#allocation2 + $0x4] sm:$0xf] %vm375_vm7, %v380_v39  ;;  %v2264_v39 = vld [vmem:[%s2428_s26 + $0x10] sm:$0xf] }
  0x94   : > { %376 = vst.msk [vmem:[#allocation2] sm:$0xf] %vm375_vm7, %v373_v40  ;;  %v367_v43 = vpop.permute.xlu2 %366 }
  0x95   : > { %401 = vst.msk [vmem:[#allocation2] sm:$0xf] %vm400_vm8, %v2575_v4  ;;  %v693_v4 = vld [vmem:[%s2428_s26] sm:$0xf] }
  0x98   : > { %603 = vrot.lane.b32.xlu1 %v2252_v41, %s2366_s8  ;;  %v2287_v41 = vld [vmem:[%s2428_s26 + $0x10] sm:$0xf] }
  0x99   : > { %585 = vrot.lane.b32.xlu0 %v2250_v42, %s2365_s7  ;;  %v2265_v42 = vld [vmem:[%s2428_s26 + $0x18] sm:$0xf]  ;;  %s2375_s7 = smov 32  }
  0x9a   : > { %v423_v45 = vpop.permute.xlu1 %422  ;;  %609 = vrot.lane.b32.xlu2 %v2253_v44, %s2366_s8 }
  0x9b   : > { %v405_v46 = vpop.permute.xlu0 %404  ;;  %426 = vst.msk [vmem:[#allocation2] sm:$0xf] %vm425_vm9, %v423_v45  ;;  %v2268_v45 = vld [vmem:[%s2428_s26 + $0x18] sm:$0xf] }
  0x9c   : > { %407 = vst.msk [vmem:[#allocation2 + $0x4] sm:$0xf] %vm400_vm8, %v405_v46  ;;  %v411_v49 = vpop.permute.xlu2 %410 }
  0x9d   : > { %432 = vst.msk [vmem:[#allocation2 + $0x4] sm:$0xf] %vm425_vm9, %v430_v27  ;;  %v2283_v27 = vld [vmem:[%s2428_s26 + $0x10] sm:$0xf] }
  0xa0   : > { %633 = vrot.lane.b32.xlu1 %v2256_v47, %s2366_s8  ;;  %v2267_v47 = vld [vmem:[%s2428_s26 + $0x10] sm:$0xf] }
  0xa1   : > { %627 = vrot.lane.b32.xlu0 %v2255_v48, %s2366_s8  ;;  %v2270_v48 = vld [vmem:[%s2428_s26 + $0x10] sm:$0xf] }
  0xa2   : > { %v317_v51 = vpop.permute.xlu1 %316  ;;  %647 = vrot.lane.b32.xlu2 %v645_v50, %s2367_s19 }
  0xa3   : > { %v311_v52 = vpop.permute.xlu0 %310  ;;  %319 = vst.msk [vmem:[#allocation2 + $0xc] sm:$0xf] %vm300_vm4, %v317_v51  ;;  %v637_v51 = vld [vmem:[%s2428_s26 + $0x1] sm:$0xf] }
  0xa4   : > { %313 = vst.msk [vmem:[#allocation2 + $0x8] sm:$0xf] %vm300_vm4, %v311_v52  ;;  %v1078_v53 = vld [vmem:[#allocation2] sm:$0xff]  ;;  %v442_v56 = vpop.permute.xlu2 %441  ;;  %v2273_v52 = vld [vmem:[%s2428_s26 + $0x10] sm:$0xf] }
  0xa5   : > { %338 = vst.msk [vmem:[#allocation2 + $0x8] sm:$0xf] %vm325_vm5, %v336_v37  ;;  %v1097_v54 = vsel %vm1095_vm10, %v1078_v53, 0 }
  0xa6   : > { %v2659_v57 = vand.u32 4294901760, %v1097_v54 }
  0xa8   : > { %1252 = vmatmul.f32.vlgmr.msra.gmra.mxu1 %v2659_v57  ;;  %671 = vrot.lane.b32.xlu1 %v669_v55, %s2367_s19  ;;  %v1146_v59 = vsub.f32 %v1097_v54, %v2659_v57  ;;  %v2271_v54 = vld [vmem:[%s2428_s26 + $0x18] sm:$0xf] }
  0xa9   : > { %653 = vrot.lane.b32.xlu0 %v2260_v58, %s2367_s19  ;;  %v2274_v55 = vld [vmem:[%s2428_s26 + $0x18] sm:$0xf]  ;;  %v2257_v58 = vld [vmem:[%s2428_s26 + $0x9] sm:$0xf] }
  0xaa   : > { %1312 = vmatmul.f32.vlgmr.msra.gmra.mxu2 %v1146_v59  ;;  %v361_v61 = vpop.permute.xlu1 %360  ;;  %v1147_v63 = vand.u32 4294901760, %v1146_v59  ;;  %677 = vrot.lane.b32.xlu2 %v2263_v60, %s2367_s19  ;;  %v2277_v60 = vld [vmem:[%s2428_s26 + $0x18] sm:$0xf] }
  0xab   : > { %v342_v62 = vpop.permute.xlu0 %341  ;;  %363 = vst.msk [vmem:[#allocation2 + $0x8] sm:$0xf] %vm350_vm6, %v361_v61 }
  0xac   : > { %344 = vst.msk [vmem:[#allocation2 + $0xc] sm:$0xf] %vm325_vm5, %v342_v62  ;;  %1375 = vmatmul.f32.vlgmr.msra.gmra.mxu3 %v1147_v63  ;;  %v1148_v0 = vsub.f32 %v1146_v59, %v1147_v63  ;;  %v472_v2 = vpop.permute.xlu2 %471  ;;  %v2276_v62 = vld [vmem:[%s2428_s26 + $0x10] sm:$0xf]  ;;  %v2280_v63 = vld [vmem:[%s2428_s26 + $0x18] sm:$0xf] }
  0xad   : > { %369 = vst.msk [vmem:[#allocation2 + $0xc] sm:$0xf] %vm350_vm6, %v367_v43 }
  0xae   : > { %v1149_v3 = vand.u32 4294901760, %v1148_v0 }
  0xb0   : > { %1150 = vmatmul.f32.vlgmr.msra.gmra.mxu0 %v1149_v3  ;;  %701 = vrot.lane.b32.xlu1 %v2266_v1, %s2367_s19 }
  0xb1   : > { %695 = vrot.lane.b32.xlu0 %v693_v4, %s2367_s19  ;;  %v2281_v4 = vld [vmem:[%s2428_s26 + $0x20] sm:$0xf] }
  0xb2   : > { %v392_v6 = vpop.permute.xlu1 %391  ;;  %719 = vrot.lane.b32.xlu2 %v717_v5, %s2368_s20  ;;  %v2285_v5 = vld [vmem:[%s2428_s26 + $0x20] sm:$0xf] }
  0xb3   : > { %v386_v7 = vpop.permute.xlu0 %385  ;;  %394 = vst.msk [vmem:[#allocation2 + $0xc] sm:$0xf] %vm375_vm7, %v392_v6 }
  0xb4   : > { %388 = vst.msk [vmem:[#allocation2 + $0x8] sm:$0xf] %vm375_vm7, %v386_v7  ;;  %v502_v9 = vpop.permute.xlu2 %501 }
  0xb5   : > { %413 = vst.msk [vmem:[#allocation2 + $0x8] sm:$0xf] %vm400_vm8, %v411_v49 }
  0xb8   : > { %743 = vrot.lane.b32.xlu1 %v741_v8, %s2368_s20  ;;  %v2289_v8 = vld [vmem:[%s2428_s26 + $0x20] sm:$0xf] }
  0xb9   : > { %725 = vrot.lane.b32.xlu0 %v2269_v10, %s2368_s20  ;;  %v2288_v10 = vld [vmem:[%s2428_s26 + $0x18] sm:$0xf] }
  0xba   : > { %v436_v12 = vpop.permute.xlu1 %435  ;;  %749 = vrot.lane.b32.xlu2 %v2272_v11, %s2368_s20  ;;  %v862_v11 = vld [vmem:[%s2428_s26] sm:$0xf] }
  0xbb   : > { %v417_v13 = vpop.permute.xlu0 %416  ;;  %438 = vst.msk [vmem:[#allocation2 + $0x8] sm:$0xf] %vm425_vm9, %v436_v12 }
  0xbc   : > { %419 = vst.msk [vmem:[#allocation2 + $0xc] sm:$0xf] %vm400_vm8, %v417_v13  ;;  %v544_v15 = vpop.permute.xlu2 %543 }
  0xbd   : > { %444 = vst.msk [vmem:[#allocation2 + $0xc] sm:$0xf] %vm425_vm9, %v442_v56 }
  0xc0   : > { %773 = vrot.lane.b32.xlu1 %v2275_v14, %s2368_s20  ;;  %v886_v14 = vld [vmem:[%s2428_s26] sm:$0xf] }
  0xc1   : > { %767 = vrot.lane.b32.xlu0 %v765_v16, %s2368_s20  ;;  %v2290_v16 = vld [vmem:[%s2428_s26 + $0x8] sm:$0xf] }
  0xc2   : > { %v454_v18 = vpop.permute.xlu1 %453  ;;  %791 = vrot.lane.b32.xlu2 %v2278_v17, %s2369_s23  ;;  %v2293_v17 = vld [vmem:[%s2428_s26 + $0x8] sm:$0xf] }
  0xc3   : > { %v448_v19 = vpop.permute.xlu0 %447  ;;  %456 = vst.msk [vmem:[#allocation2 + $0x14] sm:$0xf] %vm266_vm0, %v454_v18 }
  0xc4   : > { %450 = vst.msk [vmem:[#allocation2 + $0x10] sm:$0xf] %vm266_vm0, %v448_v19  ;;  %v1079_v20 = vld [vmem:[#allocation2 + $0x8] sm:$0xff]  ;;  %v574_v23 = vpop.permute.xlu2 %573 }
  0xc5   : > { %v1100_v21 = vsel %vm1095_vm10, %v1079_v20, 0  ;;  %474 = vst.msk [vmem:[#allocation2 + $0x10] sm:$0xf] %vm278_vm1, %v472_v2  ;;  %v2284_v2 = vld [vmem:[%s2428_s26 + $0x18] sm:$0xf] }
  0xc6   : > { %v2700_v24 = vand.u32 4294901760, %v1100_v21  ;;  %v2296_v20 = vld [vmem:[%s2428_s26 + $0x9] sm:$0xf] }
  0xc8   : > { %1256 = vmatmul.f32.gmra.mxu1 %v2700_v24  ;;  %816 = vrot.lane.b32.xlu1 %v2282_v22, %s2369_s23  ;;  %v1154_v26 = vsub.f32 %v1100_v21, %v2700_v24  ;;  %v910_v22 = vld [vmem:[%s2428_s26 + $0x1] sm:$0xf] }
  0xc9   : > { %797 = vrot.lane.b32.xlu0 %v2279_v25, %s2369_s23  ;;  %v2259_v25 = vld [vmem:[%s2428_s26 + $0x19] sm:$0xf] }
  0xca   : > { %1317 = vmatmul.f32.gmra.mxu2 %v1154_v26  ;;  %v496_v28 = vpop.permute.xlu1 %495  ;;  %v1155_v30 = vand.u32 4294901760, %v1154_v26  ;;  %822 = vrot.lane.b32.xlu2 %v2283_v27, %s2369_s23 }
  0xcb   : > { %v478_v29 = vpop.permute.xlu0 %477  ;;  %498 = vst.msk [vmem:[#allocation2 + $0x10] sm:$0xf] %vm287_vm2, %v496_v28  ;;  %v2258_v28 = vld [vmem:[%s2428_s26 + $0x11] sm:$0xf] }
  0xcc   : > { %480 = vst.msk [vmem:[#allocation2 + $0x14] sm:$0xf] %vm278_vm1, %v478_v29  ;;  %1381 = vmatmul.f32.gmra.mxu3 %v1155_v30  ;;  %v1156_v31 = vsub.f32 %v1154_v26, %v1155_v30  ;;  %v616_v33 = vpop.permute.xlu2 %615  ;;  %v958_v29 = vld [vmem:[%s2428_s26] sm:$0xf] }
  0xcd   : > { %504 = vst.msk [vmem:[#allocation2 + $0x14] sm:$0xf] %vm287_vm2, %v502_v9 }
  0xce   : > { %v1157_v34 = vand.u32 4294901760, %v1156_v31  ;;  %v2299_v31 = vld [vmem:[%s2428_s26 + $0x8] sm:$0xf] }
  0xd0   : > { %1158 = vmatmul.f32.gmra.mxu0 %v1157_v34  ;;  %665 = vrot.lane.b32.xlu1 %v2262_v32, %s2367_s19  ;;  %v2302_v32 = vld [vmem:[%s2428_s26 + $0x8] sm:$0xf] }
  0xd1   : > { %659 = vrot.lane.b32.xlu0 %v2261_v35, %s2367_s19  ;;  %v2305_v35 = vld [vmem:[%s2428_s26 + $0x9] sm:$0xf] }
  0xd2   : > { %v526_v37 = vpop.permute.xlu1 %525  ;;  %840 = vrot.lane.b32.xlu2 %v2286_v36, %s2369_s23 }
  0xd3   : > { %v520_v38 = vpop.permute.xlu0 %519  ;;  %528 = vst.msk [vmem:[#allocation2 + $0x14] sm:$0xf] %vm300_vm4, %v526_v37  ;;  %v982_v37 = vld [vmem:[%s2428_s26 + $0x1] sm:$0xf] }
  0xd4   : > { %522 = vst.msk [vmem:[#allocation2 + $0x10] sm:$0xf] %vm300_vm4, %v520_v38  ;;  %v466_v40 = vpop.permute.xlu2 %465  ;;  %v2308_v38 = vld [vmem:[%s2428_s26 + $0x8] sm:$0xf] }
  0xd5   : > { %546 = vst.msk [vmem:[#allocation2 + $0x10] sm:$0xf] %vm325_vm5, %v544_v15 }
  0xd6   : > { %468 = vst.msk [vmem:[#allocation2 + $0x1c] sm:$0xf] %vm266_vm0, %v466_v40 }
  0xd8   : > { %683 = vrot.lane.b32.xlu1 %v2264_v39, %s2367_s19 }
  0xd9   : > { %846 = vrot.lane.b32.xlu0 %v2287_v41, %s2369_s23 }
  0xda   : > { %v568_v43 = vpop.permute.xlu1 %567  ;;  %689 = vrot.lane.b32.xlu2 %v2265_v42, %s2367_s19  ;;  %v2312_v42 = vld [vmem:[%s2428_s26 + $0x8] sm:$0xf] }
  0xdb   : > { %v550_v44 = vpop.permute.xlu0 %549  ;;  %570 = vst.msk [vmem:[#allocation2 + $0x10] sm:$0xf] %vm350_vm6, %v568_v43 }
  0xdc   : > { %552 = vst.msk [vmem:[#allocation2 + $0x14] sm:$0xf] %vm325_vm5, %v550_v44  ;;  %v508_v46 = vpop.permute.xlu2 %507 }
  0xdd   : > { %576 = vst.msk [vmem:[#allocation2 + $0x14] sm:$0xf] %vm350_vm6, %v574_v23  ;;  %v934_v23 = vld [vmem:[%s2428_s26] sm:$0xf] }
  0xe0   : > { %713 = vrot.lane.b32.xlu1 %v2268_v45, %s2367_s19  ;;  %v2309_v45 = vld [vmem:[%s2428_s26 + $0x10] sm:$0xf] }
  0xe1   : > { %707 = vrot.lane.b32.xlu0 %v2267_v47, %s2367_s19  ;;  %v2313_v47 = vld [vmem:[%s2428_s26 + $0x10] sm:$0xf] }
  0xe2   : > { %v598_v49 = vpop.permute.xlu1 %597  ;;  %731 = vrot.lane.b32.xlu2 %v2270_v48, %s2368_s20 }
  0xe3   : > { %v592_v50 = vpop.permute.xlu0 %591  ;;  %600 = vst.msk [vmem:[#allocation2 + $0x14] sm:$0xf] %vm375_vm7, %v598_v49 }
  0xe4   : > { %594 = vst.msk [vmem:[#allocation2 + $0x10] sm:$0xf] %vm375_vm7, %v592_v50  ;;  %v538_v53 = vpop.permute.xlu2 %537 }
  0xe5   : > { %618 = vst.msk [vmem:[#allocation2 + $0x10] sm:$0xf] %vm400_vm8, %v616_v33 }
  0xe6   : > { %638 = vst.msk [vmem:[#allocation2 + $0x10] sm:$0xf] %vm425_vm9, %v637_v51 }
  0xe8   : > { %755 = vrot.lane.b32.xlu1 %v2273_v52, %s2368_s20 }
  0xe9   : > { %737 = vrot.lane.b32.xlu0 %v2271_v54, %s2368_s20  ;;  %v2292_v54 = vld [vmem:[%s2428_s26 + $0x18] sm:$0xf] }
  0xea   : > { %v460_v56 = vpop.permute.xlu1 %459  ;;  %761 = vrot.lane.b32.xlu2 %v2274_v55, %s2368_s20 }
  0xeb   : > { %v622_v59 = vpop.permute.xlu0 %621  ;;  %462 = vst.msk [vmem:[#allocation2 + $0x18] sm:$0xf] %vm266_vm0, %v460_v56  ;;  %v2291_v56 = vld [vmem:[%s2428_s26 + $0x10] sm:$0xf] }
  0xec   : > { %624 = vst.msk [vmem:[#allocation2 + $0x14] sm:$0xf] %vm400_vm8, %v622_v59  ;;  %v580_v61 = vpop.permute.xlu2 %579 }
  0xed   : > { %640 = vst.msk [vmem:[#allocation2 + $0x14] sm:$0xf] %vm425_vm9, %v2257_v58 }
  0xf0   : > { %785 = vrot.lane.b32.xlu1 %v2277_v60, %s2368_s20 }
  0xf1   : > { %779 = vrot.lane.b32.xlu0 %v2276_v62, %s2368_s20 }
  0xf2   : > { %v490_v0 = vpop.permute.xlu1 %489  ;;  %803 = vrot.lane.b32.xlu2 %v2280_v63, %s2369_s23 }
  0xf3   : > { %v484_v1 = vpop.permute.xlu0 %483  ;;  %492 = vst.msk [vmem:[#allocation2 + $0x1c] sm:$0xf] %vm278_vm1, %v490_v0 }
  0xf4   : > { %486 = vst.msk [vmem:[#allocation2 + $0x18] sm:$0xf] %vm278_vm1, %v484_v1  ;;  %v610_v3 = vpop.permute.xlu2 %609  ;;  %v1080_v41 = vld [vmem:[#allocation2 + $0x10] sm:$0xff] }
  0xf5   : > { %510 = vst.msk [vmem:[#allocation2 + $0x18] sm:$0xf] %vm287_vm2, %v508_v46  ;;  %v1103_v44 = vsel %vm1095_vm10, %v1080_v41, 0 }
  0xf6   : > { %v2822_v46 = vand.u32 4294901760, %v1103_v44 }
  0xf8   : > { %828 = vrot.lane.b32.xlu1 %v2284_v2, %s2369_s23  ;;  %1260 = vmatmul.f32.gmra.mxu1 %v2822_v46  ;;  %v1162_v48 = vsub.f32 %v1103_v44, %v2822_v46 }
  0xf9   : > { %810 = vrot.lane.b32.xlu0 %v2281_v4, %s2369_s23  ;;  %v2317_v4 = vld [vmem:[%s2428_s26 + $0x11] sm:$0xf] }
  0xfa   : > { %v532_v6 = vpop.permute.xlu1 %531  ;;  %834 = vrot.lane.b32.xlu2 %v2285_v5, %s2369_s23  ;;  %1322 = vmatmul.f32.gmra.mxu2 %v1162_v48  ;;  %v1163_v50 = vand.u32 4294901760, %v1162_v48 }
  0xfb   : > { %v514_v7 = vpop.permute.xlu0 %513  ;;  %534 = vst.msk [vmem:[#allocation2 + $0x18] sm:$0xf] %vm300_vm4, %v532_v6 }
  0xfc   : > { %516 = vst.msk [vmem:[#allocation2 + $0x1c] sm:$0xf] %vm287_vm2, %v514_v7  ;;  %v648_v9 = vpop.permute.xlu2 %647  ;;  %1387 = vmatmul.f32.gmra.mxu3 %v1163_v50  ;;  %v1164_v52 = vsub.f32 %v1162_v48, %v1163_v50  ;;  %v2295_v7 = vld [vmem:[%s2428_s26 + $0x18] sm:$0xf] }
  0xfd   : > { %540 = vst.msk [vmem:[#allocation2 + $0x1c] sm:$0xf] %vm300_vm4, %v538_v53 }
  0xfe   : > { %650 = vst.msk [vmem:[#allocation2 + $0x20] sm:$0xf] %vm266_vm0, %v648_v9  ;;  %v1165_v59 = vand.u32 4294901760, %v1164_v52 }
 0x100   : > { %858 = vrot.lane.b32.xlu1 %v2289_v8, %s2369_s23  ;;  %1166 = vmatmul.f32.gmra.mxu0 %v1165_v59 }
 0x101   : > { %852 = vrot.lane.b32.xlu0 %v2288_v10, %s2369_s23  ;;  %v2298_v10 = vld [vmem:[%s2428_s26 + $0x19] sm:$0xf] }
 0x102   : > { %v562_v12 = vpop.permute.xlu1 %561  ;;  %864 = vrot.lane.b32.xlu2 %v862_v11, %s2370_s24  ;;  %v2297_v11 = vld [vmem:[%s2428_s26 + $0x11] sm:$0xf] }
 0x103   : > { %v556_v13 = vpop.permute.xlu0 %555  ;;  %564 = vst.msk [vmem:[#allocation2 + $0x1c] sm:$0xf] %vm325_vm5, %v562_v12 }
 0x104   : > { %558 = vst.msk [vmem:[#allocation2 + $0x18] sm:$0xf] %vm325_vm5, %v556_v13  ;;  %v678_v15 = vpop.permute.xlu2 %677  ;;  %v2300_v13 = vld [vmem:[%s2428_s26 + $0x10] sm:$0xf] }
 0x105   : > { %582 = vst.msk [vmem:[#allocation2 + $0x18] sm:$0xf] %vm350_vm6, %v580_v61  ;;  %v2316_v61 = vld [vmem:[%s2428_s26 + $0x9] sm:$0xf] }
 0x108   : > { %888 = vrot.lane.b32.xlu1 %v886_v14, %s2370_s24 }
 0x109   : > { %870 = vrot.lane.b32.xlu0 %v2290_v16, %s2370_s24  ;;  %v2303_v16 = vld [vmem:[%s2428_s26 + $0x10] sm:$0xf] }
 0x10a   : > { %v604_v18 = vpop.permute.xlu1 %603  ;;  %894 = vrot.lane.b32.xlu2 %v2293_v17, %s2370_s24  ;;  %v2301_v17 = vld [vmem:[%s2428_s26 + $0x18] sm:$0xf] }
 0x10b   : > { %v586_v19 = vpop.permute.xlu0 %585  ;;  %606 = vst.msk [vmem:[#allocation2 + $0x18] sm:$0xf] %vm375_vm7, %v604_v18 }
 0x10c   : > { %588 = vst.msk [vmem:[#allocation2 + $0x1c] sm:$0xf] %vm350_vm6, %v586_v19  ;;  %v720_v21 = vpop.permute.xlu2 %719  ;;  %v2304_v19 = vld [vmem:[%s2428_s26 + $0x18] sm:$0xf] }
 0x10d   : > { %612 = vst.msk [vmem:[#allocation2 + $0x1c] sm:$0xf] %vm375_vm7, %v610_v3  ;;  %v2294_v3 = vld [vmem:[%s2428_s26 + $0x10] sm:$0xf] }
 0x110   : > { %918 = vrot.lane.b32.xlu1 %v2296_v20, %s2371_s25 }
 0x111   : > { %912 = vrot.lane.b32.xlu0 %v910_v22, %s2371_s25  ;;  %v2307_v22 = vld [vmem:[%s2428_s26 + $0x19] sm:$0xf] }
 0x112   : > { %v634_v26 = vpop.permute.xlu1 %633  ;;  %936 = vrot.lane.b32.xlu2 %v934_v23, %s2372_s27  ;;  %v2306_v23 = vld [vmem:[%s2428_s26 + $0x11] sm:$0xf] }
 0x113   : > { %v628_v27 = vpop.permute.xlu0 %627  ;;  %636 = vst.msk [vmem:[#allocation2 + $0x1c] sm:$0xf] %vm400_vm8, %v634_v26  ;;  %v2310_v26 = vld [vmem:[%s2428_s26 + $0x18] sm:$0xf] }
 0x114   : > { %644 = vst.msk [vmem:[#allocation2 + $0x1c] sm:$0xf] %vm425_vm9, %v2259_v25  ;;  %v750_v30 = vpop.permute.xlu2 %749 }
 0x115   : > { %630 = vst.msk [vmem:[#allocation2 + $0x18] sm:$0xf] %vm400_vm8, %v628_v27 }
 0x116   : > { %642 = vst.msk [vmem:[#allocation2 + $0x18] sm:$0xf] %vm425_vm9, %v2258_v28 }
 0x118   : > { %960 = vrot.lane.b32.xlu1 %v958_v29, %s2372_s27 }
 0x119   : > { %942 = vrot.lane.b32.xlu0 %v2299_v31, %s2372_s27 }
 0x11a   : > { %v672_v33 = vpop.permute.xlu1 %671  ;;  %966 = vrot.lane.b32.xlu2 %v2302_v32, %s2372_s27  ;;  %v2314_v32 = vld [vmem:[%s2428_s26 + $0x18] sm:$0xf] }
 0x11b   : > { %674 = vst.msk [vmem:[#allocation2 + $0x20] sm:$0xf] %vm278_vm1, %v672_v33  ;;  %v654_v34 = vpop.permute.xlu0 %653  ;;  %v2311_v33 = vld [vmem:[%s2428_s26 + $0x20] sm:$0xf] }
 0x11c   : > { %656 = vst.msk [vmem:[#allocation2 + $0x24] sm:$0xf] %vm266_vm0, %v654_v34  ;;  %v792_v36 = vpop.permute.xlu2 %791 }
 0x11d   : > { %680 = vst.msk [vmem:[#allocation2 + $0x24] sm:$0xf] %vm278_vm1, %v678_v15  ;;  %v1081_v53 = vld [vmem:[#allocation2 + $0x18] sm:$0xff] }
 0x11e   : > { %v1106_v55 = vsel %vm1095_vm10, %v1081_v53, 0 }
 0x11f   : > { %v2836_v60 = vand.u32 4294901760, %v1106_v55 }
 0x120   : > { %990 = vrot.lane.b32.xlu1 %v2305_v35, %s2373_s28 }
 0x121   : > { %984 = vrot.lane.b32.xlu0 %v982_v37, %s2373_s28  ;;  %v1170_v62 = vsub.f32 %v1106_v55, %v2836_v60  ;;  %1264 = vmatmul.f32.gmra.mxu1 %v2836_v60 }
 0x122   : > { %v702_v39 = vpop.permute.xlu1 %701  ;;  %1008 = vrot.lane.b32.xlu2 %v2308_v38, %s2374_s30 }
 0x123   : > { %704 = vst.msk [vmem:[#allocation2 + $0x24] sm:$0xf] %vm287_vm2, %v702_v39  ;;  %v696_v40 = vpop.permute.xlu0 %695  ;;  %1327 = vmatmul.f32.gmra.mxu2 %v1170_v62  ;;  %v1171_v0 = vand.u32 4294901760, %v1170_v62 }
 0x124   : > { %698 = vst.msk [vmem:[#allocation2 + $0x20] sm:$0xf] %vm287_vm2, %v696_v40  ;;  %v823_v43 = vpop.permute.xlu2 %822 }
 0x125   : > { %722 = vst.msk [vmem:[#allocation2 + $0x20] sm:$0xf] %vm300_vm4, %v720_v21  ;;  %1393 = vmatmul.f32.gmra.mxu3 %v1171_v0  ;;  %v1172_v2 = vsub.f32 %v1170_v62, %v1171_v0 }
 0x127   : > { %v1173_v6 = vand.u32 4294901760, %v1172_v2 }
 0x128   : > { %1032 = vrot.lane.b32.xlu1 %v2312_v42, %s2374_s30  ;;  %v2319_v42 = vld [vmem:[%s2428_s26 + $0x21] sm:$0xf] }
 0x129   : > { %1014 = vrot.lane.b32.xlu0 %v2309_v45, %s2374_s30  ;;  %1174 = vmatmul.f32.gmra.mxu0 %v1173_v6 }
 0x12a   : > { %v744_v49 = vpop.permute.xlu1 %743  ;;  %1038 = vrot.lane.b32.xlu2 %v2313_v47, %s2374_s30 }
 0x12b   : > { %746 = vst.msk [vmem:[#allocation2 + $0x20] sm:$0xf] %vm325_vm5, %v744_v49  ;;  %v726_v51 = vpop.permute.xlu0 %725 }
 0x12c   : > { %728 = vst.msk [vmem:[#allocation2 + $0x24] sm:$0xf] %vm300_vm4, %v726_v51  ;;  %v841_v58 = vpop.permute.xlu2 %840 }
 0x12d   : > { %752 = vst.msk [vmem:[#allocation2 + $0x24] sm:$0xf] %vm325_vm5, %v750_v30 }
 0x130   : > { %882 = vrot.lane.b32.xlu1 %v2292_v54, %s2370_s24 }
 0x131   : > { %876 = vrot.lane.b32.xlu0 %v2291_v56, %s2370_s24 }
 0x132   : > { %v774_v63 = vpop.permute.xlu1 %773  ;;  %1056 = vrot.lane.b32.xlu2 %v2316_v61, %s2375_s7 }
 0x133   : > { %776 = vst.msk [vmem:[#allocation2 + $0x24] sm:$0xf] %vm350_vm6, %v774_v63  ;;  %v768_v1 = vpop.permute.xlu0 %767 }
 0x134   : > { %770 = vst.msk [vmem:[#allocation2 + $0x20] sm:$0xf] %vm350_vm6, %v768_v1  ;;  %v690_v5 = vpop.permute.xlu2 %689 }
 0x135   : > { %794 = vst.msk [vmem:[#allocation2 + $0x20] sm:$0xf] %vm375_vm7, %v792_v36  ;;  %v2315_v36 = vld [vmem:[%s2428_s26 + $0x20] sm:$0xf] }
 0x138   : > { %900 = vrot.lane.b32.xlu1 %v2294_v3, %s2370_s24 }
 0x139   : > { %1062 = vrot.lane.b32.xlu0 %v2317_v4, %s2375_s7 }
 0x13a   : > { %v817_v8 = vpop.permute.xlu1 %816  ;;  %906 = vrot.lane.b32.xlu2 %v2295_v7, %s2370_s24 }
 0x13b   : > { %819 = vst.msk [vmem:[#allocation2 + $0x20] sm:$0xf] %vm400_vm8, %v817_v8  ;;  %v798_v9 = vpop.permute.xlu0 %797 }
 0x13c   : > { %800 = vst.msk [vmem:[#allocation2 + $0x24] sm:$0xf] %vm375_vm7, %v798_v9  ;;  %v732_v12 = vpop.permute.xlu2 %731 }
 0x13d   : > { %825 = vst.msk [vmem:[#allocation2 + $0x24] sm:$0xf] %vm400_vm8, %v823_v43  ;;  %v2318_v43 = vld [vmem:[%s2428_s26 + $0x19] sm:$0xf] }
 0x13e   : > { %843 = vst.msk [vmem:[#allocation2 + $0x20] sm:$0xf] %vm425_vm9, %v841_v58 }
 0x140   : > { %930 = vrot.lane.b32.xlu1 %v2298_v10, %s2371_s25 }
 0x141   : > { %924 = vrot.lane.b32.xlu0 %v2297_v11, %s2371_s25 }
 0x142   : > { %v666_v14 = vpop.permute.xlu1 %665  ;;  %948 = vrot.lane.b32.xlu2 %v2300_v13, %s2372_s27 }
 0x143   : > { %668 = vst.msk [vmem:[#allocation2 + $0x2c] sm:$0xf] %vm266_vm0, %v666_v14  ;;  %v660_v15 = vpop.permute.xlu0 %659 }
 0x144   : > { %662 = vst.msk [vmem:[#allocation2 + $0x28] sm:$0xf] %vm266_vm0, %v660_v15  ;;  %v762_v18 = vpop.permute.xlu2 %761 }
 0x145   : > { %692 = vst.msk [vmem:[#allocation2 + $0x2c] sm:$0xf] %vm278_vm1, %v690_v5 }
 0x148   : > { %972 = vrot.lane.b32.xlu1 %v2303_v16, %s2372_s27 }
 0x149   : > { %954 = vrot.lane.b32.xlu0 %v2301_v17, %s2372_s27 }
 0x14a   : > { %v684_v20 = vpop.permute.xlu1 %683  ;;  %978 = vrot.lane.b32.xlu2 %v2304_v19, %s2372_s27 }
 0x14b   : > { %686 = vst.msk [vmem:[#allocation2 + $0x28] sm:$0xf] %vm278_vm1, %v684_v20  ;;  %v847_v21 = vpop.permute.xlu0 %846 }
 0x14c   : > { %849 = vst.msk [vmem:[#allocation2 + $0x24] sm:$0xf] %vm425_vm9, %v847_v21  ;;  %v804_v25 = vpop.permute.xlu2 %803 }
 0x150   : > { %1002 = vrot.lane.b32.xlu1 %v2307_v22, %s2373_s28 }
 0x151   : > { %996 = vrot.lane.b32.xlu0 %v2306_v23, %s2373_s28 }
 0x152   : > { %v714_v27 = vpop.permute.xlu1 %713  ;;  %1020 = vrot.lane.b32.xlu2 %v2310_v26, %s2374_s30 }
 0x153   : > { %716 = vst.msk [vmem:[#allocation2 + $0x2c] sm:$0xf] %vm287_vm2, %v714_v27  ;;  %v708_v28 = vpop.permute.xlu0 %707  ;;  %v1082_v29 = vld [vmem:[#allocation2 + $0x20] sm:$0xff] }
 0x154   : > { %710 = vst.msk [vmem:[#allocation2 + $0x28] sm:$0xf] %vm287_vm2, %v708_v28  ;;  %v1109_v30 = vsel %vm1095_vm10, %v1082_v29, 0  ;;  %v835_v34 = vpop.permute.xlu2 %834 }
 0x155   : > { %v2883_v31 = vand.u32 4294901760, %v1109_v30  ;;  %734 = vst.msk [vmem:[#allocation2 + $0x28] sm:$0xf] %vm300_vm4, %v732_v12 }
 0x157   : > { %1268 = vmatmul.f32.gmra.mxu1 %v2883_v31  ;;  %v1178_v35 = vsub.f32 %v1109_v30, %v2883_v31 }
 0x158   : > { %1044 = vrot.lane.b32.xlu1 %v2314_v32, %s2374_s30 }
 0x159   : > { %1026 = vrot.lane.b32.xlu0 %v2311_v33, %s2374_s30  ;;  %1332 = vmatmul.f32.gmra.mxu2 %v1178_v35  ;;  %v1179_v37 = vand.u32 4294901760, %v1178_v35 }
 0x15a   : > { %v756_v38 = vpop.permute.xlu1 %755  ;;  %1050 = vrot.lane.b32.xlu2 %v2315_v36, %s2374_s30 }
 0x15b   : > { %758 = vst.msk [vmem:[#allocation2 + $0x28] sm:$0xf] %vm325_vm5, %v756_v38  ;;  %v738_v39 = vpop.permute.xlu0 %737  ;;  %1399 = vmatmul.f32.gmra.mxu3 %v1179_v37  ;;  %v1180_v40 = vsub.f32 %v1178_v35, %v1179_v37 }
 0x15c   : > { %740 = vst.msk [vmem:[#allocation2 + $0x2c] sm:$0xf] %vm300_vm4, %v738_v39  ;;  %v865_v44 = vpop.permute.xlu2 %864 }
 0x15d   : > { %v1181_v41 = vand.u32 4294901760, %v1180_v40  ;;  %764 = vst.msk [vmem:[#allocation2 + $0x2c] sm:$0xf] %vm325_vm5, %v762_v18 }
 0x15e   : > { %867 = vst.msk [vmem:[#allocation2 + $0x30] sm:$0xf] %vm266_vm0, %v865_v44 }
 0x15f   : > { %1182 = vmatmul.f32.gmra.mxu0 %v1181_v41 }
 0x160   : > { %1074 = vrot.lane.b32.xlu1 %v2319_v42, %s2375_s7 }
 0x161   : > { %1068 = vrot.lane.b32.xlu0 %v2318_v43, %s2375_s7 }
 0x162   : > { %v786_v45 = vpop.permute.xlu1 %785 }
 0x163   : > { %788 = vst.msk [vmem:[#allocation2 + $0x2c] sm:$0xf] %vm350_vm6, %v786_v45  ;;  %v780_v47 = vpop.permute.xlu0 %779 }
 0x164   : > { %782 = vst.msk [vmem:[#allocation2 + $0x28] sm:$0xf] %vm350_vm6, %v780_v47  ;;  %v895_v48 = vpop.permute.xlu2 %894 }
 0x165   : > { %806 = vst.msk [vmem:[#allocation2 + $0x28] sm:$0xf] %vm375_vm7, %v804_v25 }
 0x16a   : > { %v829_v49 = vpop.permute.xlu1 %828 }
 0x16b   : > { %831 = vst.msk [vmem:[#allocation2 + $0x28] sm:$0xf] %vm400_vm8, %v829_v49  ;;  %v811_v50 = vpop.permute.xlu0 %810 }
 0x16c   : > { %813 = vst.msk [vmem:[#allocation2 + $0x2c] sm:$0xf] %vm375_vm7, %v811_v50  ;;  %v937_v51 = vpop.permute.xlu2 %936 }
 0x16d   : > { %837 = vst.msk [vmem:[#allocation2 + $0x2c] sm:$0xf] %vm400_vm8, %v835_v34 }
 0x172   : > { %v859_v52 = vpop.permute.xlu1 %858 }
 0x173   : > { %861 = vst.msk [vmem:[#allocation2 + $0x2c] sm:$0xf] %vm425_vm9, %v859_v52  ;;  %v853_v53 = vpop.permute.xlu0 %852 }
 0x174   : > { %855 = vst.msk [vmem:[#allocation2 + $0x28] sm:$0xf] %vm425_vm9, %v853_v53  ;;  %v967_v55 = vpop.permute.xlu2 %966 }
 0x17a   : > { %v889_v54 = vpop.permute.xlu1 %888 }
 0x17b   : > { %891 = vst.msk [vmem:[#allocation2 + $0x30] sm:$0xf] %vm278_vm1, %v889_v54  ;;  %v871_v56 = vpop.permute.xlu0 %870  ;;  %v1083_v58 = vld [vmem:[#allocation2 + $0x28] sm:$0xff] }
 0x17c   : > { %873 = vst.msk [vmem:[#allocation2 + $0x34] sm:$0xf] %vm266_vm0, %v871_v56  ;;  %v1112_v59 = vsel %vm1095_vm10, %v1083_v58, 0  ;;  %v1009_v3 = vpop.permute.xlu2 %1008  ;;  %v2971_v58 = vld [vmem:[%s3279_s2] ss:$0 sm:$0xff] }
 0x17d   : > { %v2913_v61 = vand.u32 4294901760, %v1112_v59  ;;  %897 = vst.msk [vmem:[#allocation2 + $0x34] sm:$0xf] %vm278_vm1, %v895_v48 }
 0x17f   : > { %1272 = vmatmul.f32.gmra.mxu1 %v2913_v61  ;;  %v1186_v62 = vsub.f32 %v1112_v59, %v2913_v61 }
 0x181   : > { %1337 = vmatmul.f32.gmra.mxu2 %v1186_v62  ;;  %v1187_v63 = vand.u32 4294901760, %v1186_v62 }
 0x182   : > { %v919_v0 = vpop.permute.xlu1 %918 }
 0x183   : > { %921 = vst.msk [vmem:[#allocation2 + $0x34] sm:$0xf] %vm287_vm2, %v919_v0  ;;  %v913_v1 = vpop.permute.xlu0 %912  ;;  %1405 = vmatmul.f32.gmra.mxu3 %v1187_v63  ;;  %v1188_v2 = vsub.f32 %v1186_v62, %v1187_v63  ;;  %v1313_v63 = vpop.f32.mrf.mxu2 }
 0x184   : > { %915 = vst.msk [vmem:[#allocation2 + $0x30] sm:$0xf] %vm287_vm2, %v913_v1  ;;  %v1039_v7 = vpop.permute.xlu2 %1038 }
 0x185   : > { %v1189_v4 = vand.u32 4294901760, %v1188_v2  ;;  %939 = vst.msk [vmem:[#allocation2 + $0x30] sm:$0xf] %vm300_vm4, %v937_v51 }
 0x187   : > { %1190 = vmatmul.f32.gmra.mxu0 %v1189_v4 }
 0x18a   : > { %v961_v5 = vpop.permute.xlu1 %960 }
 0x18b   : > { %963 = vst.msk [vmem:[#allocation2 + $0x30] sm:$0xf] %vm325_vm5, %v961_v5  ;;  %v943_v6 = vpop.permute.xlu0 %942 }
 0x18c   : > { %945 = vst.msk [vmem:[#allocation2 + $0x34] sm:$0xf] %vm300_vm4, %v943_v6  ;;  %v1057_v10 = vpop.permute.xlu2 %1056  ;;  %v1318_v6 = vpop.f32.mrf.mxu2 }
 0x18d   : > { %969 = vst.msk [vmem:[#allocation2 + $0x34] sm:$0xf] %vm325_vm5, %v967_v55 }
 0x192   : > { %v991_v8 = vpop.permute.xlu1 %990 }
 0x193   : > { %993 = vst.msk [vmem:[#allocation2 + $0x34] sm:$0xf] %vm350_vm6, %v991_v8  ;;  %v985_v9 = vpop.permute.xlu0 %984 }
 0x194   : > { %987 = vst.msk [vmem:[#allocation2 + $0x30] sm:$0xf] %vm350_vm6, %v985_v9  ;;  %v907_v14 = vpop.permute.xlu2 %906 }
 0x195   : > { %1011 = vst.msk [vmem:[#allocation2 + $0x30] sm:$0xf] %vm375_vm7, %v1009_v3  ;;  %v1376_v3 = vpop.f32.mrf.mxu3 }
 0x19a   : > { %v1033_v11 = vpop.permute.xlu1 %1032 }
 0x19b   : > { %1035 = vst.msk [vmem:[#allocation2 + $0x30] sm:$0xf] %vm400_vm8, %v1033_v11  ;;  %v1015_v12 = vpop.permute.xlu0 %1014 }
 0x19c   : > { %1017 = vst.msk [vmem:[#allocation2 + $0x34] sm:$0xf] %vm375_vm7, %v1015_v12  ;;  %v949_v18 = vpop.permute.xlu2 %948 }
 0x19d   : > { %1041 = vst.msk [vmem:[#allocation2 + $0x34] sm:$0xf] %vm400_vm8, %v1039_v7  ;;  %v1382_v12 = vpop.f32.mrf.mxu3 }
 0x19e   : > { %1059 = vst.msk [vmem:[#allocation2 + $0x30] sm:$0xf] %vm425_vm9, %v1057_v10 }
 0x1a2   : > { %v883_v13 = vpop.permute.xlu1 %882 }
 0x1a3   : > { %885 = vst.msk [vmem:[#allocation2 + $0x3c] sm:$0xf] %vm266_vm0, %v883_v13  ;;  %v877_v15 = vpop.permute.xlu0 %876 }
 0x1a4   : > { %879 = vst.msk [vmem:[#allocation2 + $0x38] sm:$0xf] %vm266_vm0, %v877_v15  ;;  %v979_v25 = vpop.permute.xlu2 %978  ;;  %vm1585_vm0 = vcmask 195716  }
 0x1a5   : > { %909 = vst.msk [vmem:[#allocation2 + $0x3c] sm:$0xf] %vm278_vm1, %v907_v14 }
 0x1aa   : > { %v901_v16 = vpop.permute.xlu1 %900 }
 0x1ab   : > { %903 = vst.msk [vmem:[#allocation2 + $0x38] sm:$0xf] %vm278_vm1, %v901_v16  ;;  %v1063_v17 = vpop.permute.xlu0 %1062  ;;  %vm1608_vm1 = vcmask 60416  }
 0x1ac   : > { %1065 = vst.msk [vmem:[#allocation2 + $0x34] sm:$0xf] %vm425_vm9, %v1063_v17  ;;  %v1021_v33 = vpop.permute.xlu2 %1020  ;;  %v1323_v17 = vpop.f32.mrf.mxu2 }
 0x1b2   : > { %v931_v19 = vpop.permute.xlu1 %930 }
 0x1b3   : > { %933 = vst.msk [vmem:[#allocation2 + $0x3c] sm:$0xf] %vm287_vm2, %v931_v19  ;;  %v925_v20 = vpop.permute.xlu0 %924  ;;  %v1084_v21 = vld [vmem:[#allocation2 + $0x30] sm:$0xff] }
 0x1b4   : > { %927 = vst.msk [vmem:[#allocation2 + $0x38] sm:$0xf] %vm287_vm2, %v925_v20  ;;  %v1115_v22 = vsel %vm1095_vm10, %v1084_v21, 0  ;;  %v1051_v37 = vpop.permute.xlu2 %1050  ;;  %vm1597_vm2 = vcmask 126016  }
 0x1b5   : > { %v1193_v23 = vand.u32 4294901760, %v1115_v22  ;;  %951 = vst.msk [vmem:[#allocation2 + $0x38] sm:$0xf] %vm300_vm4, %v949_v18 }
 0x1b7   : > { %1276 = vmatmul.f32.gmra.mxu1 %v1193_v23  ;;  %v1194_v26 = vsub.f32 %v1115_v22, %v1193_v23 }
 0x1b9   : > { %1342 = vmatmul.f32.gmra.mxu2 %v1194_v26  ;;  %v1195_v27 = vand.u32 4294901760, %v1194_v26 }
 0x1ba   : > { %v973_v28 = vpop.permute.xlu1 %972 }
 0x1bb   : > { %975 = vst.msk [vmem:[#allocation2 + $0x38] sm:$0xf] %vm325_vm5, %v973_v28  ;;  %v955_v29 = vpop.permute.xlu0 %954  ;;  %1411 = vmatmul.f32.gmra.mxu3 %v1195_v27  ;;  %v1196_v30 = vsub.f32 %v1194_v26, %v1195_v27 }
 0x1bc   : > { %957 = vst.msk [vmem:[#allocation2 + $0x3c] sm:$0xf] %vm300_vm4, %v955_v29  ;;  %vm1610_vm4 = vcmask 64516  }
 0x1bd   : > { %v1197_v32 = vand.u32 4294901760, %v1196_v30  ;;  %981 = vst.msk [vmem:[#allocation2 + $0x3c] sm:$0xf] %vm325_vm5, %v979_v25  ;;  %vm1683_vm5 = vcmask 322816  }
 0x1bf   : > { %1198 = vmatmul.f32.gmra.mxu0 %v1197_v32  ;;  %v1328_v32 = vpop.f32.mrf.mxu2 }
 0x1c2   : > { %v1003_v34 = vpop.permute.xlu1 %1002 }
 0x1c3   : > { %1005 = vst.msk [vmem:[#allocation2 + $0x3c] sm:$0xf] %vm350_vm6, %v1003_v34  ;;  %v997_v35 = vpop.permute.xlu0 %996 }
 0x1c4   : > { %999 = vst.msk [vmem:[#allocation2 + $0x38] sm:$0xf] %vm350_vm6, %v997_v35  ;;  %vm1708_vm6 = vcmask 388416  }
 0x1c5   : > { %1023 = vst.msk [vmem:[#allocation2 + $0x38] sm:$0xf] %vm375_vm7, %v1021_v33 }
 0x1ca   : > { %v1045_v36 = vpop.permute.xlu1 %1044 }
 0x1cb   : > { %1047 = vst.msk [vmem:[#allocation2 + $0x38] sm:$0xf] %vm400_vm8, %v1045_v36  ;;  %v1027_v38 = vpop.permute.xlu0 %1026 }
 0x1cc   : > { %1029 = vst.msk [vmem:[#allocation2 + $0x3c] sm:$0xf] %vm375_vm7, %v1027_v38  ;;  %vm1733_vm7 = vcmask 454016  }
 0x1cd   : > { %1053 = vst.msk [vmem:[#allocation2 + $0x3c] sm:$0xf] %vm400_vm8, %v1051_v37  ;;  %vm1758_vm8 = vcmask 519616  }
 0x1d2   : > { %v1075_v39 = vpop.permute.xlu1 %1074 }
 0x1d3   : > { %1077 = vst.msk [vmem:[#allocation2 + $0x3c] sm:$0xf] %vm425_vm9, %v1075_v39  ;;  %v1069_v40 = vpop.permute.xlu0 %1068 }
 0x1d4   : > { %1071 = vst.msk [vmem:[#allocation2 + $0x38] sm:$0xf] %vm425_vm9, %v1069_v40  ;;  %vm1783_vm9 = vcmask 585216  }
 0x1db   : > { %v1085_v41 = vld [vmem:[#allocation2 + $0x38] sm:$0xff] }
 0x1dc   : > { %v1118_v42 = vsel %vm1095_vm10, %v1085_v41, 0  ;;  %vm1818_vm10 = vcmask 588800  }
 0x1dd   : > { %v1201_v43 = vand.u32 4294901760, %v1118_v42 }
 0x1df   : > { %1280 = vmatmul.f32.gmra.mxu1 %v1201_v43  ;;  %v1202_v44 = vsub.f32 %v1118_v42, %v1201_v43 }
 0x1e1   : > { %1347 = vmatmul.f32.gmra.mxu2 %v1202_v44  ;;  %v1203_v45 = vand.u32 4294901760, %v1202_v44 }
 0x1e3   : > { %1417 = vmatmul.f32.gmra.mxu3 %v1203_v45  ;;  %v1204_v47 = vsub.f32 %v1202_v44, %v1203_v45  ;;  %v1333_v45 = vpop.f32.mrf.mxu2 }
 0x1e5   : > { %v1205_v48 = vand.u32 4294901760, %v1204_v47 }
 0x1e7   : > { %1206 = vmatmul.f32.gmra.mxu0 %v1205_v48  ;;  %1507 = vmatmul.f32.vlgmr.msrb.gmra.mxu1 %v2659_v57 }
 0x1ef   : > { %1453 = vmatmul.f32.vlgmr.msrb.gmra.mxu0 %v2659_v57  ;;  %1511 = vmatmul.f32.gmra.mxu1 %v2700_v24  ;;  %v1253_v57 = vpop.f32.mrf.mxu1 }
 0x1f7   : > { %1457 = vmatmul.f32.gmra.mxu0 %v2700_v24  ;;  %1515 = vmatmul.f32.gmra.mxu1 %v2822_v46  ;;  %v1151_v24 = vpop.f32.mrf.mxu0  ;;  %v1257_v49 = vpop.f32.mrf.mxu1 }
 0x1f8   : > { %v1152_v62 = vadd.f32 %v2971_v58, %v1151_v24 }
 0x1fa   : > { %v1254_v0 = vadd.f32 %v1253_v57, %v1152_v62 }
 0x1fc   : > { %v1314_v4 = vadd.f32 %v1313_v63, %v1254_v0 }
 0x1fe   : > { %v1377_v7 = vadd.f32 %v1376_v3, %v1314_v4 }
 0x1ff   : > { %1461 = vmatmul.f32.gmra.mxu0 %v2822_v46  ;;  %1519 = vmatmul.f32.gmra.mxu1 %v2836_v60  ;;  %v1159_v46 = vpop.f32.mrf.mxu0  ;;  %v1261_v50 = vpop.f32.mrf.mxu1 }
 0x200   : > { %v1160_v5 = vadd.f32 %v2971_v58, %v1159_v46 }
 0x202   : > { %v1258_v8 = vadd.f32 %v1257_v49, %v1160_v5 }
 0x204   : > { %v1319_v13 = vadd.f32 %v1318_v6, %v1258_v8 }
 0x206   : > { %v1383_v18 = vadd.f32 %v1382_v12, %v1319_v13 }
 0x207   : > { %1465 = vmatmul.f32.gmra.mxu0 %v2836_v60  ;;  %1523 = vmatmul.f32.gmra.mxu1 %v2883_v31  ;;  %v1167_v51 = vpop.f32.mrf.mxu0  ;;  %v1265_v52 = vpop.f32.mrf.mxu1 }
 0x208   : > { %v1168_v14 = vadd.f32 %v2971_v58, %v1167_v51 }
 0x20a   : > { %v1262_v19 = vadd.f32 %v1261_v50, %v1168_v14  ;;  %v2376_v50 = vmov 0.0  }
 0x20b   : > { %1549 = vst.msk [vmem:[#allocation3] sm:$0x1f] %vm1548_vm12, %v2376_v50 }
 0x20c   : > { %v1324_v25 = vadd.f32 %v1323_v17, %v1262_v19  ;;  %1550 = vst.msk [vmem:[#allocation3 + $0x8] sm:$0x1f] %vm1548_vm12, %v2376_v50 }
 0x20d   : > { %1551 = vst.msk [vmem:[#allocation3 + $0x10] sm:$0x1f] %vm1548_vm12, %v2376_v50 }
 0x20e   : > { %1552 = vst.msk [vmem:[#allocation3 + $0x18] sm:$0x1f] %vm1548_vm12, %v2376_v50 }
 0x20f   : > { %1469 = vmatmul.f32.gmra.mxu0 %v2883_v31  ;;  %1527 = vmatmul.f32.gmra.mxu1 %v2913_v61  ;;  %v1175_v60 = vpop.f32.mrf.mxu0  ;;  %v1269_v53 = vpop.f32.mrf.mxu1  ;;  %1553 = vst.msk [vmem:[#allocation3 + $0x20] sm:$0x1f] %vm1548_vm12, %v2376_v50 }
 0x210   : > { %v1176_v26 = vadd.f32 %v2971_v58, %v1175_v60 }
 0x212   : > { %v1266_v30 = vadd.f32 %v1265_v52, %v1176_v26 }
 0x214   : > { %v1329_v36 = vadd.f32 %v1328_v32, %v1266_v30 }
 0x217   : > { %1473 = vmatmul.f32.gmra.mxu0 %v2913_v61  ;;  %1531 = vmatmul.f32.gmra.mxu1 %v1193_v23  ;;  %v1183_v54 = vpop.f32.mrf.mxu0  ;;  %v2964_v55 = vpop.f32.mrf.mxu1 }
 0x218   : > { %v1184_v37 = vadd.f32 %v2971_v58, %v1183_v54  ;;  %v1338_v54 = vpop.f32.mrf.mxu2 }
 0x21a   : > { %v1270_v42 = vadd.f32 %v1269_v53, %v1184_v37 }
 0x21c   : > { %v1334_v47 = vadd.f32 %v1333_v45, %v1270_v42 }
 0x21f   : > { %1477 = vmatmul.f32.gmra.mxu0 %v1193_v23  ;;  %1535 = vmatmul.f32.gmra.mxu1 %v1201_v43  ;;  %v1191_v31 = vpop.f32.mrf.mxu0  ;;  %v1388_v23 = vpop.f32.mrf.mxu3 }
 0x220   : > { %v1389_v29 = vadd.f32 %v1388_v23, %v1324_v25  ;;  %v1192_v48 = vadd.f32 %v2971_v58, %v1191_v31 }
 0x222   : > { %v1274_v52 = vadd.f32 %v2964_v55, %v1192_v48 }
 0x224   : > { %v1339_v31 = vadd.f32 %v1338_v54, %v1274_v52 }
 0x227   : > { %1481 = vmatmul.f32.gmra.mxu0 %v1201_v43  ;;  %v1394_v39 = vpop.f32.mrf.mxu3 }
 0x228   : > { %v1395_v41 = vadd.f32 %v1394_v39, %v1329_v36 }
 0x22f   : > { %v1400_v46 = vpop.f32.mrf.mxu3 }
 0x230   : > { %v1401_v51 = vadd.f32 %v1400_v46, %v1334_v47 }
 0x234   : > { %v2966_v56 = vpop.f32.mrf.mxu1 }
 0x23c   : > { %v2973_v59 = vpop.f32.mrf.mxu0 }
 0x23d   : > { %v1200_v62 = vadd.f32 %v2971_v58, %v2973_v59 }
 0x23f   : > { %v1278_v4 = vadd.f32 %v2966_v56, %v1200_v62 }
 0x25c   : > { %v2975_v61 = vpop.f32.mrf.mxu1 }
 0x264   : > { %v2978_v1 = vpop.f32.mrf.mxu0  ;;  %v1508_v2 = vpop.f32.mrf.mxu1 }
 0x26c   : > { %v1454_v9 = vpop.f32.mrf.mxu0  ;;  %v1512_v11 = vpop.f32.mrf.mxu1 }
 0x26d   : > { %v1455_v10 = vadd.f32 %v1454_v9, %v1377_v7  ;;  %v1343_v7 = vpop.f32.mrf.mxu2  ;;  %v1208_v9 = vadd.f32 %v2971_v58, %v2978_v1 }
 0x26e   : > { %v1344_v8 = vadd.f32 %v1343_v7, %v1278_v4 }
 0x26f   : > { %v1509_v15 = vadd.f32 %v1508_v2, %v1455_v10  ;;  %v1406_v2 = vpop.f32.mrf.mxu3  ;;  %v1282_v13 = vadd.f32 %v2975_v61, %v1208_v9  ;;  %v1813_v9 = vld [vmem:[%s3280_s3 + $0x40] sm:$0xff] }
 0x270   : > { %v1407_v3 = vadd.f32 %v1406_v2, %v1339_v31 }
 0x271   : > { %1540 = vst.msk [vmem:[%s2985_s12] sm:$0xff] %vm1539_vm11, %v1509_v15  ;;  %v1554_v16 = vmax.f32 %v1509_v15, 0.0 }
 0x273   : > { %1563 = vrot.lane.b32.xlu2 %v1554_v16, %s2369_s23 }
 0x274   : > { %v1458_v20 = vpop.f32.mrf.mxu0  ;;  %v1516_v22 = vpop.f32.mrf.mxu1 }
 0x275   : > { %v1459_v21 = vadd.f32 %v1458_v20, %v1383_v18  ;;  %v1348_v16 = vpop.f32.mrf.mxu2 }
 0x276   : > { %v1349_v17 = vadd.f32 %v1348_v16, %v1282_v13 }
 0x277   : > { %v1513_v27 = vadd.f32 %v1512_v11, %v1459_v21  ;;  %v1412_v11 = vpop.f32.mrf.mxu3 }
 0x278   : > { %v1413_v12 = vadd.f32 %v1412_v11, %v1344_v8 }
 0x279   : > { %1541 = vst.msk [vmem:[%s2985_s12 + $0x8] sm:$0xff] %vm1539_vm11, %v1513_v27  ;;  %v1555_v28 = vmax.f32 %v1513_v27, 0.0 }
 0x27b   : > { %1572 = vrot.lane.b32.xlu2 %v1555_v28, %s2369_s23 }
 0x27c   : > { %v1462_v33 = vpop.f32.mrf.mxu0  ;;  %v1520_v35 = vpop.f32.mrf.mxu1 }
 0x27d   : > { %v1463_v34 = vadd.f32 %v1462_v33, %v1389_v29 }
 0x27f   : > { %v1517_v38 = vadd.f32 %v1516_v22, %v1463_v34  ;;  %v1418_v58 = vpop.f32.mrf.mxu3 }
 0x280   : > { %v1419_v1 = vadd.f32 %v1418_v58, %v1349_v17 }
 0x281   : > { %1542 = vst.msk [vmem:[%s2985_s12 + $0x10] sm:$0xff] %vm1539_vm11, %v1517_v38  ;;  %v1556_v40 = vmax.f32 %v1517_v38, 0.0 }
 0x283   : > { %1580 = vrot.lane.b32.xlu0 %v1556_v40, %s2374_s30 }
 0x284   : > { %v1466_v43 = vpop.f32.mrf.mxu0  ;;  %v1524_v24 = vpop.f32.mrf.mxu1 }
 0x285   : > { %v1467_v44 = vadd.f32 %v1466_v43, %v1395_v41 }
 0x287   : > { %v1521_v57 = vadd.f32 %v1520_v35, %v1467_v44 }
 0x289   : > { %1543 = vst.msk [vmem:[%s2985_s12 + $0x18] sm:$0xff] %vm1539_vm11, %v1521_v57  ;;  %v1557_v49 = vmax.f32 %v1521_v57, 0.0 }
 0x28b   : > { %1588 = vrot.lane.b32.xlu0 %v1557_v49, %s2374_s30 }
 0x28c   : > { %v1470_v60 = vpop.f32.mrf.mxu0  ;;  %v1528_v55 = vpop.f32.mrf.mxu1 }
 0x28d   : > { %v1471_v53 = vadd.f32 %v1470_v60, %v1401_v51 }
 0x28f   : > { %v1525_v63 = vadd.f32 %v1524_v24, %v1471_v53 }
 0x291   : > { %1544 = vst.msk [vmem:[%s2985_s12 + $0x20] sm:$0xff] %vm1539_vm11, %v1525_v63  ;;  %v1558_v0 = vmax.f32 %v1525_v63, 0.0 }
 0x293   : > { %1594 = vrot.lane.b32.xlu1 %v1558_v0, %s2363_s29 }
 0x294   : > { %v1474_v5 = vpop.f32.mrf.mxu0  ;;  %v1532_v56 = vpop.f32.mrf.mxu1 }
 0x295   : > { %v1475_v6 = vadd.f32 %v1474_v5, %v1407_v3 }
 0x297   : > { %v1529_v59 = vadd.f32 %v1528_v55, %v1475_v6 }
 0x299   : > { %1545 = vst.msk [vmem:[%s2985_s12 + $0x28] sm:$0xff] %vm1539_vm11, %v1529_v59  ;;  %v1559_v10 = vmax.f32 %v1529_v59, 0.0  ;;  %v3068_v59 = vand.u32 4294901760, %v1813_v9 }
 0x29b   : > { %1602 = vrot.lane.b32.xlu1 %v1559_v10, %s2363_s29  ;;  %1833 = vmatpush.msrb.mxu2 %v3068_v59  ;;  %v3072_v10 = vsub.f32 %v1813_v9, %v3068_v59 }
 0x29c   : > { %v1478_v14 = vpop.f32.mrf.mxu0  ;;  %v1536_v21 = vpop.f32.mrf.mxu1 }
 0x29d   : > { %v1479_v15 = vadd.f32 %v1478_v14, %v1413_v12  ;;  %v1876_v11 = vand.u32 4294901760, %v3072_v10  ;;  %v1812_v14 = vld [vmem:[%s3280_s3 + $0x38] sm:$0xff] }
 0x29f   : > { %v1533_v18 = vadd.f32 %v1532_v56, %v1479_v15  ;;  %v1877_v13 = vsub.f32 %v3072_v10, %v1876_v11  ;;  %v3081_v15 = vand.u32 4294901760, %v1812_v14 }
 0x2a1   : > { %1546 = vst.msk [vmem:[%s2985_s12 + $0x30] sm:$0xff] %vm1539_vm11, %v1533_v18  ;;  %v1560_v34 = vmax.f32 %v1533_v18, 0.0  ;;  %v1878_v56 = vand.u32 4294901760, %v1877_v13  ;;  %1835 = vmatpush.msrb.mxu2 %v3081_v15  ;;  %v3086_v18 = vsub.f32 %v1812_v14, %v3081_v15 }
 0x2a3   : > { %1879 = vmatpush.msrb.mxu3 %v1878_v56 }
 0x2a4   : > { %v1482_v19 = vpop.f32.mrf.mxu0 }
 0x2a5   : > { %v1483_v20 = vadd.f32 %v1482_v19, %v1419_v1  ;;  %v1882_v1 = vand.u32 4294901760, %v3086_v18  ;;  %v1811_v19 = vld [vmem:[%s3280_s3 + $0x30] sm:$0xff] }
 0x2a7   : > { %v1537_v22 = vadd.f32 %v1536_v21, %v1483_v20  ;;  %v1883_v20 = vsub.f32 %v3086_v18, %v1882_v1  ;;  %v3099_v21 = vand.u32 4294901760, %v1811_v19 }
 0x2a9   : > { %1547 = vst.msk [vmem:[%s2985_s12 + $0x38] sm:$0xff] %vm1539_vm11, %v1537_v22  ;;  %v1561_v37 = vmax.f32 %v1537_v22, 0.0  ;;  %v1884_v22 = vand.u32 4294901760, %v1883_v20  ;;  %1837 = vmatpush.msrb.mxu2 %v3099_v21 }
 0x2ab   : > { %1885 = vmatpush.msrb.mxu3 %v1884_v22 }
 0x2cd   : > { %v1564_v61 = vpop.permute.xlu2 %1563 }
 0x2ce   : > { %1567 = vst.msk [vmem:[#allocation3] sm:$0xf] %vm1566_vm13, %v1564_v61 }
 0x2cf   : > { %1570 = vst.msk [vmem:[#allocation3 + $0x4] sm:$0xf0] %vm1569_vm14, %v1564_v61  ;;  %v3103_v61 = vsub.f32 %v1811_v19, %v3099_v21 }
 0x2d5   : > { %v1573_v23 = vpop.permute.xlu2 %1572 }
 0x2d6   : > { %1576 = vst.msk [vmem:[#allocation3 + $0x10] sm:$0xf] %vm1566_vm13, %v1573_v23 }
 0x2d7   : > { %1578 = vst.msk [vmem:[#allocation3 + $0x14] sm:$0xf0] %vm1569_vm14, %v1573_v23  ;;  %v1888_v23 = vand.u32 4294901760, %v3103_v61 }
 0x2f5   : > { %v1581_v25 = vpop.permute.xlu0 %1580 }
 0x2f6   : > { %1584 = vst.msk [vmem:[#allocation3 + $0x1] sm:$0xf] %vm1583_vm15, %v1581_v25 }
 0x2f7   : > { %1586 = vst.msk [vmem:[#allocation3 + $0x5] sm:$0xf0] %vm1585_vm0, %v1581_v25 }
 0x2fd   : > { %v1589_v26 = vpop.permute.xlu0 %1588  ;;  %v1678_v27 = vld [vmem:[#allocation3] sm:$0xf] }
 0x2fe   : > { %v1654_v28 = vld [vmem:[#allocation3] sm:$0xf]  ;;  %1591 = vst.msk [vmem:[#allocation3 + $0x11] sm:$0xf] %vm1583_vm15, %v1589_v26  ;;  %1680 = vrot.lane.b32.xlu0 %v1678_v27, %s2363_s29  ;;  %v1810_v27 = vld [vmem:[%s3280_s3 + $0x28] sm:$0xff] }
 0x2ff   : > { %v1630_v29 = vld [vmem:[#allocation3 + $0x1] sm:$0xf]  ;;  %1656 = vrot.lane.b32.xlu1 %v1654_v28, %s2363_s29  ;;  %1592 = vst.msk [vmem:[#allocation3 + $0x15] sm:$0xf0] %vm1585_vm0, %v1589_v26  ;;  %v1889_v26 = vsub.f32 %v3103_v61, %v1888_v23 }
 0x300   : > { %v1614_v30 = vld [vmem:[#allocation3] sm:$0xf]  ;;  %1632 = vrot.lane.b32.xlu2 %v1630_v29, %s2374_s30  ;;  %v1808_v29 = vld [vmem:[%s3280_s3 + $0x18] sm:$0xff] }
 0x301   : > { %v1622_v32 = vld [vmem:[#allocation3] sm:$0xf]  ;;  %1615 = vst.msk [vmem:[#allocation4] sm:$0xf] %vm1608_vm1, %v1614_v30  ;;  %v1890_v30 = vand.u32 4294901760, %v1889_v26 }
 0x302   : > { %1623 = vst.msk [vmem:[#allocation4] sm:$0xf] %vm1597_vm2, %v1622_v32  ;;  %v1703_v35 = vld [vmem:[#allocation3 + $0x1] sm:$0xf]  ;;  %v3120_v32 = vand.u32 4294901760, %v1810_v27 }
 0x303   : > { %v1809_v28 = vld [vmem:[%s3280_s3 + $0x20] sm:$0xff]  ;;  %1891 = vmatpush.msrb.mxu3 %v1890_v30 }
 0x304   : > { %1839 = vmatpush.msrb.mxu2 %v3120_v32 }
 0x305   : > { %v1595_v33 = vpop.permute.xlu1 %1594 }
 0x306   : > { %1598 = vst.msk [vmem:[#allocation3 + $0x8] sm:$0xf] %vm1597_vm2, %v1595_v33 }
 0x307   : > { %1600 = vst.msk [vmem:[#allocation3 + $0xc] sm:$0xf0] %vm1599_vm3, %v1595_v33  ;;  %v3122_v33 = vand.u32 4294901760, %v1809_v28 }
 0x308   : > { %1705 = vrot.lane.b32.xlu2 %v1703_v35, %s2369_s23  ;;  %1609 = vst.msk [vmem:[#allocation3 + $0x9] sm:$0xf] %vm1608_vm1, %v1560_v34  ;;  %v1807_v35 = vld [vmem:[%s3280_s3 + $0x10] sm:$0xff] }
 0x309   : > { %1611 = vst.msk [vmem:[#allocation3 + $0xd] sm:$0xf0] %vm1610_vm4, %v1560_v34  ;;  %v3124_v34 = vand.u32 4294901760, %v1808_v29  ;;  %1841 = vmatpush.msrb.mxu2 %v3122_v33 }
 0x30b   : > { %1843 = vmatpush.msrb.mxu2 %v3124_v34 }
 0x30d   : > { %v1603_v36 = vpop.permute.xlu1 %1602 }
 0x30e   : > { %1605 = vst.msk [vmem:[#allocation3 + $0x18] sm:$0xf] %vm1597_vm2, %v1603_v36 }
 0x30f   : > { %1607 = vst.msk [vmem:[#allocation3 + $0x1c] sm:$0xf0] %vm1599_vm3, %v1603_v36  ;;  %v1636_v38 = vld [vmem:[#allocation3 + $0x9] sm:$0xf]  ;;  %v3129_v36 = vand.u32 4294901760, %v1807_v35 }
 0x310   : > { %v1685_v39 = vld [vmem:[#allocation3 + $0x8] sm:$0xf]  ;;  %1612 = vst.msk [vmem:[#allocation3 + $0x19] sm:$0xf] %vm1608_vm1, %v1561_v37  ;;  %1638 = vrot.lane.b32.xlu0 %v1636_v38, %s2374_s30  ;;  %v1735_v45 = vld [vmem:[#allocation3 + $0x10] sm:$0xf]  ;;  %v3136_v38 = vsub.f32 %v1809_v28, %v3122_v33 }
 0x311   : > { %1687 = vrot.lane.b32.xlu1 %v1685_v39, %s2363_s29  ;;  %v1660_v40 = vld [vmem:[#allocation3 + $0x8] sm:$0xf]  ;;  %1613 = vst.msk [vmem:[#allocation3 + $0x1d] sm:$0xf0] %vm1610_vm4, %v1561_v37  ;;  %v1618_v57 = vld [vmem:[#allocation3 + $0x10] sm:$0xf]  ;;  %v3132_v37 = vsub.f32 %v1810_v27, %v3120_v32  ;;  %v3139_v39 = vsub.f32 %v1808_v29, %v3124_v34  ;;  %1845 = vmatpush.msrb.mxu2 %v3129_v36 }
 0x312   : > { %1662 = vrot.lane.b32.xlu2 %v1660_v40, %s2363_s29  ;;  %v1616_v41 = vld [vmem:[#allocation3 + $0x8] sm:$0xf]  ;;  %v1626_v24 = vld [vmem:[#allocation3 + $0x10] sm:$0xf]  ;;  %1619 = vst.msk [vmem:[#allocation4 + $0x8] sm:$0xf] %vm1608_vm1, %v1618_v57  ;;  %v3142_v40 = vsub.f32 %v1807_v35, %v3129_v36 }
 0x313   : > { %1617 = vst.msk [vmem:[#allocation4 + $0x4] sm:$0xf] %vm1608_vm1, %v1616_v41  ;;  %v1624_v42 = vld [vmem:[#allocation3 + $0x8] sm:$0xf]  ;;  %v1760_v46 = vld [vmem:[#allocation3 + $0x10] sm:$0xf] }
 0x314   : > { %1625 = vst.msk [vmem:[#allocation4 + $0x4] sm:$0xf] %vm1597_vm2, %v1624_v42  ;;  %v1710_v43 = vld [vmem:[#allocation3 + $0x9] sm:$0xf]  ;;  %v1785_v51 = vld [vmem:[#allocation3 + $0x11] sm:$0xf] }
 0x315   : > { %v1728_v44 = vld [vmem:[#allocation3 + $0x8] sm:$0xf]  ;;  %1627 = vst.msk [vmem:[#allocation4 + $0x8] sm:$0xf] %vm1597_vm2, %v1626_v24  ;;  %v1642_v52 = vld [vmem:[#allocation3 + $0x11] sm:$0xf] }
 0x316   : > { %v1753_v49 = vld [vmem:[#allocation3 + $0x8] sm:$0xf]  ;;  %v1691_v60 = vld [vmem:[#allocation3 + $0x10] sm:$0xf]  ;;  %v1894_v41 = vand.u32 4294901760, %v3132_v37  ;;  %v1900_v42 = vand.u32 4294901760, %v3136_v38 }
 0x317   : > { %v1620_v47 = vld [vmem:[#allocation3 + $0x18] sm:$0xf]  ;;  %v1778_v50 = vld [vmem:[#allocation3 + $0x9] sm:$0xf]  ;;  %v1666_v53 = vld [vmem:[#allocation3 + $0x10] sm:$0xf] }
 0x318   : > { %1712 = vrot.lane.b32.xlu0 %v1710_v43, %s2369_s23  ;;  %v1628_v48 = vld [vmem:[#allocation3 + $0x18] sm:$0xf]  ;;  %1621 = vst.msk [vmem:[#allocation4 + $0xc] sm:$0xf] %vm1608_vm1, %v1620_v47  ;;  %v1716_v54 = vld [vmem:[#allocation3 + $0x11] sm:$0xf]  ;;  %v1895_v57 = vsub.f32 %v3132_v37, %v1894_v41  ;;  %v1901_v24 = vsub.f32 %v3136_v38, %v1900_v42 }
 0x319   : > { %1730 = vrot.lane.b32.xlu1 %v1728_v44, %s2377_s13  ;;  %1629 = vst.msk [vmem:[#allocation4 + $0xc] sm:$0xf] %vm1597_vm2, %v1628_v48  ;;  %v1648_v31 = vld [vmem:[#allocation3 + $0x19] sm:$0xf]  ;;  %v1747_v55 = vld [vmem:[#allocation3 + $0x20] sm:$0xf] }
 0x31a   : > { %1737 = vrot.lane.b32.xlu2 %v1735_v45, %s2377_s13  ;;  %v1697_v62 = vld [vmem:[#allocation3 + $0x18] sm:$0xf]  ;;  %v1772_v4 = vld [vmem:[#allocation3 + $0x20] sm:$0xf]  ;;  %v1906_v43 = vand.u32 4294901760, %v3139_v39  ;;  %v1912_v47 = vand.u32 4294901760, %v3142_v40 }
 0x31b   : > { %v1672_v63 = vld [vmem:[#allocation3 + $0x18] sm:$0xf]  ;;  %v1797_v6 = vld [vmem:[#allocation3 + $0x21] sm:$0xf] }
 0x31c   : > { %v1722_v0 = vld [vmem:[#allocation3 + $0x19] sm:$0xf] }
 0x31d   : > { %v1741_v2 = vld [vmem:[#allocation3 + $0x18] sm:$0xf] }
 0x31e   : > { %v1766_v3 = vld [vmem:[#allocation3 + $0x18] sm:$0xf] }
 0x31f   : > { %v1791_v5 = vld [vmem:[#allocation3 + $0x19] sm:$0xf] }
 0x320   : > { %1755 = vrot.lane.b32.xlu0 %v1753_v49, %s2377_s13  ;;  %v1907_v49 = vsub.f32 %v3139_v39, %v1906_v43 }
 0x321   : > { %1762 = vrot.lane.b32.xlu1 %v1760_v46, %s2377_s13  ;;  %v1896_v46 = vand.u32 4294901760, %v1895_v57 }
 0x322   : > { %1780 = vrot.lane.b32.xlu2 %v1778_v50, %s2378_s14  ;;  %v1902_v50 = vand.u32 4294901760, %v1901_v24 }
 0x323   : > { %1897 = vmatpush.msrb.mxu3 %v1896_v46 }
 0x325   : > { %1903 = vmatpush.msrb.mxu3 %v1902_v50 }
 0x328   : > { %1787 = vrot.lane.b32.xlu0 %v1785_v51, %s2378_s14  ;;  %v1913_v51 = vsub.f32 %v3142_v40, %v1912_v47 }
 0x329   : > { %1644 = vrot.lane.b32.xlu1 %v1642_v52, %s2374_s30  ;;  %v1806_v52 = vld [vmem:[%s3280_s3 + $0x8] sm:$0xff] }
 0x32a   : > { %1693 = vrot.lane.b32.xlu2 %v1691_v60, %s2363_s29  ;;  %v3171_v60 = vand.u32 4294901760, %v1806_v52 }
 0x32c   : > { %1847 = vmatpush.msrb.mxu2 %v3171_v60 }
 0x330   : > { %1668 = vrot.lane.b32.xlu0 %v1666_v53, %s2363_s29  ;;  %v1805_v53 = vld [vmem:[%s3280_s3] sm:$0xff] }
 0x331   : > { %1718 = vrot.lane.b32.xlu1 %v1716_v54, %s2369_s23  ;;  %v1908_v54 = vand.u32 4294901760, %v1907_v49 }
 0x332   : > { %1650 = vrot.lane.b32.xlu2 %v1648_v31, %s2374_s30  ;;  %v3176_v31 = vand.u32 4294901760, %v1805_v53 }
 0x333   : > { %1909 = vmatpush.msrb.mxu3 %v1908_v54 }
 0x334   : > { %1849 = vmatpush.msrb.mxu2 %v3176_v31 }
 0x336   : > { %1946 = vmatpush.msra.mxu2 %v3072_v10 }
 0x338   : > { %1699 = vrot.lane.b32.xlu0 %v1697_v62, %s2363_s29  ;;  %v3179_v62 = vsub.f32 %v1806_v52, %v3171_v60  ;;  %1949 = vmatpush.msra.mxu2 %v3086_v18 }
 0x339   : > { %1674 = vrot.lane.b32.xlu1 %v1672_v63, %s2363_s29  ;;  %v1914_v63 = vand.u32 4294901760, %v1913_v51 }
 0x33a   : > { %1724 = vrot.lane.b32.xlu2 %v1722_v0, %s2369_s23  ;;  %v3183_v0 = vsub.f32 %v1805_v53, %v3176_v31  ;;  %1952 = vmatpush.msra.mxu2 %v3103_v61 }
 0x33b   : > { %1915 = vmatpush.msrb.mxu3 %v1914_v63 }
 0x33c   : > { %1955 = vmatpush.msra.mxu2 %v3132_v37 }
 0x33e   : > { %1958 = vmatpush.msra.mxu2 %v3136_v38 }
 0x340   : > { %1743 = vrot.lane.b32.xlu0 %v1741_v2, %s2377_s13  ;;  %1961 = vmatpush.msra.mxu2 %v3139_v39 }
 0x341   : > { %1749 = vrot.lane.b32.xlu1 %v1747_v55, %s2377_s13 }
 0x342   : > { %1768 = vrot.lane.b32.xlu2 %v1766_v3, %s2377_s13  ;;  %v1918_v3 = vand.u32 4294901760, %v3179_v62  ;;  %1964 = vmatpush.msra.mxu2 %v3142_v40 }
 0x344   : > { %1967 = vmatpush.msra.mxu2 %v3179_v62 }
 0x346   : > { %1970 = vmatpush.msra.mxu2 %v3183_v0 }
 0x348   : > { %1774 = vrot.lane.b32.xlu0 %v1772_v4, %s2377_s13  ;;  %s2323_s13 = sshll.u32 %s3285_s22, 4 }
 0x349   : > { %1793 = vrot.lane.b32.xlu1 %v1791_v5, %s2378_s14  ;;  %v1924_v5 = vand.u32 4294901760, %v3183_v0  ;;  %s264_s15 = scalar_lea.vmem %s3283_s6, %s2323_s13 }
 0x34a   : > { %1799 = vrot.lane.b32.xlu2 %v1797_v6, %s2378_s14  ;;  %v1919_v6 = vsub.f32 %v3179_v62, %v1918_v3 }
 0x35a   : > { %v1633_v7 = vpop.permute.xlu2 %1632 }
 0x35b   : > { %1635 = vst.msk [vmem:[#allocation4] sm:$0xf] %vm1583_vm15, %v1633_v7  ;;  %v1925_v7 = vsub.f32 %v3183_v0, %v1924_v5 }
 0x35d   : > { %v1926_v9 = vand.u32 4294901760, %v1925_v7 }
 0x362   : > { %v1706_v8 = vpop.permute.xlu2 %1705 }
 0x36c   : > { %v1663_v12 = vpop.permute.xlu2 %1662 }
 0x370   : > { %v1681_v16 = vpop.permute.xlu0 %1680 }
 0x371   : > { %v1657_v17 = vpop.permute.xlu1 %1656 }
 0x372   : > { %1659 = vst.msk [vmem:[#allocation4] sm:$0xf] %vm1566_vm13, %v1657_v17 }
 0x373   : > { %1684 = vst.msk [vmem:[#allocation4] sm:$0xf] %vm1683_vm5, %v1681_v16 }
 0x374   : > { %v3089_v58 = vpop.permute.xlu2 %1737  ;;  %1709 = vst.msk [vmem:[#allocation4] sm:$0xf] %vm1708_vm6, %v1706_v8  ;;  %v1920_v8 = vand.u32 4294901760, %v1919_v6 }
 0x376   : > { %1921 = vmatpush.msrb.mxu3 %v1920_v8 }
 0x378   : > { %1927 = vmatpush.msrb.mxu3 %v1926_v9 }
 0x37a   : > { %1990 = vmatpush.msra.mxu3 %v3068_v59 }
 0x37c   : > { %v3106_v25 = vpop.permute.xlu2 %1780  ;;  %1992 = vmatpush.msra.mxu3 %v3081_v15 }
 0x37e   : > { %1994 = vmatpush.msra.mxu3 %v3099_v21 }
 0x380   : > { %1996 = vmatpush.msra.mxu3 %v3120_v32 }
 0x382   : > { %v1639_v44 = vpop.permute.xlu0 %1638  ;;  %1998 = vmatpush.msra.mxu3 %v3122_v33 }
 0x383   : > { %v1688_v45 = vpop.permute.xlu1 %1687  ;;  %1641 = vst.msk [vmem:[#allocation4 + $0x4] sm:$0xf] %vm1583_vm15, %v1639_v44 }
 0x384   : > { %v3150_v48 = vpop.permute.xlu2 %1693  ;;  %1665 = vst.msk [vmem:[#allocation4 + $0x4] sm:$0xf] %vm1566_vm13, %v1663_v12  ;;  %2000 = vmatpush.msra.mxu3 %v3124_v34 }
 0x385   : > { %1690 = vst.msk [vmem:[#allocation4 + $0x4] sm:$0xf] %vm1683_vm5, %v1688_v45 }
 0x386   : > { %2002 = vmatpush.msra.mxu3 %v3129_v36 }
 0x388   : > { %2004 = vmatpush.msra.mxu3 %v3171_v60 }
 0x38a   : > { %v1713_v2 = vpop.permute.xlu0 %1712  ;;  %2006 = vmatpush.msra.mxu3 %v3176_v31 }
 0x38b   : > { %v1731_v55 = vpop.permute.xlu1 %1730  ;;  %1715 = vst.msk [vmem:[#allocation4 + $0x4] sm:$0xf] %vm1708_vm6, %v1713_v2 }
 0x38c   : > { %v1651_v4 = vpop.permute.xlu2 %1650  ;;  %1734 = vst.msk [vmem:[#allocation4] sm:$0xf] %vm1733_vm7, %v1731_v55 }
 0x38d   : > { %1740 = vst.msk [vmem:[#allocation4 + $0x4] sm:$0xf] %vm1733_vm7, %v3089_v58 }
 0x38e   : > { %1653 = vst.msk [vmem:[#allocation4 + $0xc] sm:$0xf] %vm1583_vm15, %v1651_v4 }
 0x392   : > { %v1756_v12 = vpop.permute.xlu0 %1755 }
 0x393   : > { %v1763_v13 = vpop.permute.xlu1 %1762  ;;  %1759 = vst.msk [vmem:[#allocation4] sm:$0xf] %vm1758_vm8, %v1756_v12 }
 0x394   : > { %1784 = vst.msk [vmem:[#allocation4] sm:$0xf] %vm1783_vm9, %v3106_v25  ;;  %v1725_v25 = vpop.permute.xlu2 %1724 }
 0x395   : > { %1765 = vst.msk [vmem:[#allocation4 + $0x4] sm:$0xf] %vm1758_vm8, %v1763_v13 }
 0x39a   : > { %v1788_v56 = vpop.permute.xlu0 %1787 }
 0x39b   : > { %v1645_v14 = vpop.permute.xlu1 %1644  ;;  %1790 = vst.msk [vmem:[#allocation4 + $0x4] sm:$0xf] %vm1783_vm9, %v1788_v56 }
 0x39c   : > { %1647 = vst.msk [vmem:[#allocation4 + $0x8] sm:$0xf] %vm1583_vm15, %v1645_v14 }
 0x3a2   : > { %v1669_v16 = vpop.permute.xlu0 %1668  ;;  %v1803_v58 = vld [vmem:[#allocation4] sm:$0xff] }
 0x3a3   : > { %v1719_v17 = vpop.permute.xlu1 %1718  ;;  %1671 = vst.msk [vmem:[#allocation4 + $0x8] sm:$0xf] %vm1566_vm13, %v1669_v16  ;;  %v1820_v19 = vsel %vm1818_vm10, %v1803_v58, 0 }
 0x3a4   : > { %1696 = vst.msk [vmem:[#allocation4 + $0x8] sm:$0xf] %vm1683_vm5, %v3150_v48  ;;  %v1850_v20 = vand.u32 4294901760, %v1820_v19 }
 0x3a5   : > { %1721 = vst.msk [vmem:[#allocation4 + $0x8] sm:$0xf] %vm1708_vm6, %v1719_v17 }
 0x3a6   : > { %1929 = vmatmul.f32.vlgmr.msrb.gmra.mxu3 %v1850_v20  ;;  %v1851_v22 = vsub.f32 %v1820_v19, %v1850_v20 }
 0x3a7   : > { %2080 = vmatpush.msrb.mxu3 %v3068_v59  ;;  %v1769_v59 = vpop.permute.xlu2 %1768 }
 0x3a8   : > { %v1852_v26 = vand.u32 4294901760, %v1851_v22 }
 0x3a9   : > { %2082 = vmatpush.msrb.mxu3 %v3081_v15 }
 0x3aa   : > { %v1700_v27 = vpop.permute.xlu0 %1699  ;;  %v1853_v29 = vsub.f32 %v1851_v22, %v1852_v26 }
 0x3ab   : > { %v1675_v28 = vpop.permute.xlu1 %1674  ;;  %2084 = vmatpush.msrb.mxu3 %v3099_v21 }
 0x3ac   : > { %1677 = vst.msk [vmem:[#allocation4 + $0xc] sm:$0xf] %vm1566_vm13, %v1675_v28  ;;  %v1854_v30 = vand.u32 4294901760, %v1853_v29 }
 0x3ad   : > { %1702 = vst.msk [vmem:[#allocation4 + $0xc] sm:$0xf] %vm1683_vm5, %v1700_v27  ;;  %2086 = vmatpush.msrb.mxu3 %v3120_v32 }
 0x3ae   : > { %1727 = vst.msk [vmem:[#allocation4 + $0xc] sm:$0xf] %vm1708_vm6, %v1725_v25  ;;  %1855 = vmatmul.f32.vlgmr.msrb.gmra.mxu2 %v1854_v30 }
 0x3af   : > { %2030 = vmatpush.msrb.mxu2 %v1876_v11  ;;  %2088 = vmatpush.msrb.mxu3 %v3122_v33  ;;  %v1800_v18 = vpop.permute.xlu2 %1799 }
 0x3b1   : > { %2034 = vmatpush.msrb.mxu2 %v1882_v1  ;;  %2090 = vmatpush.msrb.mxu3 %v3124_v34 }
 0x3b2   : > { %v1744_v15 = vpop.permute.xlu0 %1743 }
 0x3b3   : > { %v1750_v21 = vpop.permute.xlu1 %1749  ;;  %1746 = vst.msk [vmem:[#allocation4 + $0x8] sm:$0xf] %vm1733_vm7, %v1744_v15  ;;  %2038 = vmatpush.msrb.mxu2 %v1888_v23  ;;  %2092 = vmatpush.msrb.mxu3 %v3129_v36 }
 0x3b4   : > { %1771 = vst.msk [vmem:[#allocation4 + $0x8] sm:$0xf] %vm1758_vm8, %v1769_v59 }
 0x3b5   : > { %1752 = vst.msk [vmem:[#allocation4 + $0xc] sm:$0xf] %vm1733_vm7, %v1750_v21  ;;  %2042 = vmatpush.msrb.mxu2 %v1894_v41  ;;  %2094 = vmatpush.msrb.mxu3 %v3171_v60 }
 0x3b7   : > { %2046 = vmatpush.msrb.mxu2 %v1900_v42  ;;  %2096 = vmatpush.msrb.mxu3 %v3176_v31  ;;  %v2352_v42 = vld [vmem:[%s3281_s4] ss:$0 sm:$0xff] }
 0x3b9   : > { %2050 = vmatpush.msrb.mxu2 %v1906_v43 }
 0x3ba   : > { %v1775_v10 = vpop.permute.xlu0 %1774 }
 0x3bb   : > { %v1794_v11 = vpop.permute.xlu1 %1793  ;;  %1777 = vst.msk [vmem:[#allocation4 + $0xc] sm:$0xf] %vm1758_vm8, %v1775_v10  ;;  %2054 = vmatpush.msrb.mxu2 %v1912_v47 }
 0x3bc   : > { %1802 = vst.msk [vmem:[#allocation4 + $0xc] sm:$0xf] %vm1783_vm9, %v1800_v18 }
 0x3bd   : > { %1796 = vst.msk [vmem:[#allocation4 + $0x8] sm:$0xf] %vm1783_vm9, %v1794_v11  ;;  %2058 = vmatpush.msrb.mxu2 %v1918_v3 }
 0x3bf   : > { %2062 = vmatpush.msrb.mxu2 %v1924_v5 }
 0x3c4   : > { %v1804_v1 = vld [vmem:[#allocation4 + $0x8] sm:$0xff] }
 0x3c5   : > { %v1823_v61 = vsel %vm1818_vm10, %v1804_v1, 0 }
 0x3c6   : > { %v1858_v23 = vand.u32 4294901760, %v1823_v61 }
 0x3c8   : > { %1933 = vmatmul.f32.gmra.mxu3 %v1858_v23  ;;  %v1859_v32 = vsub.f32 %v1823_v61, %v1858_v23 }
 0x3ca   : > { %v1860_v33 = vand.u32 4294901760, %v1859_v32 }
 0x3cc   : > { %v1861_v34 = vsub.f32 %v1859_v32, %v1860_v33 }
 0x3ce   : > { %v1862_v35 = vand.u32 4294901760, %v1861_v34 }
 0x3d0   : > { %1863 = vmatmul.f32.gmra.mxu2 %v1862_v35  ;;  %2010 = vmatmul.f32.vlgmr.msra.gmra.mxu3 %v1852_v26 }
 0x3d8   : > { %1973 = vmatmul.f32.vlgmr.msra.gmra.mxu2 %v1851_v22  ;;  %2016 = vmatmul.f32.gmra.mxu3 %v1860_v33 }
 0x3e0   : > { %1978 = vmatmul.f32.gmra.mxu2 %v1859_v32  ;;  %2098 = vmatmul.f32.vlgmr.msrb.gmra.mxu3 %v1850_v20 }
 0x3e8   : > { %2064 = vmatmul.f32.vlgmr.msrb.gmra.mxu2 %v1850_v20  ;;  %2102 = vmatmul.f32.gmra.mxu3 %v1858_v23 }
 0x3f0   : > { %2068 = vmatmul.f32.gmra.mxu2 %v1858_v23 }
 0x429   : > { %v1930_v36 = vpop.f32.mrf.mxu3 }
 0x431   : > { %v1856_v37 = vpop.f32.mrf.mxu2 }
 0x432   : > { %v1857_v43 = vadd.f32 %v2352_v42, %v1856_v37 }
 0x434   : > { %v1931_v47 = vadd.f32 %v1930_v36, %v1857_v43 }
 0x44b   : > { %v1934_v38 = vpop.f32.mrf.mxu3 }
 0x453   : > { %v1864_v39 = vpop.f32.mrf.mxu2  ;;  %v2011_v40 = vpop.f32.mrf.mxu3 }
 0x454   : > { %v1865_v57 = vadd.f32 %v2352_v42, %v1864_v39 }
 0x456   : > { %v1935_v50 = vadd.f32 %v1934_v38, %v1865_v57 }
 0x45b   : > { %v1974_v41 = vpop.f32.mrf.mxu2  ;;  %v2017_v44 = vpop.f32.mrf.mxu3 }
 0x45c   : > { %v1975_v48 = vadd.f32 %v1974_v41, %v1931_v47 }
 0x45e   : > { %v2012_v24 = vadd.f32 %v2011_v40, %v1975_v48 }
 0x463   : > { %v1979_v45 = vpop.f32.mrf.mxu2  ;;  %v2099_v49 = vpop.f32.mrf.mxu3 }
 0x464   : > { %v1980_v52 = vadd.f32 %v1979_v45, %v1935_v50 }
 0x466   : > { %v2018_v53 = vadd.f32 %v2017_v44, %v1980_v52 }
 0x46b   : > { %v2065_v46 = vpop.f32.mrf.mxu2  ;;  %v2103_v62 = vpop.f32.mrf.mxu3 }
 0x46c   : > { %v2066_v51 = vadd.f32 %v2065_v46, %v2012_v24 }
 0x46e   : > { %v2100_v60 = vadd.f32 %v2099_v49, %v2066_v51 }
 0x470   : > { %2106 = vst.msk [vmem:[%s264_s15] sm:$0xff] %vm1539_vm11, %v2100_v60 }
 0x473   : > { %v2069_v54 = vpop.f32.mrf.mxu2 }
 0x474   : > { %v2070_v31 = vadd.f32 %v2069_v54, %v2018_v53 }
 0x476   : > { %v2104_v63 = vadd.f32 %v2103_v62, %v2070_v31 }
 0x478   : > { %2107 = vst.msk [vmem:[%s264_s15 + $0x8] sm:$0xff] %vm1539_vm11, %v2104_v63 }
 0x479 PF: > { %s17_s21 = sadd.s32 1, %s2359_s21  }
 0x47a   : > { %p14_p4 = scmp.ge.s32.totalorder %s17_s21, 4  }
 0x47c   :  { %16 = sbr.rel (!%p14_p4) target bundleno = 1 (0x1), region = 90 }

</bundles_post_ra>
